<compile_context>
chip_gen: v5e
topology: v5e:2x2
jax: 0.10.0
libtpu: 0.0.40
codegen_flags: <defaults>
</compile_context>

<pallas_src>
import functools

import jax
import jax.numpy as jnp
from jax.experimental import pallas as pl
from jax.experimental.pallas import tpu as pltpu


LRELU_SLOPE = 0.2
BN_EPS = 1e-5
TM_MAX = 256      # M tile (rows of the im2col patch matrix)
TN_MAX = 256      # N tile (output channels), matches 256-wide MXU on v6e/v7x
TK = 512          # K tile (reduction)
TK_FINAL = 2048   # K tile for the cout=1 reduction kernel


# ----------------------------- Pallas kernels ------------------------------ #

def _conv_gemm_kernel(x_ref, w_ref, b_ref, o_ref, stats_ref, acc_ref, *,
                      n_k, apply_lrelu):
    """Tiled im2col GEMM: o = x @ w + b (bf16 operands, f32 MXU accumulation).

    At the last K step the epilogue adds the bias, optionally applies
    LeakyReLU(0.2), and also writes the per-(M-tile, column) partial sum and
    sum-of-squares so BatchNorm stats never need an extra pass over y.
    """
    k = pl.program_id(2)

    @pl.when(k == 0)
    def _():
        acc_ref[...] = jnp.zeros_like(acc_ref)

    acc_ref[...] += jnp.dot(x_ref[...], w_ref[...],
                            preferred_element_type=jnp.float32)

    @pl.when(k == n_k - 1)
    def _():
        acc = acc_ref[...] + b_ref[...]                       # (tm, tn) f32
        # Partial BN statistics for this M tile (ignored for non-BN layers).
        s = jnp.sum(acc, axis=0, keepdims=True)               # (1, tn)
        ss = jnp.sum(acc * acc, axis=0, keepdims=True)        # (1, tn)
        row = jax.lax.broadcasted_iota(jnp.int32, (8, acc.shape[1]), 0)
        stats = jnp.where(row == 0, jnp.broadcast_to(s, (8, acc.shape[1])),
                          jnp.where(row == 1,
                                    jnp.broadcast_to(ss, (8, acc.shape[1])),
                                    0.0))
        stats_ref[...] = stats[None]                          # (1, 8, tn)
        if apply_lrelu:
            acc = jnp.where(acc > 0, acc, LRELU_SLOPE * acc)
        o_ref[...] = acc.astype(o_ref.dtype)


def _affine_lrelu_kernel(y_ref, scale_ref, shift_ref, o_ref):
    """BatchNorm normalize folded to per-channel scale/shift + LeakyReLU(0.2)."""
    out = y_ref[...] * scale_ref[...] + shift_ref[...]
    o_ref[...] = jnp.where(out > 0, out, LRELU_SLOPE * out).astype(o_ref.dtype)


def _final_conv_kernel(x_ref, w_ref, b_ref, o_ref, acc_ref, *, n_k):
    """Final cout=1 conv: broadcast multiply + lane reduction (no padded MXU work)."""
    k = pl.program_id(1)

    @pl.when(k == 0)
    def _():
        acc_ref[...] = jnp.zeros_like(acc_ref)

    prod = x_ref[...].astype(jnp.float32) * w_ref[...]        # (tm, tk) f32
    acc_ref[...] += jnp.sum(prod, axis=-1, keepdims=True)     # (tm, 1)

    @pl.when(k == n_k - 1)
    def _():
        o_ref[...] = acc_ref[...] + b_ref[...]


# --------------------------- pallas_call wrappers --------------------------- #

def conv_gemm(patches, w, b, *, apply_lrelu, out_dtype, tm, tn, tk):
    Mp, K = patches.shape
    _, Np = w.shape
    n_m, n_n, n_k = Mp // tm, Np // tn, K // tk
    kernel = functools.partial(_conv_gemm_kernel, n_k=n_k, apply_lrelu=apply_lrelu)
    return pl.pallas_call(
        kernel,
        out_shape=(jax.ShapeDtypeStruct((Mp, Np), out_dtype),
                   jax.ShapeDtypeStruct((n_m, 8, Np), jnp.float32)),
        grid=(n_m, n_n, n_k),
        in_specs=[
            pl.BlockSpec((tm, tk), lambda i, j, kk: (i, kk)),
            pl.BlockSpec((tk, tn), lambda i, j, kk: (kk, j)),
            pl.BlockSpec((1, tn), lambda i, j, kk: (0, j)),
        ],
        out_specs=(
            pl.BlockSpec((tm, tn), lambda i, j, kk: (i, j)),
            pl.BlockSpec((1, 8, tn), lambda i, j, kk: (i, 0, j)),
        ),
        scratch_shapes=[pltpu.VMEM((tm, tn), jnp.float32)],
        compiler_params=pltpu.CompilerParams(
            dimension_semantics=("parallel", "parallel", "arbitrary")),
    )(patches, w, b)


def affine_lrelu(y, scale, shift, *, tm, tn, out_dtype):
    Mp, Np = y.shape
    return pl.pallas_call(
        _affine_lrelu_kernel,
        out_shape=jax.ShapeDtypeStruct((Mp, Np), out_dtype),
        grid=(Mp // tm, Np // tn),
        in_specs=[
            pl.BlockSpec((tm, tn), lambda i, j: (i, j)),
            pl.BlockSpec((1, tn), lambda i, j: (0, j)),
            pl.BlockSpec((1, tn), lambda i, j: (0, j)),
        ],
        out_specs=pl.BlockSpec((tm, tn), lambda i, j: (i, j)),
        compiler_params=pltpu.CompilerParams(
            dimension_semantics=("parallel", "parallel")),
    )(y, scale, shift)


def final_conv(patches, w_row, b11, *, tm, tk):
    Mp, K = patches.shape
    n_k = K // tk
    return pl.pallas_call(
        functools.partial(_final_conv_kernel, n_k=n_k),
        out_shape=jax.ShapeDtypeStruct((Mp, 1), jnp.float32),
        grid=(Mp // tm, n_k),
        in_specs=[
            pl.BlockSpec((tm, tk), lambda i, kk: (i, kk)),
            pl.BlockSpec((1, tk), lambda i, kk: (0, kk)),
            pl.BlockSpec((1, 1), lambda i, kk: (0, 0)),
        ],
        out_specs=pl.BlockSpec((tm, 1), lambda i, kk: (i, 0)),
        scratch_shapes=[pltpu.VMEM((tm, 1), jnp.float32)],
        compiler_params=pltpu.CompilerParams(
            dimension_semantics=("parallel", "arbitrary")),
    )(patches, w_row, b11)


# ------------------------------- JAX glue ---------------------------------- #

def _round_up(a, m):
    return (a + m - 1) // m * m


def _m_tiling(P):
    """Pick (tm, Mp) with tm | Mp, tm a multiple of 16 (bf16 sublane packing)."""
    if P >= TM_MAX:
        return TM_MAX, _round_up(P, TM_MAX)
    tm = _round_up(P, 16)
    return tm, tm


def _pad2d(x, rows, cols):
    return jnp.pad(x, ((0, rows - x.shape[0]), (0, cols - x.shape[1])))


def _im2col(x, kh, kw, stride, pad):
    """x: NHWC -> (patches [N*Ho*Wo, C*kh*kw], feature order (c,i,j)), Ho, Wo."""
    N, H, W, C = x.shape
    xp = jnp.pad(x, ((0, 0), (pad, pad), (pad, pad), (0, 0)))
    Ho = (H + 2 * pad - kh) // stride + 1
    Wo = (W + 2 * pad - kw) // stride + 1
    cols = []
    for i in range(kh):
        for j in range(kw):
            cols.append(xp[:, i:i + stride * Ho:stride, j:j + stride * Wo:stride, :])
    p = jnp.stack(cols, axis=0).reshape(kh, kw, N, Ho, Wo, C)
    p = p.transpose(2, 3, 4, 5, 0, 1).reshape(N * Ho * Wo, C * kh * kw)
    return p, Ho, Wo


def init_params(key, input_nc=3, ndf=64, n_layers=3):
    """Deterministic synthetic init mirroring PatchDiscriminator.__init__/weights_init."""
    KW = 4
    cfgs = [(input_nc, ndf, 2, True, False)]          # (cin, cout, stride, bias, bn)
    nf_mult = 1
    for n in range(1, n_layers):
        nf_prev, nf_mult = nf_mult, min(2 ** n, 8)
        cfgs.append((ndf * nf_prev, ndf * nf_mult, 2, False, True))
    nf_prev, nf_mult = nf_mult, min(2 ** n_layers, 8)
    cfgs.append((ndf * nf_prev, ndf * nf_mult, 1, False, True))
    cfgs.append((ndf * nf_mult, 1, 1, True, False))

    params = []
    for cin, cout, stride, has_bias, has_bn in cfgs:
        key, k1, k2, k3 = jax.random.split(key, 4)
        w = 0.02 * jax.random.normal(k1, (cout, cin, KW, KW), jnp.float32)   # N(0,0.02)
        if has_bias:
            b = 0.02 * jax.random.normal(k2, (cout,), jnp.float32)
        else:
            b = jnp.zeros((cout,), jnp.float32)
        if has_bn:
            gamma = 1.0 + 0.02 * jax.random.normal(k3, (cout,), jnp.float32)  # N(1,0.02)
            beta = jnp.zeros((cout,), jnp.float32)
        else:
            gamma = beta = None
        params.append(dict(w=w, b=b, gamma=gamma, beta=beta,
                           stride=stride, has_bn=has_bn))
    return params


def patch_discriminator_forward(x_nchw, params):
    """x_nchw: (N, C, H, W) float32 -> (N, 1, Ho, Wo) float32."""
    # Keep activations in bf16 between layers (MXU-native, half the DMA bytes);
    # all accumulation, bias, BN and LeakyReLU epilogues stay in f32.
    x = jnp.transpose(x_nchw, (0, 2, 3, 1)).astype(jnp.bfloat16)   # NHWC
    n_total = len(params)

    for idx, p in enumerate(params):
        N = x.shape[0]
        stride = p["stride"]
        cout = p["w"].shape[0]
        is_last = idx == n_total - 1

        patches, Ho, Wo = _im2col(x, 4, 4, stride, 1)
        P, K = patches.shape
        tm, Mp = _m_tiling(P)

        if is_last:
            # cout == 1: broadcast multiply + lane reduction, no MXU padding.
            tk = TK_FINAL if K % TK_FINAL == 0 else K
            w_row = jnp.transpose(p["w"], (1, 2, 3, 0)).reshape(K, 1).T  # (1, K) f32
            b11 = p["b"].reshape(1, 1).astype(jnp.float32)
            patches_p = _pad2d(patches, Mp, K).astype(jnp.bfloat16)
            y = final_conv(patches_p, w_row, b11, tm=tm, tk=tk)
            x = y[:P, :1].reshape(N, Ho, Wo, 1).astype(jnp.float32)
            continue

        Np = max(_round_up(cout, 128), 128)          # lane-dense output columns
        tn = TN_MAX if Np % TN_MAX == 0 else 128
        tk = TK if K % TK == 0 else K                # layer 1: K=48 full-extent block

        # PyTorch weight (cout, cin, kh, kw) -> (K, cout), feature order (cin, i, j).
        w2 = jnp.transpose(p["w"], (1, 2, 3, 0)).reshape(K, cout)
        w_p = _pad2d(w2, K, Np).astype(jnp.bfloat16)
        b_p = jnp.zeros((1, Np), jnp.float32).at[0, :cout].set(p["b"])
        patches_p = _pad2d(patches, Mp, K).astype(jnp.bfloat16)

        if p["has_bn"]:
            # Conv (no bias, no activation) + fused per-tile BN partial statistics.
            y, stats = conv_gemm(patches_p, w_p, b_p, apply_lrelu=False,
                                 out_dtype=jnp.float32, tm=tm, tn=tn, tk=tk)
            s = jnp.sum(stats[:, 0, :], axis=0)                    # (Np,)
            ss = jnp.sum(stats[:, 1, :], axis=0)
            mean = s / P
            var = jnp.maximum(ss / P - mean * mean, 0.0)           # biased, train-mode
            inv_std = jax.lax.rsqrt(var + BN_EPS)
            gamma = jnp.zeros((Np,), jnp.float32).at[:cout].set(p["gamma"])
            beta = jnp.zeros((Np,), jnp.float32).at[:cout].set(p["beta"])
            scale = (gamma * inv_std).reshape(1, Np)
            shift = (beta - mean * gamma * inv_std).reshape(1, Np)
            y = affine_lrelu(y, scale, shift, tm=tm, tn=tn, out_dtype=jnp.bfloat16)
        else:
            # Layer 1: bias + LeakyReLU fused into the GEMM epilogue.
            y, _ = conv_gemm(patches_p, w_p, b_p, apply_lrelu=True,
                             out_dtype=jnp.bfloat16, tm=tm, tn=tn, tk=tk)

        x = y[:P, :cout].reshape(N, Ho, Wo, cout)

    return jnp.transpose(x, (0, 3, 1, 2))   # back to NCHW


# --------------------------------- main ------------------------------------ #

if __name__ == "__main__":
    key = jax.random.PRNGKey(0)
    k_in, k_par = jax.random.split(key)

    # Smallest spatial size keeping every conv output non-degenerate: 32x32.
    x = jax.random.normal(k_in, (2, 3, 32, 32), jnp.float32)
    params = init_params(k_par, input_nc=3, ndf=64, n_layers=3)

    fwd = jax.jit(lambda inp: patch_discriminator_forward(inp, params))
    out = fwd(x)                                   # expected shape (2, 1, 2, 2)
    jax.block_until_ready(out)
    assert out.shape == (2, 1, 2, 2), out.shape
    print("KERNEL_OK")
</pallas_src>

<mosaic_0001>
module attributes {stable_mosaic.version = 11 : i64} {
  func.func @_conv_gemm_kernel(%arg0: i32, %arg1: i32, %arg2: i32, %arg3: memref<256x48xbf16, #tpu.memory_space<vmem>>, %arg4: memref<48x128xbf16, #tpu.memory_space<vmem>>, %arg5: memref<1x128xf32, #tpu.memory_space<vmem>>, %arg6: memref<256x128xbf16, #tpu.memory_space<vmem>>, %arg7: memref<1x8x128xf32, #tpu.memory_space<vmem>>, %arg8: memref<256x128xf32, #tpu.memory_space<vmem>>) attributes {dimension_semantics = [#tpu.dimension_semantics<parallel>, #tpu.dimension_semantics<parallel>, #tpu.dimension_semantics<arbitrary>], iteration_bounds = array<i64: 2, 1, 1>, scalar_prefetch = 0 : i64, scratch_operands = 1 : i64, tpu.core_type = #tpu.core_type<tc>, window_params = [{transform_indices = @transform_0, window_bounds = array<i64: 256, 48>}, {transform_indices = @transform_1, window_bounds = array<i64: 48, 128>}, {transform_indices = @transform_2, window_bounds = array<i64: 1, 128>}, {transform_indices = @transform_3, window_bounds = array<i64: 256, 128>}, {transform_indices = @transform_4, window_bounds = array<i64: 1, 8, 128>}]} {
    %c0_i32 = arith.constant 0 : i32
    %0 = arith.cmpi eq, %arg2, %c0_i32 : i32
    %1 = arith.extui %0 : i1 to i32
    %c0_i32_0 = arith.constant 0 : i32
    %2 = arith.cmpi ne, %1, %c0_i32_0 : i32
    scf.if %2 {
      %cst_10 = arith.constant 0.000000e+00 : f32
      %12 = vector.broadcast %cst_10 : f32 to vector<256x128xf32>
      %c0_11 = arith.constant 0 : index
      %c0_12 = arith.constant 0 : index
      %13 = vector.load %arg8[%c0_11, %c0_12] : memref<256x128xf32, #tpu.memory_space<vmem>>, vector<256x128xf32>
      tpu.vector_store %arg8[%c0_11, %c0_12], %12 {strides = array<i32>} : memref<256x128xf32, #tpu.memory_space<vmem>>, vector<256x128xf32>,
    } else {
    }
    %c0 = arith.constant 0 : index
    %c0_1 = arith.constant 0 : index
    %3 = vector.load %arg8[%c0, %c0_1] : memref<256x128xf32, #tpu.memory_space<vmem>>, vector<256x128xf32>
    %c0_2 = arith.constant 0 : index
    %c0_3 = arith.constant 0 : index
    %4 = vector.load %arg3[%c0_2, %c0_3] : memref<256x48xbf16, #tpu.memory_space<vmem>>, vector<256x48xbf16>
    %c0_4 = arith.constant 0 : index
    %c0_5 = arith.constant 0 : index
    %5 = vector.load %arg4[%c0_4, %c0_5] : memref<48x128xbf16, #tpu.memory_space<vmem>>, vector<48x128xbf16>
    %cst = arith.constant dense<0.000000e+00> : vector<256x128xf32>
    %6 = tpu.matmul %4, %5, %cst {dimension_numbers = #tpu.dot_dimension_numbers<[1], [0], [0], [1], [0, 0, 1, 1], [], []>} : vector<256x48xbf16>, vector<48x128xbf16>, vector<256x128xf32> -> vector<256x128xf32>
    %7 = arith.addf %3, %6 : vector<256x128xf32>
    %c0_6 = arith.constant 0 : index
    %c0_7 = arith.constant 0 : index
    %8 = vector.load %arg8[%c0_6, %c0_7] : memref<256x128xf32, #tpu.memory_space<vmem>>, vector<256x128xf32>
    tpu.vector_store %arg8[%c0_6, %c0_7], %7 {strides = array<i32>} : memref<256x128xf32, #tpu.memory_space<vmem>>, vector<256x128xf32>,
    %c0_i32_8 = arith.constant 0 : i32
    %9 = arith.cmpi eq, %arg2, %c0_i32_8 : i32
    %10 = arith.extui %9 : i1 to i32
    %c0_i32_9 = arith.constant 0 : i32
    %11 = arith.cmpi ne, %10, %c0_i32_9 : i32
    scf.if %11 {
      %c0_10 = arith.constant 0 : index
      %c0_11 = arith.constant 0 : index
      %12 = vector.load %arg8[%c0_10, %c0_11] : memref<256x128xf32, #tpu.memory_space<vmem>>, vector<256x128xf32>
      %c0_12 = arith.constant 0 : index
      %c0_13 = arith.constant 0 : index
      %13 = vector.load %arg5[%c0_12, %c0_13] : memref<1x128xf32, #tpu.memory_space<vmem>>, vector<1x128xf32>
      %14 = vector.broadcast %13 : vector<1x128xf32> to vector<256x128xf32>
      %15 = arith.addf %12, %14 : vector<256x128xf32>
      %cst_14 = arith.constant dense<0.000000e+00> : vector<128xf32>
      %16 = vector.multi_reduction <add>, %15, %cst_14 [0] : vector<256x128xf32> to vector<128xf32>
      %17 = vector.shape_cast %16 : vector<128xf32> to vector<1x128xf32>
      %18 = arith.mulf %15, %15 : vector<256x128xf32>
      %cst_15 = arith.constant dense<0.000000e+00> : vector<128xf32>
      %19 = vector.multi_reduction <add>, %18, %cst_15 [0] : vector<256x128xf32> to vector<128xf32>
      %20 = vector.shape_cast %19 : vector<128xf32> to vector<1x128xf32>
      %21 = tpu.iota {dimensions = array<i32: 0>} : vector<8x128xi32>
      %c0_i32_16 = arith.constant 0 : i32
      %22 = vector.broadcast %c0_i32_16 : i32 to vector<8x128xi32>
      %23 = arith.cmpi eq, %21, %22 : vector<8x128xi32>
      %24 = vector.shape_cast %17 : vector<1x128xf32> to vector<1x128xf32>
      %25 = vector.broadcast %24 : vector<1x128xf32> to vector<8x128xf32>
      %c1_i32 = arith.constant 1 : i32
      %26 = vector.broadcast %c1_i32 : i32 to vector<8x128xi32>
      %27 = arith.cmpi eq, %21, %26 : vector<8x128xi32>
      %28 = vector.shape_cast %20 : vector<1x128xf32> to vector<1x128xf32>
      %29 = vector.broadcast %28 : vector<1x128xf32> to vector<8x128xf32>
      %cst_17 = arith.constant 0.000000e+00 : f32
      %30 = vector.broadcast %cst_17 : f32 to vector<8x128xf32>
      %31 = arith.select %27, %29, %30 : vector<8x128xi1>, vector<8x128xf32>
      %32 = arith.select %23, %25, %31 : vector<8x128xi1>, vector<8x128xf32>
      %33 = vector.shape_cast %32 : vector<8x128xf32> to vector<1x8x128xf32>
      %c0_18 = arith.constant 0 : index
      %c0_19 = arith.constant 0 : index
      %c0_20 = arith.constant 0 : index
      %34 = vector.load %arg7[%c0_18, %c0_19, %c0_20] : memref<1x8x128xf32, #tpu.memory_space<vmem>>, vector<1x8x128xf32>
      tpu.vector_store %arg7[%c0_18, %c0_19, %c0_20], %33 {strides = array<i32>} : memref<1x8x128xf32, #tpu.memory_space<vmem>>, vector<1x8x128xf32>,
      %cst_21 = arith.constant 0.000000e+00 : f32
      %35 = vector.broadcast %cst_21 : f32 to vector<256x128xf32>
      %36 = arith.cmpf ogt, %15, %35 : vector<256x128xf32>
      %cst_22 = arith.constant 2.000000e-01 : f32
      %37 = vector.broadcast %cst_22 : f32 to vector<256x128xf32>
      %38 = arith.mulf %37, %15 : vector<256x128xf32>
      %39 = arith.select %36, %15, %38 : vector<256x128xi1>, vector<256x128xf32>
      %40 = arith.truncf %39 : vector<256x128xf32> to vector<256x128xbf16>
      %c0_23 = arith.constant 0 : index
      %c0_24 = arith.constant 0 : index
      %41 = vector.load %arg6[%c0_23, %c0_24] : memref<256x128xbf16, #tpu.memory_space<vmem>>, vector<256x128xbf16>
      tpu.vector_store %arg6[%c0_23, %c0_24], %40 {strides = array<i32>} : memref<256x128xbf16, #tpu.memory_space<vmem>>, vector<256x128xbf16>,
    } else {
    }
    return
  }
  func.func @transform_0(%arg0: i32, %arg1: i32, %arg2: i32) -> (i32, i32) {
    %c0_i32 = arith.constant 0 : i32
    return %arg0, %arg2 : i32, i32
  }
  func.func @transform_1(%arg0: i32, %arg1: i32, %arg2: i32) -> (i32, i32) {
    %c0_i32 = arith.constant 0 : i32
    return %arg2, %arg1 : i32, i32
  }
  func.func @transform_2(%arg0: i32, %arg1: i32, %arg2: i32) -> (i32, i32) {
    %c0_i32 = arith.constant 0 : i32
    %c0_i32_0 = arith.constant 0 : i32
    return %c0_i32, %arg1 : i32, i32
  }
  func.func @transform_3(%arg0: i32, %arg1: i32, %arg2: i32) -> (i32, i32) {
    %c0_i32 = arith.constant 0 : i32
    return %arg0, %arg1 : i32, i32
  }
  func.func @transform_4(%arg0: i32, %arg1: i32, %arg2: i32) -> (i32, i32, i32) {
    %c0_i32 = arith.constant 0 : i32
    %c0_i32_0 = arith.constant 0 : i32
    return %arg0, %c0_i32, %arg1 : i32, i32, i32
  }
}

module attributes {stable_mosaic.version = 11 : i64} {
  func.func @_conv_gemm_kernel(%arg0: i32, %arg1: i32, %arg2: i32, %arg3: memref<128x512xbf16, #tpu.memory_space<vmem>>, %arg4: memref<512x128xbf16, #tpu.memory_space<vmem>>, %arg5: memref<1x128xf32, #tpu.memory_space<vmem>>, %arg6: memref<128x128xf32, #tpu.memory_space<vmem>>, %arg7: memref<1x8x128xf32, #tpu.memory_space<vmem>>, %arg8: memref<128x128xf32, #tpu.memory_space<vmem>>) attributes {dimension_semantics = [#tpu.dimension_semantics<parallel>, #tpu.dimension_semantics<parallel>, #tpu.dimension_semantics<arbitrary>], iteration_bounds = array<i64: 1, 1, 2>, scalar_prefetch = 0 : i64, scratch_operands = 1 : i64, tpu.core_type = #tpu.core_type<tc>, window_params = [{transform_indices = @transform_0, window_bounds = array<i64: 128, 512>}, {transform_indices = @transform_1, window_bounds = array<i64: 512, 128>}, {transform_indices = @transform_2, window_bounds = array<i64: 1, 128>}, {transform_indices = @transform_3, window_bounds = array<i64: 128, 128>}, {transform_indices = @transform_4, window_bounds = array<i64: 1, 8, 128>}]} {
    %c0_i32 = arith.constant 0 : i32
    %0 = arith.cmpi eq, %arg2, %c0_i32 : i32
    %1 = arith.extui %0 : i1 to i32
    %c0_i32_0 = arith.constant 0 : i32
    %2 = arith.cmpi ne, %1, %c0_i32_0 : i32
    scf.if %2 {
      %cst_9 = arith.constant 0.000000e+00 : f32
      %12 = vector.broadcast %cst_9 : f32 to vector<128x128xf32>
      %c0_10 = arith.constant 0 : index
      %c0_11 = arith.constant 0 : index
      %13 = vector.load %arg8[%c0_10, %c0_11] : memref<128x128xf32, #tpu.memory_space<vmem>>, vector<128x128xf32>
      tpu.vector_store %arg8[%c0_10, %c0_11], %12 {strides = array<i32>} : memref<128x128xf32, #tpu.memory_space<vmem>>, vector<128x128xf32>,
    } else {
    }
    %c0 = arith.constant 0 : index
    %c0_1 = arith.constant 0 : index
    %3 = vector.load %arg8[%c0, %c0_1] : memref<128x128xf32, #tpu.memory_space<vmem>>, vector<128x128xf32>
    %c0_2 = arith.constant 0 : index
    %c0_3 = arith.constant 0 : index
    %4 = vector.load %arg3[%c0_2, %c0_3] : memref<128x512xbf16, #tpu.memory_space<vmem>>, vector<128x512xbf16>
    %c0_4 = arith.constant 0 : index
    %c0_5 = arith.constant 0 : index
    %5 = vector.load %arg4[%c0_4, %c0_5] : memref<512x128xbf16, #tpu.memory_space<vmem>>, vector<512x128xbf16>
    %cst = arith.constant dense<0.000000e+00> : vector<128x128xf32>
    %6 = tpu.matmul %4, %5, %cst {dimension_numbers = #tpu.dot_dimension_numbers<[1], [0], [0], [1], [0, 0, 1, 1], [], []>} : vector<128x512xbf16>, vector<512x128xbf16>, vector<128x128xf32> -> vector<128x128xf32>
    %7 = arith.addf %3, %6 : vector<128x128xf32>
    %c0_6 = arith.constant 0 : index
    %c0_7 = arith.constant 0 : index
    %8 = vector.load %arg8[%c0_6, %c0_7] : memref<128x128xf32, #tpu.memory_space<vmem>>, vector<128x128xf32>
    tpu.vector_store %arg8[%c0_6, %c0_7], %7 {strides = array<i32>} : memref<128x128xf32, #tpu.memory_space<vmem>>, vector<128x128xf32>,
    %c1_i32 = arith.constant 1 : i32
    %9 = arith.cmpi eq, %arg2, %c1_i32 : i32
    %10 = arith.extui %9 : i1 to i32
    %c0_i32_8 = arith.constant 0 : i32
    %11 = arith.cmpi ne, %10, %c0_i32_8 : i32
    scf.if %11 {
      %c0_9 = arith.constant 0 : index
      %c0_10 = arith.constant 0 : index
      %12 = vector.load %arg8[%c0_9, %c0_10] : memref<128x128xf32, #tpu.memory_space<vmem>>, vector<128x128xf32>
      %c0_11 = arith.constant 0 : index
      %c0_12 = arith.constant 0 : index
      %13 = vector.load %arg5[%c0_11, %c0_12] : memref<1x128xf32, #tpu.memory_space<vmem>>, vector<1x128xf32>
      %14 = vector.broadcast %13 : vector<1x128xf32> to vector<128x128xf32>
      %15 = arith.addf %12, %14 : vector<128x128xf32>
      %cst_13 = arith.constant dense<0.000000e+00> : vector<128xf32>
      %16 = vector.multi_reduction <add>, %15, %cst_13 [0] : vector<128x128xf32> to vector<128xf32>
      %17 = vector.shape_cast %16 : vector<128xf32> to vector<1x128xf32>
      %18 = arith.mulf %15, %15 : vector<128x128xf32>
      %cst_14 = arith.constant dense<0.000000e+00> : vector<128xf32>
      %19 = vector.multi_reduction <add>, %18, %cst_14 [0] : vector<128x128xf32> to vector<128xf32>
      %20 = vector.shape_cast %19 : vector<128xf32> to vector<1x128xf32>
      %21 = tpu.iota {dimensions = array<i32: 0>} : vector<8x128xi32>
      %c0_i32_15 = arith.constant 0 : i32
      %22 = vector.broadcast %c0_i32_15 : i32 to vector<8x128xi32>
      %23 = arith.cmpi eq, %21, %22 : vector<8x128xi32>
      %24 = vector.shape_cast %17 : vector<1x128xf32> to vector<1x128xf32>
      %25 = vector.broadcast %24 : vector<1x128xf32> to vector<8x128xf32>
      %c1_i32_16 = arith.constant 1 : i32
      %26 = vector.broadcast %c1_i32_16 : i32 to vector<8x128xi32>
      %27 = arith.cmpi eq, %21, %26 : vector<8x128xi32>
      %28 = vector.shape_cast %20 : vector<1x128xf32> to vector<1x128xf32>
      %29 = vector.broadcast %28 : vector<1x128xf32> to vector<8x128xf32>
      %cst_17 = arith.constant 0.000000e+00 : f32
      %30 = vector.broadcast %cst_17 : f32 to vector<8x128xf32>
      %31 = arith.select %27, %29, %30 : vector<8x128xi1>, vector<8x128xf32>
      %32 = arith.select %23, %25, %31 : vector<8x128xi1>, vector<8x128xf32>
      %33 = vector.shape_cast %32 : vector<8x128xf32> to vector<1x8x128xf32>
      %c0_18 = arith.constant 0 : index
      %c0_19 = arith.constant 0 : index
      %c0_20 = arith.constant 0 : index
      %34 = vector.load %arg7[%c0_18, %c0_19, %c0_20] : memref<1x8x128xf32, #tpu.memory_space<vmem>>, vector<1x8x128xf32>
      tpu.vector_store %arg7[%c0_18, %c0_19, %c0_20], %33 {strides = array<i32>} : memref<1x8x128xf32, #tpu.memory_space<vmem>>, vector<1x8x128xf32>,
      %c0_21 = arith.constant 0 : index
      %c0_22 = arith.constant 0 : index
      %35 = vector.load %arg6[%c0_21, %c0_22] : memref<128x128xf32, #tpu.memory_space<vmem>>, vector<128x128xf32>
      tpu.vector_store %arg6[%c0_21, %c0_22], %15 {strides = array<i32>} : memref<128x128xf32, #tpu.memory_space<vmem>>, vector<128x128xf32>,
    } else {
    }
    return
  }
  func.func @transform_0(%arg0: i32, %arg1: i32, %arg2: i32) -> (i32, i32) {
    %c0_i32 = arith.constant 0 : i32
    return %arg0, %arg2 : i32, i32
  }
  func.func @transform_1(%arg0: i32, %arg1: i32, %arg2: i32) -> (i32, i32) {
    %c0_i32 = arith.constant 0 : i32
    return %arg2, %arg1 : i32, i32
  }
  func.func @transform_2(%arg0: i32, %arg1: i32, %arg2: i32) -> (i32, i32) {
    %c0_i32 = arith.constant 0 : i32
    %c0_i32_0 = arith.constant 0 : i32
    return %c0_i32, %arg1 : i32, i32
  }
  func.func @transform_3(%arg0: i32, %arg1: i32, %arg2: i32) -> (i32, i32) {
    %c0_i32 = arith.constant 0 : i32
    return %arg0, %arg1 : i32, i32
  }
  func.func @transform_4(%arg0: i32, %arg1: i32, %arg2: i32) -> (i32, i32, i32) {
    %c0_i32 = arith.constant 0 : i32
    %c0_i32_0 = arith.constant 0 : i32
    return %arg0, %c0_i32, %arg1 : i32, i32, i32
  }
}

module attributes {stable_mosaic.version = 11 : i64} {
  func.func @_affine_lrelu_kernel(%arg0: i32, %arg1: i32, %arg2: memref<128x128xf32, #tpu.memory_space<vmem>>, %arg3: memref<1x128xf32, #tpu.memory_space<vmem>>, %arg4: memref<1x128xf32, #tpu.memory_space<vmem>>, %arg5: memref<128x128xbf16, #tpu.memory_space<vmem>>) attributes {dimension_semantics = [#tpu.dimension_semantics<parallel>, #tpu.dimension_semantics<parallel>], iteration_bounds = array<i64: 1, 1>, scalar_prefetch = 0 : i64, scratch_operands = 0 : i64, tpu.core_type = #tpu.core_type<tc>, window_params = [{transform_indices = @transform_0, window_bounds = array<i64: 128, 128>}, {transform_indices = @transform_1, window_bounds = array<i64: 1, 128>}, {transform_indices = @transform_2, window_bounds = array<i64: 1, 128>}, {transform_indices = @transform_3, window_bounds = array<i64: 128, 128>}]} {
    %c0 = arith.constant 0 : index
    %c0_0 = arith.constant 0 : index
    %0 = vector.load %arg2[%c0, %c0_0] : memref<128x128xf32, #tpu.memory_space<vmem>>, vector<128x128xf32>
    %c0_1 = arith.constant 0 : index
    %c0_2 = arith.constant 0 : index
    %1 = vector.load %arg3[%c0_1, %c0_2] : memref<1x128xf32, #tpu.memory_space<vmem>>, vector<1x128xf32>
    %2 = vector.broadcast %1 : vector<1x128xf32> to vector<128x128xf32>
    %3 = arith.mulf %0, %2 : vector<128x128xf32>
    %c0_3 = arith.constant 0 : index
    %c0_4 = arith.constant 0 : index
    %4 = vector.load %arg4[%c0_3, %c0_4] : memref<1x128xf32, #tpu.memory_space<vmem>>, vector<1x128xf32>
    %5 = vector.broadcast %4 : vector<1x128xf32> to vector<128x128xf32>
    %6 = arith.addf %3, %5 : vector<128x128xf32>
    %cst = arith.constant 0.000000e+00 : f32
    %7 = vector.broadcast %cst : f32 to vector<128x128xf32>
    %8 = arith.cmpf ogt, %6, %7 : vector<128x128xf32>
    %cst_5 = arith.constant 2.000000e-01 : f32
    %9 = vector.broadcast %cst_5 : f32 to vector<128x128xf32>
    %10 = arith.mulf %9, %6 : vector<128x128xf32>
    %11 = arith.select %8, %6, %10 : vector<128x128xi1>, vector<128x128xf32>
    %12 = arith.truncf %11 : vector<128x128xf32> to vector<128x128xbf16>
    %c0_6 = arith.constant 0 : index
    %c0_7 = arith.constant 0 : index
    %13 = vector.load %arg5[%c0_6, %c0_7] : memref<128x128xbf16, #tpu.memory_space<vmem>>, vector<128x128xbf16>
    tpu.vector_store %arg5[%c0_6, %c0_7], %12 {strides = array<i32>} : memref<128x128xbf16, #tpu.memory_space<vmem>>, vector<128x128xbf16>,
    return
  }
  func.func @transform_0(%arg0: i32, %arg1: i32) -> (i32, i32) {
    %c0_i32 = arith.constant 0 : i32
    return %arg0, %arg1 : i32, i32
  }
  func.func @transform_1(%arg0: i32, %arg1: i32) -> (i32, i32) {
    %c0_i32 = arith.constant 0 : i32
    %c0_i32_0 = arith.constant 0 : i32
    return %c0_i32, %arg1 : i32, i32
  }
  func.func @transform_2(%arg0: i32, %arg1: i32) -> (i32, i32) {
    %c0_i32 = arith.constant 0 : i32
    %c0_i32_0 = arith.constant 0 : i32
    return %c0_i32, %arg1 : i32, i32
  }
  func.func @transform_3(%arg0: i32, %arg1: i32) -> (i32, i32) {
    %c0_i32 = arith.constant 0 : i32
    return %arg0, %arg1 : i32, i32
  }
}

module attributes {stable_mosaic.version = 11 : i64} {
  func.func @_conv_gemm_kernel(%arg0: i32, %arg1: i32, %arg2: i32, %arg3: memref<32x512xbf16, #tpu.memory_space<vmem>>, %arg4: memref<512x256xbf16, #tpu.memory_space<vmem>>, %arg5: memref<1x256xf32, #tpu.memory_space<vmem>>, %arg6: memref<32x256xf32, #tpu.memory_space<vmem>>, %arg7: memref<1x8x256xf32, #tpu.memory_space<vmem>>, %arg8: memref<32x256xf32, #tpu.memory_space<vmem>>) attributes {dimension_semantics = [#tpu.dimension_semantics<parallel>, #tpu.dimension_semantics<parallel>, #tpu.dimension_semantics<arbitrary>], iteration_bounds = array<i64: 1, 1, 4>, scalar_prefetch = 0 : i64, scratch_operands = 1 : i64, tpu.core_type = #tpu.core_type<tc>, window_params = [{transform_indices = @transform_0, window_bounds = array<i64: 32, 512>}, {transform_indices = @transform_1, window_bounds = array<i64: 512, 256>}, {transform_indices = @transform_2, window_bounds = array<i64: 1, 256>}, {transform_indices = @transform_3, window_bounds = array<i64: 32, 256>}, {transform_indices = @transform_4, window_bounds = array<i64: 1, 8, 256>}]} {
    %c0_i32 = arith.constant 0 : i32
    %0 = arith.cmpi eq, %arg2, %c0_i32 : i32
    %1 = arith.extui %0 : i1 to i32
    %c0_i32_0 = arith.constant 0 : i32
    %2 = arith.cmpi ne, %1, %c0_i32_0 : i32
    scf.if %2 {
      %cst_9 = arith.constant 0.000000e+00 : f32
      %12 = vector.broadcast %cst_9 : f32 to vector<32x256xf32>
      %c0_10 = arith.constant 0 : index
      %c0_11 = arith.constant 0 : index
      %13 = vector.load %arg8[%c0_10, %c0_11] : memref<32x256xf32, #tpu.memory_space<vmem>>, vector<32x256xf32>
      tpu.vector_store %arg8[%c0_10, %c0_11], %12 {strides = array<i32>} : memref<32x256xf32, #tpu.memory_space<vmem>>, vector<32x256xf32>,
    } else {
    }
    %c0 = arith.constant 0 : index
    %c0_1 = arith.constant 0 : index
    %3 = vector.load %arg8[%c0, %c0_1] : memref<32x256xf32, #tpu.memory_space<vmem>>, vector<32x256xf32>
    %c0_2 = arith.constant 0 : index
    %c0_3 = arith.constant 0 : index
    %4 = vector.load %arg3[%c0_2, %c0_3] : memref<32x512xbf16, #tpu.memory_space<vmem>>, vector<32x512xbf16>
    %c0_4 = arith.constant 0 : index
    %c0_5 = arith.constant 0 : index
    %5 = vector.load %arg4[%c0_4, %c0_5] : memref<512x256xbf16, #tpu.memory_space<vmem>>, vector<512x256xbf16>
    %cst = arith.constant dense<0.000000e+00> : vector<32x256xf32>
    %6 = tpu.matmul %4, %5, %cst {dimension_numbers = #tpu.dot_dimension_numbers<[1], [0], [0], [1], [0, 0, 1, 1], [], []>} : vector<32x512xbf16>, vector<512x256xbf16>, vector<32x256xf32> -> vector<32x256xf32>
    %7 = arith.addf %3, %6 : vector<32x256xf32>
    %c0_6 = arith.constant 0 : index
    %c0_7 = arith.constant 0 : index
    %8 = vector.load %arg8[%c0_6, %c0_7] : memref<32x256xf32, #tpu.memory_space<vmem>>, vector<32x256xf32>
    tpu.vector_store %arg8[%c0_6, %c0_7], %7 {strides = array<i32>} : memref<32x256xf32, #tpu.memory_space<vmem>>, vector<32x256xf32>,
    %c3_i32 = arith.constant 3 : i32
    %9 = arith.cmpi eq, %arg2, %c3_i32 : i32
    %10 = arith.extui %9 : i1 to i32
    %c0_i32_8 = arith.constant 0 : i32
    %11 = arith.cmpi ne, %10, %c0_i32_8 : i32
    scf.if %11 {
      %c0_9 = arith.constant 0 : index
      %c0_10 = arith.constant 0 : index
      %12 = vector.load %arg8[%c0_9, %c0_10] : memref<32x256xf32, #tpu.memory_space<vmem>>, vector<32x256xf32>
      %c0_11 = arith.constant 0 : index
      %c0_12 = arith.constant 0 : index
      %13 = vector.load %arg5[%c0_11, %c0_12] : memref<1x256xf32, #tpu.memory_space<vmem>>, vector<1x256xf32>
      %14 = vector.broadcast %13 : vector<1x256xf32> to vector<32x256xf32>
      %15 = arith.addf %12, %14 : vector<32x256xf32>
      %cst_13 = arith.constant dense<0.000000e+00> : vector<256xf32>
      %16 = vector.multi_reduction <add>, %15, %cst_13 [0] : vector<32x256xf32> to vector<256xf32>
      %17 = vector.shape_cast %16 : vector<256xf32> to vector<1x256xf32>
      %18 = arith.mulf %15, %15 : vector<32x256xf32>
      %cst_14 = arith.constant dense<0.000000e+00> : vector<256xf32>
      %19 = vector.multi_reduction <add>, %18, %cst_14 [0] : vector<32x256xf32> to vector<256xf32>
      %20 = vector.shape_cast %19 : vector<256xf32> to vector<1x256xf32>
      %21 = tpu.iota {dimensions = array<i32: 0>} : vector<8x256xi32>
      %c0_i32_15 = arith.constant 0 : i32
      %22 = vector.broadcast %c0_i32_15 : i32 to vector<8x256xi32>
      %23 = arith.cmpi eq, %21, %22 : vector<8x256xi32>
      %24 = vector.shape_cast %17 : vector<1x256xf32> to vector<1x256xf32>
      %25 = vector.broadcast %24 : vector<1x256xf32> to vector<8x256xf32>
      %c1_i32 = arith.constant 1 : i32
      %26 = vector.broadcast %c1_i32 : i32 to vector<8x256xi32>
      %27 = arith.cmpi eq, %21, %26 : vector<8x256xi32>
      %28 = vector.shape_cast %20 : vector<1x256xf32> to vector<1x256xf32>
      %29 = vector.broadcast %28 : vector<1x256xf32> to vector<8x256xf32>
      %cst_16 = arith.constant 0.000000e+00 : f32
      %30 = vector.broadcast %cst_16 : f32 to vector<8x256xf32>
      %31 = arith.select %27, %29, %30 : vector<8x256xi1>, vector<8x256xf32>
      %32 = arith.select %23, %25, %31 : vector<8x256xi1>, vector<8x256xf32>
      %33 = vector.shape_cast %32 : vector<8x256xf32> to vector<1x8x256xf32>
      %c0_17 = arith.constant 0 : index
      %c0_18 = arith.constant 0 : index
      %c0_19 = arith.constant 0 : index
      %34 = vector.load %arg7[%c0_17, %c0_18, %c0_19] : memref<1x8x256xf32, #tpu.memory_space<vmem>>, vector<1x8x256xf32>
      tpu.vector_store %arg7[%c0_17, %c0_18, %c0_19], %33 {strides = array<i32>} : memref<1x8x256xf32, #tpu.memory_space<vmem>>, vector<1x8x256xf32>,
      %c0_20 = arith.constant 0 : index
      %c0_21 = arith.constant 0 : index
      %35 = vector.load %arg6[%c0_20, %c0_21] : memref<32x256xf32, #tpu.memory_space<vmem>>, vector<32x256xf32>
      tpu.vector_store %arg6[%c0_20, %c0_21], %15 {strides = array<i32>} : memref<32x256xf32, #tpu.memory_space<vmem>>, vector<32x256xf32>,
    } else {
    }
    return
  }
  func.func @transform_0(%arg0: i32, %arg1: i32, %arg2: i32) -> (i32, i32) {
    %c0_i32 = arith.constant 0 : i32
    return %arg0, %arg2 : i32, i32
  }
  func.func @transform_1(%arg0: i32, %arg1: i32, %arg2: i32) -> (i32, i32) {
    %c0_i32 = arith.constant 0 : i32
    return %arg2, %arg1 : i32, i32
  }
  func.func @transform_2(%arg0: i32, %arg1: i32, %arg2: i32) -> (i32, i32) {
    %c0_i32 = arith.constant 0 : i32
    %c0_i32_0 = arith.constant 0 : i32
    return %c0_i32, %arg1 : i32, i32
  }
  func.func @transform_3(%arg0: i32, %arg1: i32, %arg2: i32) -> (i32, i32) {
    %c0_i32 = arith.constant 0 : i32
    return %arg0, %arg1 : i32, i32
  }
  func.func @transform_4(%arg0: i32, %arg1: i32, %arg2: i32) -> (i32, i32, i32) {
    %c0_i32 = arith.constant 0 : i32
    %c0_i32_0 = arith.constant 0 : i32
    return %arg0, %c0_i32, %arg1 : i32, i32, i32
  }
}

module attributes {stable_mosaic.version = 11 : i64} {
  func.func @_affine_lrelu_kernel(%arg0: i32, %arg1: i32, %arg2: memref<32x256xf32, #tpu.memory_space<vmem>>, %arg3: memref<1x256xf32, #tpu.memory_space<vmem>>, %arg4: memref<1x256xf32, #tpu.memory_space<vmem>>, %arg5: memref<32x256xbf16, #tpu.memory_space<vmem>>) attributes {dimension_semantics = [#tpu.dimension_semantics<parallel>, #tpu.dimension_semantics<parallel>], iteration_bounds = array<i64: 1, 1>, scalar_prefetch = 0 : i64, scratch_operands = 0 : i64, tpu.core_type = #tpu.core_type<tc>, window_params = [{transform_indices = @transform_0, window_bounds = array<i64: 32, 256>}, {transform_indices = @transform_1, window_bounds = array<i64: 1, 256>}, {transform_indices = @transform_2, window_bounds = array<i64: 1, 256>}, {transform_indices = @transform_3, window_bounds = array<i64: 32, 256>}]} {
    %c0 = arith.constant 0 : index
    %c0_0 = arith.constant 0 : index
    %0 = vector.load %arg2[%c0, %c0_0] : memref<32x256xf32, #tpu.memory_space<vmem>>, vector<32x256xf32>
    %c0_1 = arith.constant 0 : index
    %c0_2 = arith.constant 0 : index
    %1 = vector.load %arg3[%c0_1, %c0_2] : memref<1x256xf32, #tpu.memory_space<vmem>>, vector<1x256xf32>
    %2 = vector.broadcast %1 : vector<1x256xf32> to vector<32x256xf32>
    %3 = arith.mulf %0, %2 : vector<32x256xf32>
    %c0_3 = arith.constant 0 : index
    %c0_4 = arith.constant 0 : index
    %4 = vector.load %arg4[%c0_3, %c0_4] : memref<1x256xf32, #tpu.memory_space<vmem>>, vector<1x256xf32>
    %5 = vector.broadcast %4 : vector<1x256xf32> to vector<32x256xf32>
    %6 = arith.addf %3, %5 : vector<32x256xf32>
    %cst = arith.constant 0.000000e+00 : f32
    %7 = vector.broadcast %cst : f32 to vector<32x256xf32>
    %8 = arith.cmpf ogt, %6, %7 : vector<32x256xf32>
    %cst_5 = arith.constant 2.000000e-01 : f32
    %9 = vector.broadcast %cst_5 : f32 to vector<32x256xf32>
    %10 = arith.mulf %9, %6 : vector<32x256xf32>
    %11 = arith.select %8, %6, %10 : vector<32x256xi1>, vector<32x256xf32>
    %12 = arith.truncf %11 : vector<32x256xf32> to vector<32x256xbf16>
    %c0_6 = arith.constant 0 : index
    %c0_7 = arith.constant 0 : index
    %13 = vector.load %arg5[%c0_6, %c0_7] : memref<32x256xbf16, #tpu.memory_space<vmem>>, vector<32x256xbf16>
    tpu.vector_store %arg5[%c0_6, %c0_7], %12 {strides = array<i32>} : memref<32x256xbf16, #tpu.memory_space<vmem>>, vector<32x256xbf16>,
    return
  }
  func.func @transform_0(%arg0: i32, %arg1: i32) -> (i32, i32) {
    %c0_i32 = arith.constant 0 : i32
    return %arg0, %arg1 : i32, i32
  }
  func.func @transform_1(%arg0: i32, %arg1: i32) -> (i32, i32) {
    %c0_i32 = arith.constant 0 : i32
    %c0_i32_0 = arith.constant 0 : i32
    return %c0_i32, %arg1 : i32, i32
  }
  func.func @transform_2(%arg0: i32, %arg1: i32) -> (i32, i32) {
    %c0_i32 = arith.constant 0 : i32
    %c0_i32_0 = arith.constant 0 : i32
    return %c0_i32, %arg1 : i32, i32
  }
  func.func @transform_3(%arg0: i32, %arg1: i32) -> (i32, i32) {
    %c0_i32 = arith.constant 0 : i32
    return %arg0, %arg1 : i32, i32
  }
}

module attributes {stable_mosaic.version = 11 : i64} {
  func.func @_conv_gemm_kernel(%arg0: i32, %arg1: i32, %arg2: i32, %arg3: memref<32x512xbf16, #tpu.memory_space<vmem>>, %arg4: memref<512x256xbf16, #tpu.memory_space<vmem>>, %arg5: memref<1x256xf32, #tpu.memory_space<vmem>>, %arg6: memref<32x256xf32, #tpu.memory_space<vmem>>, %arg7: memref<1x8x256xf32, #tpu.memory_space<vmem>>, %arg8: memref<32x256xf32, #tpu.memory_space<vmem>>) attributes {dimension_semantics = [#tpu.dimension_semantics<parallel>, #tpu.dimension_semantics<parallel>, #tpu.dimension_semantics<arbitrary>], iteration_bounds = array<i64: 1, 2, 8>, scalar_prefetch = 0 : i64, scratch_operands = 1 : i64, tpu.core_type = #tpu.core_type<tc>, window_params = [{transform_indices = @transform_0, window_bounds = array<i64: 32, 512>}, {transform_indices = @transform_1, window_bounds = array<i64: 512, 256>}, {transform_indices = @transform_2, window_bounds = array<i64: 1, 256>}, {transform_indices = @transform_3, window_bounds = array<i64: 32, 256>}, {transform_indices = @transform_4, window_bounds = array<i64: 1, 8, 256>}]} {
    %c0_i32 = arith.constant 0 : i32
    %0 = arith.cmpi eq, %arg2, %c0_i32 : i32
    %1 = arith.extui %0 : i1 to i32
    %c0_i32_0 = arith.constant 0 : i32
    %2 = arith.cmpi ne, %1, %c0_i32_0 : i32
    scf.if %2 {
      %cst_9 = arith.constant 0.000000e+00 : f32
      %12 = vector.broadcast %cst_9 : f32 to vector<32x256xf32>
      %c0_10 = arith.constant 0 : index
      %c0_11 = arith.constant 0 : index
      %13 = vector.load %arg8[%c0_10, %c0_11] : memref<32x256xf32, #tpu.memory_space<vmem>>, vector<32x256xf32>
      tpu.vector_store %arg8[%c0_10, %c0_11], %12 {strides = array<i32>} : memref<32x256xf32, #tpu.memory_space<vmem>>, vector<32x256xf32>,
    } else {
    }
    %c0 = arith.constant 0 : index
    %c0_1 = arith.constant 0 : index
    %3 = vector.load %arg8[%c0, %c0_1] : memref<32x256xf32, #tpu.memory_space<vmem>>, vector<32x256xf32>
    %c0_2 = arith.constant 0 : index
    %c0_3 = arith.constant 0 : index
    %4 = vector.load %arg3[%c0_2, %c0_3] : memref<32x512xbf16, #tpu.memory_space<vmem>>, vector<32x512xbf16>
    %c0_4 = arith.constant 0 : index
    %c0_5 = arith.constant 0 : index
    %5 = vector.load %arg4[%c0_4, %c0_5] : memref<512x256xbf16, #tpu.memory_space<vmem>>, vector<512x256xbf16>
    %cst = arith.constant dense<0.000000e+00> : vector<32x256xf32>
    %6 = tpu.matmul %4, %5, %cst {dimension_numbers = #tpu.dot_dimension_numbers<[1], [0], [0], [1], [0, 0, 1, 1], [], []>} : vector<32x512xbf16>, vector<512x256xbf16>, vector<32x256xf32> -> vector<32x256xf32>
    %7 = arith.addf %3, %6 : vector<32x256xf32>
    %c0_6 = arith.constant 0 : index
    %c0_7 = arith.constant 0 : index
    %8 = vector.load %arg8[%c0_6, %c0_7] : memref<32x256xf32, #tpu.memory_space<vmem>>, vector<32x256xf32>
    tpu.vector_store %arg8[%c0_6, %c0_7], %7 {strides = array<i32>} : memref<32x256xf32, #tpu.memory_space<vmem>>, vector<32x256xf32>,
    %c7_i32 = arith.constant 7 : i32
    %9 = arith.cmpi eq, %arg2, %c7_i32 : i32
    %10 = arith.extui %9 : i1 to i32
    %c0_i32_8 = arith.constant 0 : i32
    %11 = arith.cmpi ne, %10, %c0_i32_8 : i32
    scf.if %11 {
      %c0_9 = arith.constant 0 : index
      %c0_10 = arith.constant 0 : index
      %12 = vector.load %arg8[%c0_9, %c0_10] : memref<32x256xf32, #tpu.memory_space<vmem>>, vector<32x256xf32>
      %c0_11 = arith.constant 0 : index
      %c0_12 = arith.constant 0 : index
      %13 = vector.load %arg5[%c0_11, %c0_12] : memref<1x256xf32, #tpu.memory_space<vmem>>, vector<1x256xf32>
      %14 = vector.broadcast %13 : vector<1x256xf32> to vector<32x256xf32>
      %15 = arith.addf %12, %14 : vector<32x256xf32>
      %cst_13 = arith.constant dense<0.000000e+00> : vector<256xf32>
      %16 = vector.multi_reduction <add>, %15, %cst_13 [0] : vector<32x256xf32> to vector<256xf32>
      %17 = vector.shape_cast %16 : vector<256xf32> to vector<1x256xf32>
      %18 = arith.mulf %15, %15 : vector<32x256xf32>
      %cst_14 = arith.constant dense<0.000000e+00> : vector<256xf32>
      %19 = vector.multi_reduction <add>, %18, %cst_14 [0] : vector<32x256xf32> to vector<256xf32>
      %20 = vector.shape_cast %19 : vector<256xf32> to vector<1x256xf32>
      %21 = tpu.iota {dimensions = array<i32: 0>} : vector<8x256xi32>
      %c0_i32_15 = arith.constant 0 : i32
      %22 = vector.broadcast %c0_i32_15 : i32 to vector<8x256xi32>
      %23 = arith.cmpi eq, %21, %22 : vector<8x256xi32>
      %24 = vector.shape_cast %17 : vector<1x256xf32> to vector<1x256xf32>
      %25 = vector.broadcast %24 : vector<1x256xf32> to vector<8x256xf32>
      %c1_i32 = arith.constant 1 : i32
      %26 = vector.broadcast %c1_i32 : i32 to vector<8x256xi32>
      %27 = arith.cmpi eq, %21, %26 : vector<8x256xi32>
      %28 = vector.shape_cast %20 : vector<1x256xf32> to vector<1x256xf32>
      %29 = vector.broadcast %28 : vector<1x256xf32> to vector<8x256xf32>
      %cst_16 = arith.constant 0.000000e+00 : f32
      %30 = vector.broadcast %cst_16 : f32 to vector<8x256xf32>
      %31 = arith.select %27, %29, %30 : vector<8x256xi1>, vector<8x256xf32>
      %32 = arith.select %23, %25, %31 : vector<8x256xi1>, vector<8x256xf32>
      %33 = vector.shape_cast %32 : vector<8x256xf32> to vector<1x8x256xf32>
      %c0_17 = arith.constant 0 : index
      %c0_18 = arith.constant 0 : index
      %c0_19 = arith.constant 0 : index
      %34 = vector.load %arg7[%c0_17, %c0_18, %c0_19] : memref<1x8x256xf32, #tpu.memory_space<vmem>>, vector<1x8x256xf32>
      tpu.vector_store %arg7[%c0_17, %c0_18, %c0_19], %33 {strides = array<i32>} : memref<1x8x256xf32, #tpu.memory_space<vmem>>, vector<1x8x256xf32>,
      %c0_20 = arith.constant 0 : index
      %c0_21 = arith.constant 0 : index
      %35 = vector.load %arg6[%c0_20, %c0_21] : memref<32x256xf32, #tpu.memory_space<vmem>>, vector<32x256xf32>
      tpu.vector_store %arg6[%c0_20, %c0_21], %15 {strides = array<i32>} : memref<32x256xf32, #tpu.memory_space<vmem>>, vector<32x256xf32>,
    } else {
    }
    return
  }
  func.func @transform_0(%arg0: i32, %arg1: i32, %arg2: i32) -> (i32, i32) {
    %c0_i32 = arith.constant 0 : i32
    return %arg0, %arg2 : i32, i32
  }
  func.func @transform_1(%arg0: i32, %arg1: i32, %arg2: i32) -> (i32, i32) {
    %c0_i32 = arith.constant 0 : i32
    return %arg2, %arg1 : i32, i32
  }
  func.func @transform_2(%arg0: i32, %arg1: i32, %arg2: i32) -> (i32, i32) {
    %c0_i32 = arith.constant 0 : i32
    %c0_i32_0 = arith.constant 0 : i32
    return %c0_i32, %arg1 : i32, i32
  }
  func.func @transform_3(%arg0: i32, %arg1: i32, %arg2: i32) -> (i32, i32) {
    %c0_i32 = arith.constant 0 : i32
    return %arg0, %arg1 : i32, i32
  }
  func.func @transform_4(%arg0: i32, %arg1: i32, %arg2: i32) -> (i32, i32, i32) {
    %c0_i32 = arith.constant 0 : i32
    %c0_i32_0 = arith.constant 0 : i32
    return %arg0, %c0_i32, %arg1 : i32, i32, i32
  }
}

module attributes {stable_mosaic.version = 11 : i64} {
  func.func @_affine_lrelu_kernel(%arg0: i32, %arg1: i32, %arg2: memref<32x256xf32, #tpu.memory_space<vmem>>, %arg3: memref<1x256xf32, #tpu.memory_space<vmem>>, %arg4: memref<1x256xf32, #tpu.memory_space<vmem>>, %arg5: memref<32x256xbf16, #tpu.memory_space<vmem>>) attributes {dimension_semantics = [#tpu.dimension_semantics<parallel>, #tpu.dimension_semantics<parallel>], iteration_bounds = array<i64: 1, 2>, scalar_prefetch = 0 : i64, scratch_operands = 0 : i64, tpu.core_type = #tpu.core_type<tc>, window_params = [{transform_indices = @transform_0, window_bounds = array<i64: 32, 256>}, {transform_indices = @transform_1, window_bounds = array<i64: 1, 256>}, {transform_indices = @transform_2, window_bounds = array<i64: 1, 256>}, {transform_indices = @transform_3, window_bounds = array<i64: 32, 256>}]} {
    %c0 = arith.constant 0 : index
    %c0_0 = arith.constant 0 : index
    %0 = vector.load %arg2[%c0, %c0_0] : memref<32x256xf32, #tpu.memory_space<vmem>>, vector<32x256xf32>
    %c0_1 = arith.constant 0 : index
    %c0_2 = arith.constant 0 : index
    %1 = vector.load %arg3[%c0_1, %c0_2] : memref<1x256xf32, #tpu.memory_space<vmem>>, vector<1x256xf32>
    %2 = vector.broadcast %1 : vector<1x256xf32> to vector<32x256xf32>
    %3 = arith.mulf %0, %2 : vector<32x256xf32>
    %c0_3 = arith.constant 0 : index
    %c0_4 = arith.constant 0 : index
    %4 = vector.load %arg4[%c0_3, %c0_4] : memref<1x256xf32, #tpu.memory_space<vmem>>, vector<1x256xf32>
    %5 = vector.broadcast %4 : vector<1x256xf32> to vector<32x256xf32>
    %6 = arith.addf %3, %5 : vector<32x256xf32>
    %cst = arith.constant 0.000000e+00 : f32
    %7 = vector.broadcast %cst : f32 to vector<32x256xf32>
    %8 = arith.cmpf ogt, %6, %7 : vector<32x256xf32>
    %cst_5 = arith.constant 2.000000e-01 : f32
    %9 = vector.broadcast %cst_5 : f32 to vector<32x256xf32>
    %10 = arith.mulf %9, %6 : vector<32x256xf32>
    %11 = arith.select %8, %6, %10 : vector<32x256xi1>, vector<32x256xf32>
    %12 = arith.truncf %11 : vector<32x256xf32> to vector<32x256xbf16>
    %c0_6 = arith.constant 0 : index
    %c0_7 = arith.constant 0 : index
    %13 = vector.load %arg5[%c0_6, %c0_7] : memref<32x256xbf16, #tpu.memory_space<vmem>>, vector<32x256xbf16>
    tpu.vector_store %arg5[%c0_6, %c0_7], %12 {strides = array<i32>} : memref<32x256xbf16, #tpu.memory_space<vmem>>, vector<32x256xbf16>,
    return
  }
  func.func @transform_0(%arg0: i32, %arg1: i32) -> (i32, i32) {
    %c0_i32 = arith.constant 0 : i32
    return %arg0, %arg1 : i32, i32
  }
  func.func @transform_1(%arg0: i32, %arg1: i32) -> (i32, i32) {
    %c0_i32 = arith.constant 0 : i32
    %c0_i32_0 = arith.constant 0 : i32
    return %c0_i32, %arg1 : i32, i32
  }
  func.func @transform_2(%arg0: i32, %arg1: i32) -> (i32, i32) {
    %c0_i32 = arith.constant 0 : i32
    %c0_i32_0 = arith.constant 0 : i32
    return %c0_i32, %arg1 : i32, i32
  }
  func.func @transform_3(%arg0: i32, %arg1: i32) -> (i32, i32) {
    %c0_i32 = arith.constant 0 : i32
    return %arg0, %arg1 : i32, i32
  }
}

module attributes {stable_mosaic.version = 11 : i64} {
  func.func @_final_conv_kernel(%arg0: i32, %arg1: i32, %arg2: memref<16x2048xbf16, #tpu.memory_space<vmem>>, %arg3: memref<1x2048xf32, #tpu.memory_space<vmem>>, %arg4: memref<1x1xf32, #tpu.memory_space<vmem>>, %arg5: memref<16x1xf32, #tpu.memory_space<vmem>>, %arg6: memref<16x1xf32, #tpu.memory_space<vmem>>) attributes {dimension_semantics = [#tpu.dimension_semantics<parallel>, #tpu.dimension_semantics<arbitrary>], iteration_bounds = array<i64: 1, 4>, scalar_prefetch = 0 : i64, scratch_operands = 1 : i64, tpu.core_type = #tpu.core_type<tc>, window_params = [{transform_indices = @transform_0, window_bounds = array<i64: 16, 2048>}, {transform_indices = @transform_1, window_bounds = array<i64: 1, 2048>}, {pipeline_mode = #tpu.pipeline_mode<synchronous>, transform_indices = @transform_2, window_bounds = array<i64: 1, 1>}, {transform_indices = @transform_3, window_bounds = array<i64: 16, 1>}]} {
    %c0_i32 = arith.constant 0 : i32
    %0 = arith.cmpi eq, %arg1, %c0_i32 : i32
    %1 = arith.extui %0 : i1 to i32
    %c0_i32_0 = arith.constant 0 : i32
    %2 = arith.cmpi ne, %1, %c0_i32_0 : i32
    scf.if %2 {
      %cst_9 = arith.constant 0.000000e+00 : f32
      %16 = vector.broadcast %cst_9 : f32 to vector<16x1xf32>
      %c0_10 = arith.constant 0 : index
      %c0_11 = arith.constant 0 : index
      %17 = vector.load %arg6[%c0_10, %c0_11] : memref<16x1xf32, #tpu.memory_space<vmem>>, vector<16x1xf32>
      tpu.vector_store %arg6[%c0_10, %c0_11], %16 {strides = array<i32>} : memref<16x1xf32, #tpu.memory_space<vmem>>, vector<16x1xf32>,
    } else {
    }
    %c0 = arith.constant 0 : index
    %c0_1 = arith.constant 0 : index
    %3 = vector.load %arg2[%c0, %c0_1] : memref<16x2048xbf16, #tpu.memory_space<vmem>>, vector<16x2048xbf16>
    %4 = arith.extf %3 : vector<16x2048xbf16> to vector<16x2048xf32>
    %c0_2 = arith.constant 0 : index
    %c0_3 = arith.constant 0 : index
    %5 = vector.load %arg3[%c0_2, %c0_3] : memref<1x2048xf32, #tpu.memory_space<vmem>>, vector<1x2048xf32>
    %6 = vector.broadcast %5 : vector<1x2048xf32> to vector<16x2048xf32>
    %7 = arith.mulf %4, %6 : vector<16x2048xf32>
    %c0_4 = arith.constant 0 : index
    %c0_5 = arith.constant 0 : index
    %8 = vector.load %arg6[%c0_4, %c0_5] : memref<16x1xf32, #tpu.memory_space<vmem>>, vector<16x1xf32>
    %cst = arith.constant dense<0.000000e+00> : vector<16xf32>
    %9 = vector.multi_reduction <add>, %7, %cst [1] : vector<16x2048xf32> to vector<16xf32>
    %10 = vector.shape_cast %9 : vector<16xf32> to vector<16x1xf32>
    %11 = arith.addf %8, %10 : vector<16x1xf32>
    %c0_6 = arith.constant 0 : index
    %c0_7 = arith.constant 0 : index
    %12 = vector.load %arg6[%c0_6, %c0_7] : memref<16x1xf32, #tpu.memory_space<vmem>>, vector<16x1xf32>
    tpu.vector_store %arg6[%c0_6, %c0_7], %11 {strides = array<i32>} : memref<16x1xf32, #tpu.memory_space<vmem>>, vector<16x1xf32>,
    %c3_i32 = arith.constant 3 : i32
    %13 = arith.cmpi eq, %arg1, %c3_i32 : i32
    %14 = arith.extui %13 : i1 to i32
    %c0_i32_8 = arith.constant 0 : i32
    %15 = arith.cmpi ne, %14, %c0_i32_8 : i32
    scf.if %15 {
      %c0_9 = arith.constant 0 : index
      %c0_10 = arith.constant 0 : index
      %16 = vector.load %arg6[%c0_9, %c0_10] : memref<16x1xf32, #tpu.memory_space<vmem>>, vector<16x1xf32>
      %c0_11 = arith.constant 0 : index
      %c0_12 = arith.constant 0 : index
      %17 = vector.load %arg4[%c0_11, %c0_12] : memref<1x1xf32, #tpu.memory_space<vmem>>, vector<1x1xf32>
      %18 = vector.broadcast %17 : vector<1x1xf32> to vector<16x1xf32>
      %19 = arith.addf %16, %18 : vector<16x1xf32>
      %c0_13 = arith.constant 0 : index
      %c0_14 = arith.constant 0 : index
      %20 = vector.load %arg5[%c0_13, %c0_14] : memref<16x1xf32, #tpu.memory_space<vmem>>, vector<16x1xf32>
      tpu.vector_store %arg5[%c0_13, %c0_14], %19 {strides = array<i32>} : memref<16x1xf32, #tpu.memory_space<vmem>>, vector<16x1xf32>,
    } else {
    }
    return
  }
  func.func @transform_0(%arg0: i32, %arg1: i32) -> (i32, i32) {
    %c0_i32 = arith.constant 0 : i32
    return %arg0, %arg1 : i32, i32
  }
  func.func @transform_1(%arg0: i32, %arg1: i32) -> (i32, i32) {
    %c0_i32 = arith.constant 0 : i32
    %c0_i32_0 = arith.constant 0 : i32
    return %c0_i32, %arg1 : i32, i32
  }
  func.func @transform_2(%arg0: i32, %arg1: i32) -> (i32, i32) {
    %c0_i32 = arith.constant 0 : i32
    %c0_i32_0 = arith.constant 0 : i32
    %c0_i32_1 = arith.constant 0 : i32
    return %c0_i32, %c0_i32_0 : i32, i32
  }
  func.func @transform_3(%arg0: i32, %arg1: i32) -> (i32, i32) {
    %c0_i32 = arith.constant 0 : i32
    %c0_i32_0 = arith.constant 0 : i32
    return %arg0, %c0_i32 : i32, i32
  }
}

</mosaic_0001>

<bundles_post_ra>
// kernel: _lambda_.8
= control target key start
LH: loop header
LB: loop body
LE: loop exit
PB: predicated region body
PF: predicated region fallthrough
CT: control target
= control target key end

     0   :  { %10 = vsyncpa [#allocation4], 0  ;;  %s2064_s0 = inlined_call_operand.vmem [shape: bf16[512,48], index: 0, kind: input, shape index: {}]   ;;  %s2065_s1 = inlined_call_operand.hbm [shape: bf16[48,128], index: 1, kind: input, shape index: {}]   ;;  %s2066_s2 = inlined_call_operand.vmem [shape: f32[1,128], index: 2, kind: input, shape index: {}]   ;;  %s2067_s3 = inlined_call_operand.vmem [shape: bf16[512,128], index: 3, kind: output, shape index: {0}]   ;;  %s2068_s4 = inlined_call_operand.hbm [shape: f32[2,8,128], index: 4, kind: output, shape index: {1}]  }
   0x1   :  { %11 = vsyncpa [#allocation5], 0 }
   0x2   :  { %13 = vsyncpa [#allocation5 + $0x1], 0  ;;  %s1652_s15 = smov 0   ;;  %s1654_s16 = smov 0  }
   0x3   :  { %s1656_s17 = smov 0   ;;  %s1658_s18 = smov 0  }
   0x4   :  { %s1660_s19 = smov 0   ;;  %s1662_s20 = smov 0  }
   0x5 LB: > { %s1209_s21 = sadd.s32 4294967295, %s1622_s20   ;;  %s1210_s22 = sadd.s32 4294967294, %s1622_s20   ;;  %s1622_s20 = sphi %s1662_s20, %s19_s20   ;;  %s1618_s19 = sphi %s1660_s19, %s2075_s19   ;;  %s1614_s18 = sphi %s1658_s18, %s2074_s18   ;;  %s1610_s17 = sphi %s1656_s17, %s2073_s17   ;;  %s1606_s16 = sphi %s1654_s16, %s2072_s16   ;;  %s1602_s15 = sphi %s1652_s15, %s2071_s15  }
   0x6   : > { %s38_s23 = sadd.s32 1, %s1618_s19  ;;  %s157_s24 = sadd.s32 1, %s1610_s17 }
   0x7   : > { %p40_p0 = scmp.ge.s32.totalorder %s38_s23, 2  ;;  %p167_p1 = scmp.ne.s32.totalorder %s1610_s17, %s1606_s16 }
   0x8   : > { %p168_p2 = scmp.eq.s32.totalorder %s1209_s21, 1  ;;  %p173_p3 = scmp.ne.s32.totalorder %s1606_s16, %s1602_s15 }
   0x9   : > { %s2077_s23 = smov (%p40_p0, %s38_s23), 0  ;;  %p174_p5 = scmp.eq.s32.totalorder %s1210_s22, 1 }
   0xa   : > { %p1692_p4 = por %p168_p2, %p167_p1  ;;  %s152_s26 = ssub.s32 %s1618_s19, %s2077_s23 }
   0xb   : > { %p1211_p6 = scmp.ge.s32.totalorder %s1622_s20, 1  ;;  %p155_p7 = scmp.eq.s32.totalorder %s152_s26, 0 }
   0xc   : > { %p1699_p8 = por %p174_p5, %p173_p3  ;;  %p181_p9 = scmp.lt.s32.totalorder %s1622_s20, 3 }
   0xd   : > { %s1705_s28 = scalar_select %p155_p7, %s1610_s17, %s157_s24  }
   0xe   : > { %p182_p10 = pnand %p1211_p6, %p181_p9  ;;  %p1455_p11 = scmp.eq.s32.totalorder %s1209_s21, 0 }
   0xf   : > { %s196_s5 = sshll.u32 %s2065_s1, 4  ;;  %s1624_s6 = smov [#allocation3]   ;;  %s197_s5 = int_to_ptr.hbm [resolvable:$true] %s196_s5 }
  0x10   : > { %p1447_p12 = pneg %p182_p10  ;;  %s198_s7 = sshll.u32 %s1624_s6, 4  ;;  %s199_s7 = int_to_ptr.vmem [resolvable:$true] %s198_s7 }
  0x11   : > { %s1625_s8 = smov 64   ;;  %s1626_s9 = smov 4  }
  0x12   : > { %p1448_p13 = pnand %p1455_p11, %p1447_p12  ;;  %232 = sbr.rel (%p182_p10) target bundleno = 289 (0x121), region = 32 }
  0x14   : > { %1450 = dma.hbm_to_vmem [thread:$0]  (!%p1448_p13), %s197_s5, 384, %s199_s7, [#allocation4], %s1625_s8, %s1625_s8, %s1626_s9  }
  0x17   : > { %1593 = dma.done.wait (%p1455_p11), [#allocation4], 384  }
  0x18   : > { %1595 = vsyncadd (%p1455_p11), [#allocation4], 4294966912  ;;  %s1218_s10 = sshll.u32 %s1614_s18, 5  ;;  %v1336_v0 = vld [vmem:[#allocation3 + $0x10] sm:$0xff]  ;;  %v1335_v1 = vld [vmem:[#allocation3 + $0x8] sm:$0xff]  ;;  %vm500_vm0 = vcmask 392192  }
  0x19   : > { %p274_p0 = scmp.lt.s32.totalorder %s1218_s10, 63  ;;  %554 = vmatpush.bf16.msra.mxu0 %v1336_v0  ;;  %1432 = vmatpush.bf16.msra.mxu1 %v1336_v0  ;;  %v1334_v2 = vld [vmem:[#allocation3] sm:$0xff]  ;;  %s270_s30 = sand.u32 1, %s1606_s16  }
  0x1a   : > { %1433 = vmatpush.bf16.msra.mxu2 %v1336_v0  ;;  %1434 = vmatpush.bf16.msra.mxu3 %v1336_v0  ;;  %v1756_v21 = vld [vmem:[%s2066_s2] ss:$0 sm:$0xff]  ;;  %s1217_s5 = sshll.u32 %s270_s30, 3  ;;  %s1315_s6 = sshll.u32 %s1614_s18, 3 }
  0x1b   : > { %s2079_s10 = smov (!%p274_p0, %s1218_s10), 63  ;;  %s1070_s9 = scalar_lea.hbm %s2068_s4, %s1315_s6 }
  0x1c   : > { %s1219_s11 = sshll.u32 %s2079_s10, 2  ;;  %s272_s10 = scalar_lea.vmem [#allocation6], %s1217_s5 }
  0x1d   : > { %555 = vmatpush.bf16.msra.mxu0 %v1335_v1  ;;  %1435 = vmatpush.bf16.msra.mxu1 %v1335_v1  ;;  %s1719_s14 = scalar_lea.vmem %s2064_s0, %s1219_s11  ;;  %s1788_s29 = scalar_lea.vmem %s2067_s3, %s1219_s11 }
  0x1e   : > { %1436 = vmatpush.bf16.msra.mxu2 %v1335_v1  ;;  %1437 = vmatpush.bf16.msra.mxu3 %v1335_v1  ;;  %v1318_v3 = vld [vmem:[%s1719_s14] sm:$0xff]  ;;  %v1319_v7 = vld [vmem:[%s1719_s14 + $0x8] sm:$0xff]  ;;  %v1320_v11 = vld [vmem:[%s1719_s14 + $0x10] sm:$0xff]  ;;  %s1072_s11 = sshll.u32 %s272_s10, 4  ;;  %s1074_s12 = sshll.u32 %s1070_s9, 4  ;;  %s1073_s11 = int_to_ptr.vmem [resolvable:$true] %s1072_s11  ;;  %s1075_s12 = int_to_ptr.hbm [resolvable:$true] %s1074_s12 }
  0x1f   : > { %v1322_v4 = vld [vmem:[%s1719_s14 + $0x20] sm:$0xff]  ;;  %v1323_v8 = vld [vmem:[%s1719_s14 + $0x28] sm:$0xff]  ;;  %v1324_v12 = vld [vmem:[%s1719_s14 + $0x30] sm:$0xff]  ;;  %s1055_s18 = scalar_lea.sflag [#allocation5], %s270_s30  ;;  %s1554_s13 = sshra.s32 %s1075_s12, 4  ;;  %s1555_s13 = int_to_ptr.hbm [resolvable:$true] %s1554_s13 }
  0x20   : > { %v1326_v5 = vld [vmem:[%s1719_s14 + $0x40] sm:$0xff]  ;;  %v1327_v9 = vld [vmem:[%s1719_s14 + $0x48] sm:$0xff]  ;;  %v1328_v13 = vld [vmem:[%s1719_s14 + $0x50] sm:$0xff]  ;;  %s1560_s24 = scalar_lea.hbm %s2068_s4, 16  ;;  %p1561_p5 = scmp.lt.s32.totalorder %s1555_s13, %s2068_s4 }
  0x21   : > { %556 = vmatpush.bf16.msra.mxu0 %v1334_v2  ;;  %1438 = vmatpush.bf16.msra.mxu1 %v1334_v2  ;;  %v1330_v6 = vld [vmem:[%s1719_s14 + $0x60] sm:$0xff]  ;;  %v1331_v10 = vld [vmem:[%s1719_s14 + $0x68] sm:$0xff]  ;;  %v1332_v14 = vld [vmem:[%s1719_s14 + $0x70] sm:$0xff] }
  0x22   : > { %1439 = vmatpush.bf16.msra.mxu2 %v1334_v2  ;;  %1440 = vmatpush.bf16.msra.mxu3 %v1334_v2  ;;  %v1321_v15 = vld [vmem:[%s1719_s14 + $0x18] sm:$0xff] }
  0x23   : > { %v1325_v16 = vld [vmem:[%s1719_s14 + $0x38] sm:$0xff] }
  0x24   : > { %1298 = vmatmul.msk.bf16.vlgmr.msra.gmra.mxu0 %vm500_vm0, %v1318_v3  ;;  %1302 = vmatmul.msk.bf16.vlgmr.msra.gmra.mxu1 %vm500_vm0, %v1322_v4  ;;  %v1329_v17 = vld [vmem:[%s1719_s14 + $0x58] sm:$0xff] }
  0x25   : > { %1306 = vmatmul.msk.bf16.vlgmr.msra.gmra.mxu2 %vm500_vm0, %v1326_v5  ;;  %1310 = vmatmul.msk.bf16.vlgmr.msra.gmra.mxu3 %vm500_vm0, %v1330_v6  ;;  %v1333_v18 = vld [vmem:[%s1719_s14 + $0x78] sm:$0xff]  ;;  %s1556_s14 = scalar_lea.hbm %s1555_s13, 8 }
  0x26   : > { %p1557_p1 = scmp.ne.s32.totalorder %s1555_s13, %s1556_s14  ;;  %p1562_p6 = scmp.lt.s32.totalorder %s1560_s24, %s1556_s14 }
  0x28   : > { %p1558_p2 = pnand %p1557_p1, %p1692_p4  ;;  %p1563_p7 = por %p1562_p6, %p1561_p5 }
  0x2a   : > { %p1559_p3 = pneg %p1558_p2 }
  0x2c   : > { %p1564_p9 = pnand %p1563_p7, %p1559_p3 }
  0x34   : > { %1299 = vmatmul.msk.bf16.gmra.mxu0 %vm500_vm0, %v1319_v7  ;;  %1303 = vmatmul.msk.bf16.gmra.mxu1 %vm500_vm0, %v1323_v8 }
  0x35   : > { %1307 = vmatmul.msk.bf16.gmra.mxu2 %vm500_vm0, %v1327_v9  ;;  %1311 = vmatmul.msk.bf16.gmra.mxu3 %vm500_vm0, %v1331_v10 }
  0x44   : > { %1300 = vmatmul.msk.bf16.gmra.mxu0 %vm500_vm0, %v1320_v11  ;;  %1304 = vmatmul.msk.bf16.gmra.mxu1 %vm500_vm0, %v1324_v12 }
  0x45   : > { %1308 = vmatmul.msk.bf16.gmra.mxu2 %vm500_vm0, %v1328_v13  ;;  %1312 = vmatmul.msk.bf16.gmra.mxu3 %vm500_vm0, %v1332_v14 }
  0x54   : > { %1301 = vmatmul.msk.bf16.gmra.mxu0 %vm500_vm0, %v1321_v15  ;;  %1305 = vmatmul.msk.bf16.gmra.mxu1 %vm500_vm0, %v1325_v16 }
  0x55   : > { %1309 = vmatmul.msk.bf16.gmra.mxu2 %vm500_vm0, %v1329_v17  ;;  %1313 = vmatmul.msk.bf16.gmra.mxu3 %vm500_vm0, %v1333_v18 }
  0xa1   : > { %v558_v19 = vpop.f32.mrf.mxu0  ;;  %v578_v20 = vpop.f32.mrf.mxu1 }
  0xa2   : > { %v1759_v22 = vadd.f32 %v1756_v21, %v578_v20  ;;  %v1762_v23 = vadd.f32 %v1756_v21, %v558_v19 }
  0xa4   : > { %v926_v26 = vmul.f32 0.2, %v1759_v22  ;;  %v918_v29 = vmul.f32 0.2, %v1762_v23  ;;  %vm894_vm1 = vcmp.gt.f32.partialorder %v1759_v22, 0.0  ;;  %vm886_vm2 = vcmp.gt.f32.partialorder %v1762_v23, 0.0 }
  0xa6   : > { %v958_v34 = vsel %vm894_vm1, %v1759_v22, %v926_v26  ;;  %v950_v36 = vsel %vm886_vm2, %v1762_v23, %v918_v29 }
  0xa8   : > { %v598_v24 = vpop.f32.mrf.mxu2  ;;  %v618_v25 = vpop.f32.mrf.mxu3 }
  0xa9   : > { %v560_v27 = vpop.f32.mrf.mxu0  ;;  %v580_v28 = vpop.f32.mrf.mxu1  ;;  %v1775_v32 = vadd.f32 %v1756_v21, %v598_v24  ;;  %v1794_v41 = vadd.f32 %v1756_v21, %v618_v25 }
  0xaa   : > { %v1768_v30 = vadd.f32 %v1756_v21, %v560_v27  ;;  %v1771_v31 = vadd.f32 %v1756_v21, %v580_v28 }
  0xab   : > { %v934_v40 = vmul.f32 0.2, %v1775_v32  ;;  %vm902_vm5 = vcmp.gt.f32.partialorder %v1775_v32, 0.0  ;;  %v942_v51 = vmul.f32 0.2, %v1794_v41  ;;  %vm910_vm7 = vcmp.gt.f32.partialorder %v1794_v41, 0.0 }
  0xac   : > { %vm887_vm3 = vcmp.gt.f32.partialorder %v1768_v30, 0.0  ;;  %v919_v33 = vmul.f32 0.2, %v1768_v30  ;;  %vm895_vm4 = vcmp.gt.f32.partialorder %v1771_v31, 0.0  ;;  %v927_v35 = vmul.f32 0.2, %v1771_v31 }
  0xad   : > { %v966_v49 = vsel %vm902_vm5, %v1775_v32, %v934_v40  ;;  %v974_v56 = vsel %vm910_vm7, %v1794_v41, %v942_v51  ;;  %v810_v51 = vmul.f32 %v1762_v23, %v1762_v23 }
  0xae   : > { %v951_v37 = vsel %vm887_vm3, %v1768_v30, %v919_v33  ;;  %v959_v39 = vsel %vm895_vm4, %v1771_v31, %v927_v35 }
  0xaf   : > { %v1340_v38 = vpack.c.bf16 %v951_v37, %v950_v36  ;;  %v1360_v42 = vpack.c.bf16 %v959_v39, %v958_v34 }
  0xb0   : > { %v600_v43 = vpop.f32.mrf.mxu2  ;;  %v620_v44 = vpop.f32.mrf.mxu3 }
  0xb1   : > { %1341 = vst [vmem:[%s1788_s29] sm:$0xff] %v1340_v38   ;;  %v563_v45 = vpop.f32.mrf.mxu0  ;;  %v583_v46 = vpop.f32.mrf.mxu1  ;;  %v1799_v47 = vadd.f32 %v1756_v21, %v600_v43  ;;  %v1803_v48 = vadd.f32 %v1756_v21, %v620_v44 }
  0xb2   : > { %1420 = vst [vmem:[%s1788_s29 + $0x20] sm:$0xff] %v1360_v42   ;;  %v1811_v52 = vadd.f32 %v1756_v21, %v563_v45  ;;  %v1814_v53 = vadd.f32 %v1756_v21, %v583_v46 }
  0xb3   : > { %vm903_vm6 = vcmp.gt.f32.partialorder %v1799_v47, 0.0  ;;  %v935_v50 = vmul.f32 0.2, %v1799_v47  ;;  %vm911_vm8 = vcmp.gt.f32.partialorder %v1803_v48, 0.0  ;;  %v943_v57 = vmul.f32 0.2, %v1803_v48 }
  0xb4   : > { %v920_v60 = vmul.f32 0.2, %v1811_v52  ;;  %v928_v61 = vmul.f32 0.2, %v1814_v53  ;;  %vm896_vm9 = vcmp.gt.f32.partialorder %v1814_v53, 0.0  ;;  %vm888_vm10 = vcmp.gt.f32.partialorder %v1811_v52, 0.0 }
  0xb5   : > { %v967_v54 = vsel %vm903_vm6, %v1799_v47, %v935_v50  ;;  %v975_v0 = vsel %vm911_vm8, %v1803_v48, %v943_v57  ;;  %v811_v50 = vmul.f32 %v1768_v30, %v1768_v30 }
  0xb6   : > { %v1380_v55 = vpack.c.bf16 %v967_v54, %v966_v49  ;;  %v1400_v3 = vpack.c.bf16 %v975_v0, %v974_v56  ;;  %v960_v6 = vsel %vm896_vm9, %v1814_v53, %v928_v61  ;;  %v952_v8 = vsel %vm888_vm10, %v1811_v52, %v920_v60 }
  0xb8   : > { %1424 = vst [vmem:[%s1788_s29 + $0x40] sm:$0xff] %v1380_v55   ;;  %v603_v58 = vpop.f32.mrf.mxu2  ;;  %v623_v59 = vpop.f32.mrf.mxu3  ;;  %v773_v55 = vadd.f32 %v1768_v30, %v1762_v23 }
  0xb9   : > { %v565_v62 = vpop.f32.mrf.mxu0  ;;  %v585_v63 = vpop.f32.mrf.mxu1  ;;  %v1833_v4 = vadd.f32 %v1756_v21, %v603_v58  ;;  %1428 = vst [vmem:[%s1788_s29 + $0x60] sm:$0xff] %v1400_v3   ;;  %v1846_v13 = vadd.f32 %v1756_v21, %v623_v59  ;;  %v812_v58 = vmul.f32 %v1811_v52, %v1811_v52 }
  0xba   : > { %v1826_v1 = vadd.f32 %v1756_v21, %v565_v62  ;;  %v1829_v2 = vadd.f32 %v1756_v21, %v585_v63  ;;  %v842_v62 = vadd.f32 %v811_v50, %v810_v51  ;;  %v774_v30 = vadd.f32 %v773_v55, %v1811_v52 }
  0xbb   : > { %v936_v12 = vmul.f32 0.2, %v1833_v4  ;;  %vm904_vm13 = vcmp.gt.f32.partialorder %v1833_v4, 0.0  ;;  %v944_v26 = vmul.f32 0.2, %v1846_v13  ;;  %vm912_vm15 = vcmp.gt.f32.partialorder %v1846_v13, 0.0 }
  0xbc   : > { %vm889_vm11 = vcmp.gt.f32.partialorder %v1826_v1, 0.0  ;;  %v921_v5 = vmul.f32 0.2, %v1826_v1  ;;  %vm897_vm12 = vcmp.gt.f32.partialorder %v1829_v2, 0.0  ;;  %v929_v7 = vmul.f32 0.2, %v1829_v2 }
  0xbd   : > { %v968_v24 = vsel %vm904_vm13, %v1833_v4, %v936_v12  ;;  %v976_v34 = vsel %vm912_vm15, %v1846_v13, %v944_v26  ;;  %v813_v0 = vmul.f32 %v1826_v1, %v1826_v1  ;;  %v775_v12 = vadd.f32 %v774_v30, %v1826_v1 }
  0xbe   : > { %v953_v9 = vsel %vm889_vm11, %v1826_v1, %v921_v5  ;;  %v961_v11 = vsel %vm897_vm12, %v1829_v2, %v929_v7 }
  0xbf   : > { %v1345_v10 = vpack.c.bf16 %v953_v9, %v952_v8  ;;  %v1365_v14 = vpack.c.bf16 %v961_v11, %v960_v6  ;;  %v843_v11 = vadd.f32 %v842_v62, %v812_v58 }
  0xc0   : > { %v605_v15 = vpop.f32.mrf.mxu2  ;;  %v625_v16 = vpop.f32.mrf.mxu3 }
  0xc1   : > { %1417 = vst [vmem:[%s1788_s29 + $0x8] sm:$0xff] %v1345_v10   ;;  %v568_v17 = vpop.f32.mrf.mxu0  ;;  %v588_v18 = vpop.f32.mrf.mxu1  ;;  %v1851_v19 = vadd.f32 %v1756_v21, %v605_v15  ;;  %v1855_v20 = vadd.f32 %v1756_v21, %v625_v16 }
  0xc2   : > { %1421 = vst [vmem:[%s1788_s29 + $0x28] sm:$0xff] %v1365_v14   ;;  %v745_v27 = vadd.f32 %v1756_v21, %v568_v17  ;;  %v1864_v28 = vadd.f32 %v1756_v21, %v588_v18  ;;  %v844_v18 = vadd.f32 %v843_v11, %v813_v0 }
  0xc3   : > { %vm905_vm14 = vcmp.gt.f32.partialorder %v1851_v19, 0.0  ;;  %v937_v25 = vmul.f32 0.2, %v1851_v19  ;;  %vm913_vm0 = vcmp.gt.f32.partialorder %v1855_v20, 0.0  ;;  %v945_v35 = vmul.f32 0.2, %v1855_v20 }
  0xc4   : > { %v922_v38 = vmul.f32 0.2, %v745_v27  ;;  %vm898_vm1 = vcmp.gt.f32.partialorder %v1864_v28, 0.0  ;;  %v930_v39 = vmul.f32 0.2, %v1864_v28  ;;  %vm890_vm2 = vcmp.gt.f32.partialorder %v745_v27, 0.0 }
  0xc5   : > { %v969_v29 = vsel %vm905_vm14, %v1851_v19, %v937_v25  ;;  %v977_v43 = vsel %vm913_vm0, %v1855_v20, %v945_v35  ;;  %v814_v14 = vmul.f32 %v745_v27, %v745_v27 }
  0xc6   : > { %v1385_v33 = vpack.c.bf16 %v969_v29, %v968_v24  ;;  %v1405_v49 = vpack.c.bf16 %v977_v43, %v976_v34  ;;  %v962_v56 = vsel %vm898_vm1, %v1864_v28, %v930_v39  ;;  %v954_v59 = vsel %vm890_vm2, %v745_v27, %v922_v38 }
  0xc7   : > { %v776_v24 = vadd.f32 %v775_v12, %v745_v27  ;;  %v845_v34 = vadd.f32 %v844_v18, %v814_v14 }
  0xc8   : > { %1425 = vst [vmem:[%s1788_s29 + $0x48] sm:$0xff] %v1385_v33   ;;  %v608_v36 = vpop.f32.mrf.mxu2  ;;  %v628_v37 = vpop.f32.mrf.mxu3 }
  0xc9   : > { %v570_v40 = vpop.f32.mrf.mxu0  ;;  %v590_v42 = vpop.f32.mrf.mxu1  ;;  %v1879_v46 = vadd.f32 %v1756_v21, %v608_v36  ;;  %1429 = vst [vmem:[%s1788_s29 + $0x68] sm:$0xff] %v1405_v49   ;;  %v1902_v6 = vadd.f32 %v1756_v21, %v628_v37  ;;  %v818_v37 = vmul.f32 %v1759_v22, %v1759_v22 }
  0xca   : > { %v746_v44 = vadd.f32 %v1756_v21, %v570_v40  ;;  %v1876_v45 = vadd.f32 %v1756_v21, %v590_v42 }
  0xcb   : > { %v938_v61 = vmul.f32 0.2, %v1879_v46  ;;  %vm906_vm5 = vcmp.gt.f32.partialorder %v1879_v46, 0.0  ;;  %v946_v25 = vmul.f32 0.2, %v1902_v6  ;;  %vm914_vm7 = vcmp.gt.f32.partialorder %v1902_v6, 0.0 }
  0xcc   : > { %vm891_vm3 = vcmp.gt.f32.partialorder %v746_v44, 0.0  ;;  %v923_v54 = vmul.f32 0.2, %v746_v44  ;;  %vm899_vm4 = vcmp.gt.f32.partialorder %v1876_v45, 0.0  ;;  %v931_v57 = vmul.f32 0.2, %v1876_v45 }
  0xcd   : > { %v970_v52 = vsel %vm906_vm5, %v1879_v46, %v938_v61  ;;  %v815_v26 = vmul.f32 %v746_v44, %v746_v44  ;;  %v777_v35 = vadd.f32 %v776_v24, %v746_v44  ;;  %v978_v38 = vsel %vm914_vm7, %v1902_v6, %v946_v25 }
  0xce   : > { %v955_v60 = vsel %vm891_vm3, %v746_v44, %v923_v54  ;;  %v963_v23 = vsel %vm899_vm4, %v1876_v45, %v931_v57  ;;  %v820_v25 = vmul.f32 %v1814_v53, %v1814_v53 }
  0xcf   : > { %v1350_v63 = vpack.c.bf16 %v955_v60, %v954_v59  ;;  %v1370_v3 = vpack.c.bf16 %v963_v23, %v962_v56  ;;  %v846_v42 = vadd.f32 %v845_v34, %v815_v26 }
  0xd0   : > { %v610_v5 = vpop.f32.mrf.mxu2  ;;  %v630_v7 = vpop.f32.mrf.mxu3 }
  0xd1   : > { %1418 = vst [vmem:[%s1788_s29 + $0x10] sm:$0xff] %v1350_v63   ;;  %v573_v8 = vpop.f32.mrf.mxu0  ;;  %v593_v9 = vpop.f32.mrf.mxu1  ;;  %v1906_v10 = vadd.f32 %v1756_v21, %v610_v5  ;;  %v1915_v17 = vadd.f32 %v1756_v21, %v630_v7  ;;  %v819_v63 = vmul.f32 %v1771_v31, %v1771_v31 }
  0xd2   : > { %1422 = vst [vmem:[%s1788_s29 + $0x30] sm:$0xff] %v1370_v3   ;;  %v747_v15 = vadd.f32 %v1756_v21, %v573_v8  ;;  %v1919_v1 = vadd.f32 %v1756_v21, %v593_v9 }
  0xd3   : > { %vm907_vm6 = vcmp.gt.f32.partialorder %v1906_v10, 0.0  ;;  %v939_v16 = vmul.f32 0.2, %v1906_v10  ;;  %vm915_vm8 = vcmp.gt.f32.partialorder %v1915_v17, 0.0  ;;  %v947_v39 = vmul.f32 0.2, %v1915_v17 }
  0xd4   : > { %v816_v36 = vmul.f32 %v747_v15, %v747_v15  ;;  %v778_v43 = vadd.f32 %v777_v35, %v747_v15  ;;  %v924_v49 = vmul.f32 0.2, %v747_v15  ;;  %v932_v50 = vmul.f32 0.2, %v1919_v1 }
  0xd5   : > { %v971_v29 = vsel %vm907_vm6, %v1906_v10, %v939_v16  ;;  %vm900_vm9 = vcmp.gt.f32.partialorder %v1919_v1, 0.0  ;;  %v979_v56 = vsel %vm915_vm8, %v1915_v17, %v947_v39  ;;  %vm892_vm10 = vcmp.gt.f32.partialorder %v747_v15, 0.0 }
  0xd6   : > { %v1390_v33 = vpack.c.bf16 %v971_v29, %v970_v52  ;;  %v847_v57 = vadd.f32 %v846_v42, %v816_v36  ;;  %v1410_v59 = vpack.c.bf16 %v979_v56, %v978_v38  ;;  %v964_v23 = vsel %vm900_vm9, %v1919_v1, %v932_v50 }
  0xd7   : > { %v956_v0 = vsel %vm892_vm10, %v747_v15, %v924_v49  ;;  %v822_v38 = vmul.f32 %v1864_v28, %v1864_v28 }
  0xd8   : > { %1426 = vst [vmem:[%s1788_s29 + $0x50] sm:$0xff] %v1390_v33   ;;  %v613_v27 = vpop.f32.mrf.mxu2  ;;  %v633_v40 = vpop.f32.mrf.mxu3 }
  0xd9   : > { %v575_v51 = vpop.f32.mrf.mxu0  ;;  %v595_v44 = vpop.f32.mrf.mxu1  ;;  %v1937_v58 = vadd.f32 %v1756_v21, %v613_v27  ;;  %1430 = vst [vmem:[%s1788_s29 + $0x70] sm:$0xff] %v1410_v59   ;;  %v1948_v18 = vadd.f32 %v1756_v21, %v633_v40 }
  0xda   : > { %v748_v54 = vadd.f32 %v1756_v21, %v575_v51  ;;  %v756_v55 = vadd.f32 %v1756_v21, %v595_v44  ;;  %v824_v44 = vmul.f32 %v1919_v1, %v1919_v1 }
  0xdb   : > { %vm908_vm13 = vcmp.gt.f32.partialorder %v1937_v58, 0.0  ;;  %v940_v11 = vmul.f32 0.2, %v1937_v58  ;;  %vm916_vm15 = vcmp.gt.f32.partialorder %v1948_v18, 0.0 }
  0xdc   : > { %v779_v60 = vadd.f32 %v778_v43, %v748_v54  ;;  %v817_v61 = vmul.f32 %v748_v54, %v748_v54  ;;  %vm893_vm11 = vcmp.gt.f32.partialorder %v748_v54, 0.0  ;;  %v925_v62 = vmul.f32 0.2, %v748_v54 }
  0xdd   : > { %vm901_vm12 = vcmp.gt.f32.partialorder %v756_v55, 0.0  ;;  %v933_v30 = vmul.f32 0.2, %v756_v55  ;;  %v972_v33 = vsel %vm908_vm13, %v1937_v58, %v940_v11 }
  0xde   : > { %v780_v3 = vadd.f32 %v779_v60, %v1759_v22  ;;  %v848_v5 = vadd.f32 %v847_v57, %v817_v61  ;;  %v957_v7 = vsel %vm893_vm11, %v748_v54, %v925_v62  ;;  %v825_v57 = vmul.f32 %v756_v55, %v756_v55 }
  0xdf   : > { %v1355_v8 = vpack.c.bf16 %v957_v7, %v956_v0  ;;  %v965_v9 = vsel %vm901_vm12, %v756_v55, %v933_v30  ;;  %v826_v60 = vmul.f32 %v1775_v32, %v1775_v32 }
  0xe0   : > { %v781_v12 = vadd.f32 %v780_v3, %v1771_v31  ;;  %v849_v14 = vadd.f32 %v848_v5, %v818_v37  ;;  %v1375_v52 = vpack.c.bf16 %v965_v9, %v964_v23  ;;  %v615_v16 = vpop.f32.mrf.mxu2  ;;  %v635_v15 = vpop.f32.mrf.mxu3  ;;  %v948_v31 = vmul.f32 0.2, %v1948_v18 }
  0xe1   : > { %1419 = vst [vmem:[%s1788_s29 + $0x18] sm:$0xff] %v1355_v8   ;;  %v764_v22 = vadd.f32 %v1756_v21, %v615_v16  ;;  %v1953_v24 = vadd.f32 %v1756_v21, %v635_v15  ;;  %v821_v21 = vmul.f32 %v1829_v2, %v1829_v2  ;;  %v831_v9 = vmul.f32 %v1906_v10, %v1906_v10 }
  0xe2   : > { %v782_v26 = vadd.f32 %v781_v12, %v1814_v53  ;;  %v850_v29 = vadd.f32 %v849_v14, %v819_v63  ;;  %1423 = vst [vmem:[%s1788_s29 + $0x38] sm:$0xff] %v1375_v52   ;;  %v980_v37 = vsel %vm916_vm15, %v1948_v18, %v948_v31  ;;  %v832_v14 = vmul.f32 %v1937_v58, %v1937_v58 }
  0xe3   : > { %vm909_vm14 = vcmp.gt.f32.partialorder %v764_v22, 0.0  ;;  %v941_v34 = vmul.f32 0.2, %v764_v22  ;;  %vm917_vm0 = vcmp.gt.f32.partialorder %v1953_v24, 0.0  ;;  %v949_v27 = vmul.f32 0.2, %v1953_v24 }
  0xe4   : > { %v851_v35 = vadd.f32 %v850_v29, %v820_v25  ;;  %v783_v36 = vadd.f32 %v782_v26, %v1829_v2  ;;  %v823_v2 = vmul.f32 %v1876_v45, %v1876_v45  ;;  %v833_v16 = vmul.f32 %v764_v22, %v764_v22 }
  0xe5   : > { %v973_v53 = vsel %vm909_vm14, %v764_v22, %v941_v34  ;;  %v981_v43 = vsel %vm917_vm0, %v1953_v24, %v949_v27  ;;  %v834_v15 = vmul.f32 %v1794_v41, %v1794_v41  ;;  %v835_v26 = vmul.f32 %v1803_v48, %v1803_v48 }
  0xe6   : > { %v784_v39 = vadd.f32 %v783_v36, %v1864_v28  ;;  %v852_v40 = vadd.f32 %v851_v35, %v821_v21  ;;  %v1395_v42 = vpack.c.bf16 %v973_v53, %v972_v33  ;;  %v1415_v51 = vpack.c.bf16 %v981_v43, %v980_v37 }
  0xe7   : > { %v836_v31 = vmul.f32 %v1846_v13, %v1846_v13  ;;  %v839_v53 = vmul.f32 %v1915_v17, %v1915_v17 }
  0xe8   : > { %v785_v49 = vadd.f32 %v784_v39, %v1876_v45  ;;  %v853_v50 = vadd.f32 %v852_v40, %v822_v38  ;;  %1427 = vst [vmem:[%s1788_s29 + $0x58] sm:$0xff] %v1395_v42   ;;  %v827_v45 = vmul.f32 %v1799_v47, %v1799_v47 }
  0xe9   : > { %1431 = vst [vmem:[%s1788_s29 + $0x78] sm:$0xff] %v1415_v51  }
  0xea   : > { %v786_v54 = vadd.f32 %v785_v49, %v1919_v1  ;;  %v854_v56 = vadd.f32 %v853_v50, %v823_v2  ;;  %v828_v1 = vmul.f32 %v1833_v4, %v1833_v4 }
  0xec   : > { %v787_v28 = vadd.f32 %v786_v54, %v756_v55  ;;  %v855_v59 = vadd.f32 %v854_v56, %v824_v44  ;;  %v829_v55 = vmul.f32 %v1851_v19, %v1851_v19 }
  0xee   : > { %v788_v61 = vadd.f32 %v787_v28, %v1775_v32  ;;  %v856_v62 = vadd.f32 %v855_v59, %v825_v57  ;;  %v830_v32 = vmul.f32 %v1879_v46, %v1879_v46 }
  0xf0   : > { %v789_v63 = vadd.f32 %v788_v61, %v1799_v47  ;;  %v857_v23 = vadd.f32 %v856_v62, %v826_v60 }
  0xf2   : > { %v858_v30 = vadd.f32 %v857_v23, %v827_v45  ;;  %v790_v0 = vadd.f32 %v789_v63, %v1833_v4 }
  0xf4   : > { %v791_v3 = vadd.f32 %v790_v0, %v1851_v19  ;;  %v859_v5 = vadd.f32 %v858_v30, %v828_v1 }
  0xf6   : > { %v792_v7 = vadd.f32 %v791_v3, %v1879_v46  ;;  %v860_v8 = vadd.f32 %v859_v5, %v829_v55 }
  0xf8   : > { %v793_v47 = vadd.f32 %v792_v7, %v1906_v10  ;;  %v861_v11 = vadd.f32 %v860_v8, %v830_v32 }
  0xfa   : > { %v862_v12 = vadd.f32 %v861_v11, %v831_v9  ;;  %v794_v4 = vadd.f32 %v793_v47, %v1937_v58 }
  0xfc   : > { %v863_v19 = vadd.f32 %v862_v12, %v832_v14  ;;  %v795_v52 = vadd.f32 %v794_v4, %v764_v22  ;;  %v837_v22 = vmul.f32 %v1855_v20, %v1855_v20 }
  0xfe   : > { %v796_v46 = vadd.f32 %v795_v52, %v1794_v41  ;;  %v864_v25 = vadd.f32 %v863_v19, %v833_v16  ;;  %v838_v41 = vmul.f32 %v1902_v6, %v1902_v6 }
 0x100   : > { %v797_v10 = vadd.f32 %v796_v46, %v1803_v48  ;;  %v865_v29 = vadd.f32 %v864_v25, %v834_v15 }
 0x102   : > { %v866_v33 = vadd.f32 %v865_v29, %v835_v26  ;;  %v798_v58 = vadd.f32 %v797_v10, %v1846_v13 }
 0x104   : > { %v799_v34 = vadd.f32 %v798_v58, %v1855_v20  ;;  %v867_v21 = vadd.f32 %v866_v33, %v836_v31  ;;  %v840_v20 = vmul.f32 %v1948_v18, %v1948_v18 }
 0x106   : > { %v800_v35 = vadd.f32 %v799_v34, %v1902_v6  ;;  %v868_v48 = vadd.f32 %v867_v21, %v837_v22  ;;  %v841_v6 = vmul.f32 %v1953_v24, %v1953_v24 }
 0x108   : > { %v801_v36 = vadd.f32 %v800_v35, %v1915_v17  ;;  %v869_v37 = vadd.f32 %v868_v48, %v838_v41  ;;  %v879_v17 = vlaneseq }
 0x10a   : > { %v870_v13 = vadd.f32 %v869_v37, %v839_v53  ;;  %v802_v27 = vadd.f32 %v801_v36, %v1948_v18  ;;  %v880_v54 = vshrl.u32 %v879_v17, 7 }
 0x10c   : > { %v871_v38 = vadd.f32 %v870_v13, %v840_v20  ;;  %v803_v39 = vadd.f32 %v802_v27, %v1953_v24  ;;  %vm882_vm1 = vcmp.eq.s32.totalorder %v880_v54, 1  ;;  %vm881_vm2 = vcmp.eq.s32.totalorder %v880_v54, 0 }
 0x10e   : > { %v804_v40 = vrot.slane %v803_v39, 4  ;;  %v872_v42 = vadd.f32 %v871_v38, %v841_v6 }
 0x110   : > { %v805_v43 = vadd.f32 %v804_v40, %v803_v39  ;;  %v873_v2 = vrot.slane %v872_v42, 4 }
 0x112   : > { %v806_v49 = vrot.slane %v805_v43, 2  ;;  %v874_v50 = vadd.f32 %v873_v2, %v872_v42 }
 0x114   : > { %v807_v51 = vadd.f32 %v806_v49, %v805_v43  ;;  %v875_v44 = vrot.slane %v874_v50, 2 }
 0x116   : > { %v876_v18 = vadd.f32 %v875_v44, %v874_v50  ;;  %v808_v56 = vrot.slane %v807_v51, 1 }
 0x118   : > { %v877_v24 = vrot.slane %v876_v18, 1  ;;  %v809_v57 = vadd.f32 %v808_v56, %v807_v51 }
 0x11a   : > { %v878_v28 = vadd.f32 %v877_v24, %v876_v18 }
 0x11c   : > { %v883_v59 = vsel %vm882_vm1, %v878_v28, 0.0 }
 0x11d   : > { %v884_v60 = vsel %vm881_vm2, %v809_v57, %v883_v59 }
 0x11e   : > { %885 = vst [vmem:[%s272_s10] sm:$0xff] %v884_v60 }
 0x11f   : > { %1567 = shalt.err (!%p1564_p9)
}
 0x120   : > { %1445 = dma.vmem_to_hbm [thread:$0]  (%p1692_p4), %s1073_s11, 128, %s1075_s12, %s1055_s18  }
 0x121 PF: > { %p1457_p10 = scmp.ge.s32.totalorder %s1622_s20, 2  ;;  %s1097_s30 = sand.u32 1, %s1602_s15  }
 0x122   : > { %s1098_s5 = scalar_lea.sflag [#allocation5], %s1097_s30 }
 0x123   : > { %p1452_p11 = pnand %p1457_p10, %p1699_p8 }
 0x125   : > { %p1453_p12 = pneg %p1452_p11 }
 0x127   : > { %1597 = dma.done.wait (%p1453_p12), %s1098_s5, 128  }
 0x128   : > { %1599 = vsyncadd (%p1453_p12), %s1098_s5, 4294967168  ;;  %s19_s20 = sadd.s32 1, %s1622_s20   ;;  %s2071_s15 = smov %s1606_s16 }
 0x129   : > { %p16_p13 = scmp.ge.s32.totalorder %s19_s20, 4   ;;  %s2072_s16 = smov %s1610_s17 }
 0x12a   : > { %s2073_s17 = smov %s1705_s28  ;;  %s2074_s18 = smov %s1618_s19 }
 0x12b   : > { %s2075_s19 = smov %s2077_s23  ;;  %18 = sbr.rel (!%p16_p13) target bundleno = 5 (0x5), region = 96 }
 0x130   :  { %1104 = vsyncpa [#allocation4], 1 }
 0x131   :  { %1106 = vsyncpa [#allocation4 + $0x1], 1 }
 0x132   :  { %1107 = vsyncpa [#allocation5], 1 }
 0x133   :  { %1109 = vsyncpa [#allocation5 + $0x1], 1 }

// kernel: _lambda_.9
= control target key start
LH: loop header
LB: loop body
LE: loop exit
PB: predicated region body
PF: predicated region fallthrough
CT: control target
= control target key end

     0   :  { %s1810_s15 = smov 0   ;;  %s1812_s16 = smov 0   ;;  %s2099_s0 = inlined_call_operand.vmem [shape: bf16[128,1024], index: 0, kind: input, shape index: {}]   ;;  %s2100_s1 = inlined_call_operand.vmem [shape: bf16[1024,128], index: 1, kind: input, shape index: {}]   ;;  %s2101_s2 = inlined_call_operand.vmem [shape: f32[1,128], index: 2, kind: input, shape index: {}]   ;;  %s2102_s3 = inlined_call_operand.vmem [shape: f32[128,128], index: 3, kind: output, shape index: {0}]   ;;  %s2103_s4 = inlined_call_operand.vmem [shape: f32[1,8,128], index: 4, kind: output, shape index: {1}]  }
   0x1   :  { %s1814_s17 = smov 0   ;;  %s1816_s18 = smov 0  }
   0x2   :  { %s1818_s19 = smov 0  }
   0x3 LB: > { %s27_s20 = sadd.s32 1, %s1778_s18  ;;  %p50_p1 = scmp.ne.s32.totalorder %s1770_s16, %s1766_s15  ;;  %s1782_s19 = sphi %s1818_s19, %s15_s19   ;;  %s1778_s18 = sphi %s1816_s18, %s2107_s18   ;;  %s1774_s17 = sphi %s1814_s17, %s2106_s17   ;;  %s1770_s16 = sphi %s1812_s16, %s2105_s16   ;;  %s1766_s15 = sphi %s1810_s15, %s2104_s15  }
   0x4   : > { %p28_p0 = scmp.ge.s32.totalorder %s27_s20, 2  ;;  %p51_p2 = scmp.eq.s32.totalorder %s1782_s19, 0 }
   0x5   : > { %s43_s22 = sadd.s32 1, %s1770_s16  ;;  %p1366_p5 = scmp.ge.s32.totalorder %s1782_s19, 2 }
   0x6   : > { %s2109_s20 = smov (%p28_p0, %s27_s20), 0  ;;  %p52_p3 = por %p51_p2, %p50_p1 }
   0x7   : > { %s39_s21 = ssub.s32 %s1778_s18, %s2109_s20  ;;  %192 = sbr.rel (%p1366_p5) target bundleno = 48 (0x30), region = 20 }
   0x8   : > { %p41_p4 = scmp.eq.s32.totalorder %s39_s21, 0 }
   0xa   : > { %s1845_s23 = scalar_select %p41_p4, %s1770_s16, %s43_s22  }
   0xc   : > { %195 = sbr.rel (!%p52_p3) target bundleno = 48 (0x30), region = 24  ;;  %s197_s24 = sand.u32 (%p52_p3), 1, %s1770_s16  }
   0xd   : > { %s1637_s25 = sshll.u32 (%p52_p3), %s1778_s18, 4  ;;  %s1367_s26 = sshll.u32 (%p52_p3), %s197_s24, 8 }
   0xe   : > { %s1853_s29 = scalar_lea.vmem (%p52_p3), %s2099_s0, %s1637_s25  ;;  %s1858_s30 = scalar_lea.vmem (%p52_p3), [#allocation3], %s1367_s26 }
   0xf   : > { %v218_v0 = vld [vmem:[%s1853_s29] sm:$0xff] (%p52_p3)  ;;  %v220_v1 = vld [vmem:[%s1853_s29 + $0x8] sm:$0xff] (%p52_p3) }
  0x10   : > { %v222_v2 = vld [vmem:[%s1853_s29 + $0x20] sm:$0xff] (%p52_p3)  ;;  %219 = vst [vmem:[%s1858_s30] sm:$0xff] (%p52_p3), %v218_v0  ;;  %v224_v3 = vld [vmem:[%s1853_s29 + $0x28] sm:$0xff] (%p52_p3) }
  0x11   : > { %221 = vst [vmem:[%s1858_s30 + $0x8] sm:$0xff] %v220_v1  ;;  %v226_v4 = vld [vmem:[%s1853_s29 + $0x40] sm:$0xff]  ;;  %v228_v5 = vld [vmem:[%s1853_s29 + $0x48] sm:$0xff] }
  0x12   : > { %223 = vst [vmem:[%s1858_s30 + $0x10] sm:$0xff] %v222_v2  ;;  %v230_v6 = vld [vmem:[%s1853_s29 + $0x60] sm:$0xff]  ;;  %v232_v7 = vld [vmem:[%s1853_s29 + $0x68] sm:$0xff] }
  0x13   : > { %225 = vst [vmem:[%s1858_s30 + $0x18] sm:$0xff] %v224_v3  ;;  %v234_v8 = vld [vmem:[%s1853_s29 + $0x80] sm:$0xff]  ;;  %v236_v9 = vld [vmem:[%s1853_s29 + $0x88] sm:$0xff] }
  0x14   : > { %227 = vst [vmem:[%s1858_s30 + $0x20] sm:$0xff] %v226_v4  ;;  %v238_v10 = vld [vmem:[%s1853_s29 + $0xa0] sm:$0xff]  ;;  %v240_v11 = vld [vmem:[%s1853_s29 + $0xa8] sm:$0xff] }
  0x15   : > { %229 = vst [vmem:[%s1858_s30 + $0x28] sm:$0xff] %v228_v5  ;;  %v242_v12 = vld [vmem:[%s1853_s29 + $0xc0] sm:$0xff]  ;;  %v244_v13 = vld [vmem:[%s1853_s29 + $0xc8] sm:$0xff] }
  0x16   : > { %231 = vst [vmem:[%s1858_s30 + $0x30] sm:$0xff] %v230_v6  ;;  %v246_v14 = vld [vmem:[%s1853_s29 + $0xe0] sm:$0xff]  ;;  %v248_v15 = vld [vmem:[%s1853_s29 + $0xe8] sm:$0xff] }
  0x17   : > { %233 = vst [vmem:[%s1858_s30 + $0x38] sm:$0xff] %v232_v7  ;;  %v250_v16 = vld [vmem:[%s1853_s29 + $0x100] sm:$0xff]  ;;  %v252_v17 = vld [vmem:[%s1853_s29 + $0x108] sm:$0xff] }
  0x18   : > { %235 = vst [vmem:[%s1858_s30 + $0x40] sm:$0xff] %v234_v8  ;;  %v254_v18 = vld [vmem:[%s1853_s29 + $0x120] sm:$0xff]  ;;  %v256_v19 = vld [vmem:[%s1853_s29 + $0x128] sm:$0xff] }
  0x19   : > { %237 = vst [vmem:[%s1858_s30 + $0x48] sm:$0xff] %v236_v9  ;;  %v258_v20 = vld [vmem:[%s1853_s29 + $0x140] sm:$0xff]  ;;  %v260_v21 = vld [vmem:[%s1853_s29 + $0x148] sm:$0xff] }
  0x1a   : > { %239 = vst [vmem:[%s1858_s30 + $0x50] sm:$0xff] %v238_v10  ;;  %v262_v22 = vld [vmem:[%s1853_s29 + $0x160] sm:$0xff]  ;;  %v264_v23 = vld [vmem:[%s1853_s29 + $0x168] sm:$0xff] }
  0x1b   : > { %241 = vst [vmem:[%s1858_s30 + $0x58] sm:$0xff] %v240_v11  ;;  %v266_v24 = vld [vmem:[%s1853_s29 + $0x180] sm:$0xff]  ;;  %v268_v25 = vld [vmem:[%s1853_s29 + $0x188] sm:$0xff] }
  0x1c   : > { %243 = vst [vmem:[%s1858_s30 + $0x60] sm:$0xff] %v242_v12  ;;  %v270_v26 = vld [vmem:[%s1853_s29 + $0x1a0] sm:$0xff]  ;;  %v272_v27 = vld [vmem:[%s1853_s29 + $0x1a8] sm:$0xff] }
  0x1d   : > { %245 = vst [vmem:[%s1858_s30 + $0x68] sm:$0xff] %v244_v13  ;;  %v274_v28 = vld [vmem:[%s1853_s29 + $0x1c0] sm:$0xff]  ;;  %v276_v29 = vld [vmem:[%s1853_s29 + $0x1c8] sm:$0xff] }
  0x1e   : > { %247 = vst [vmem:[%s1858_s30 + $0x70] sm:$0xff] %v246_v14  ;;  %v278_v30 = vld [vmem:[%s1853_s29 + $0x1e0] sm:$0xff]  ;;  %v280_v31 = vld [vmem:[%s1853_s29 + $0x1e8] sm:$0xff] }
  0x1f   : > { %249 = vst [vmem:[%s1858_s30 + $0x78] sm:$0xff] %v248_v15 }
  0x20   : > { %251 = vst [vmem:[%s1858_s30 + $0x80] sm:$0xff] %v250_v16 }
  0x21   : > { %253 = vst [vmem:[%s1858_s30 + $0x88] sm:$0xff] %v252_v17 }
  0x22   : > { %255 = vst [vmem:[%s1858_s30 + $0x90] sm:$0xff] %v254_v18 }
  0x23   : > { %257 = vst [vmem:[%s1858_s30 + $0x98] sm:$0xff] %v256_v19 }
  0x24   : > { %259 = vst [vmem:[%s1858_s30 + $0xa0] sm:$0xff] %v258_v20 }
  0x25   : > { %261 = vst [vmem:[%s1858_s30 + $0xa8] sm:$0xff] %v260_v21 }
  0x26   : > { %263 = vst [vmem:[%s1858_s30 + $0xb0] sm:$0xff] %v262_v22 }
  0x27   : > { %265 = vst [vmem:[%s1858_s30 + $0xb8] sm:$0xff] %v264_v23 }
  0x28   : > { %267 = vst [vmem:[%s1858_s30 + $0xc0] sm:$0xff] %v266_v24 }
  0x29   : > { %269 = vst [vmem:[%s1858_s30 + $0xc8] sm:$0xff] %v268_v25 }
  0x2a   : > { %271 = vst [vmem:[%s1858_s30 + $0xd0] sm:$0xff] %v270_v26 }
  0x2b   : > { %273 = vst [vmem:[%s1858_s30 + $0xd8] sm:$0xff] %v272_v27 }
  0x2c   : > { %275 = vst [vmem:[%s1858_s30 + $0xe0] sm:$0xff] %v274_v28 }
  0x2d   : > { %277 = vst [vmem:[%s1858_s30 + $0xe8] sm:$0xff] %v276_v29 }
  0x2e   : > { %279 = vst [vmem:[%s1858_s30 + $0xf0] sm:$0xff] %v278_v30 }
  0x2f   : > { %281 = vst [vmem:[%s1858_s30 + $0xf8] sm:$0xff] %v280_v31 }
  0x30 PF: > { %p1370_p6 = scmp.ge.s32.totalorder %s1782_s19, 1  ;;  %p298_p7 = scmp.lt.s32.totalorder %s1782_s19, 3 }
  0x32   : > { %p299_p8 = pnand %p1370_p6, %p298_p7 }
  0x33   : > { %s305_s5 = sand.u32 (!%p299_p8), 1, %s1766_s15   ;;  %s1372_s6 = sshll.u32 (!%p299_p8), %s1774_s17, 6 }
  0x34   : > { %302 = sbr.rel (%p299_p8) target bundleno = 423 (0x1a7), region = 51  ;;  %s1371_s7 = sshll.u32 (!%p299_p8), %s305_s5, 8 }
  0x35   : > { %p354_p9 = scmp.lt.s32.totalorder (!%p299_p8), %s1372_s6, 127  ;;  %s1930_s12 = scalar_lea.vmem (!%p299_p8), [#allocation3], %s1371_s7 }
  0x36   : > { %p1374_p10 = scmp.ne.s32.totalorder (!%p299_p8), %s1774_s17, 0 }
  0x39   : > { %s2111_s6 = smov (!%p354_p9, %s1372_s6), 127  ;;  %384 = sbr.rel (%p1374_p10) target bundleno = 79 (0x4f), region = 59 }
  0x3a   : > { %s1373_s8 = sshll.u32 %s2111_s6, 2 }
  0x3b   : > { %s1928_s11 = scalar_lea.vmem %s2100_s1, %s1373_s8 }
  0x3e   : > { %v1784_v32 = vmov 0.0  }
  0x3f   : > { %385 = vst [vmem:[#allocation2 + $0x30] sm:$0xff] %v1784_v32 }
  0x40   : > { %386 = vst [vmem:[#allocation2] sm:$0xff] %v1784_v32 }
  0x41   : > { %387 = vst [vmem:[#allocation2 + $0x58] sm:$0xff] %v1784_v32 }
  0x42   : > { %388 = vst [vmem:[#allocation2 + $0x18] sm:$0xff] %v1784_v32 }
  0x43   : > { %389 = vst [vmem:[#allocation2 + $0x50] sm:$0xff] %v1784_v32 }
  0x44   : > { %390 = vst [vmem:[#allocation2 + $0x68] sm:$0xff] %v1784_v32 }
  0x45   : > { %391 = vst [vmem:[#allocation2 + $0x8] sm:$0xff] %v1784_v32 }
  0x46   : > { %392 = vst [vmem:[#allocation2 + $0x48] sm:$0xff] %v1784_v32 }
  0x47   : > { %393 = vst [vmem:[#allocation2 + $0x40] sm:$0xff] %v1784_v32 }
  0x48   : > { %394 = vst [vmem:[#allocation2 + $0x20] sm:$0xff] %v1784_v32 }
  0x49   : > { %395 = vst [vmem:[#allocation2 + $0x10] sm:$0xff] %v1784_v32 }
  0x4a   : > { %396 = vst [vmem:[#allocation2 + $0x38] sm:$0xff] %v1784_v32 }
  0x4b   : > { %397 = vst [vmem:[#allocation2 + $0x60] sm:$0xff] %v1784_v32 }
  0x4c   : > { %398 = vst [vmem:[#allocation2 + $0x70] sm:$0xff] %v1784_v32 }
  0x4d   : > { %399 = vst [vmem:[#allocation2 + $0x78] sm:$0xff] %v1784_v32 }
  0x4e   : > { %400 = vst [vmem:[#allocation2 + $0x28] sm:$0xff] %v1784_v32 }
  0x4f PF: > { %v1677_v33 = vld [vmem:[%s1928_s11 + $0x38] sm:$0xff]  ;;  %v1676_v37 = vld [vmem:[%s1928_s11 + $0x30] sm:$0xff]  ;;  %v1675_v41 = vld [vmem:[%s1928_s11 + $0x28] sm:$0xff]  ;;  %p1631_p11 = scmp.ne.s32.totalorder %s1774_s17, 1 }
  0x50   : > { %v1685_v34 = vld [vmem:[%s1928_s11 + $0x78] sm:$0xff]  ;;  %865 = vmatpush.bf16.msra.mxu0 %v1677_v33  ;;  %v1684_v38 = vld [vmem:[%s1928_s11 + $0x70] sm:$0xff]  ;;  %v1683_v42 = vld [vmem:[%s1928_s11 + $0x68] sm:$0xff] }
  0x51   : > { %v1693_v35 = vld [vmem:[%s1928_s11 + $0xb8] sm:$0xff]  ;;  %914 = vmatpush.bf16.msra.mxu1 %v1685_v34  ;;  %v1692_v39 = vld [vmem:[%s1928_s11 + $0xb0] sm:$0xff]  ;;  %v1691_v43 = vld [vmem:[%s1928_s11 + $0xa8] sm:$0xff] }
  0x52   : > { %v1701_v36 = vld [vmem:[%s1928_s11 + $0xf8] sm:$0xff]  ;;  %963 = vmatpush.bf16.msra.mxu2 %v1693_v35  ;;  %v1700_v40 = vld [vmem:[%s1928_s11 + $0xf0] sm:$0xff]  ;;  %v1699_v44 = vld [vmem:[%s1928_s11 + $0xe8] sm:$0xff] }
  0x53   : > { %1012 = vmatpush.bf16.msra.mxu3 %v1701_v36  ;;  %v1674_v45 = vld [vmem:[%s1928_s11 + $0x20] sm:$0xff]  ;;  %v1673_v49 = vld [vmem:[%s1928_s11 + $0x18] sm:$0xff]  ;;  %v1672_v53 = vld [vmem:[%s1928_s11 + $0x10] sm:$0xff] }
  0x54   : > { %866 = vmatpush.bf16.msra.mxu0 %v1676_v37  ;;  %v1682_v46 = vld [vmem:[%s1928_s11 + $0x60] sm:$0xff]  ;;  %v1681_v50 = vld [vmem:[%s1928_s11 + $0x58] sm:$0xff]  ;;  %v1680_v54 = vld [vmem:[%s1928_s11 + $0x50] sm:$0xff] }
  0x55   : > { %915 = vmatpush.bf16.msra.mxu1 %v1684_v38  ;;  %v1690_v47 = vld [vmem:[%s1928_s11 + $0xa0] sm:$0xff]  ;;  %v1689_v51 = vld [vmem:[%s1928_s11 + $0x98] sm:$0xff]  ;;  %v1688_v55 = vld [vmem:[%s1928_s11 + $0x90] sm:$0xff] }
  0x56   : > { %964 = vmatpush.bf16.msra.mxu2 %v1692_v39  ;;  %v1698_v48 = vld [vmem:[%s1928_s11 + $0xe0] sm:$0xff]  ;;  %v1697_v52 = vld [vmem:[%s1928_s11 + $0xd8] sm:$0xff]  ;;  %v1696_v56 = vld [vmem:[%s1928_s11 + $0xd0] sm:$0xff] }
  0x57   : > { %1013 = vmatpush.bf16.msra.mxu3 %v1700_v40  ;;  %v1671_v57 = vld [vmem:[%s1928_s11 + $0x8] sm:$0xff]  ;;  %v1670_v61 = vld [vmem:[%s1928_s11] sm:$0xff]  ;;  %v1640_v2 = vld [vmem:[%s1930_s12 + $0xc] sm:$0xf0] }
  0x58   : > { %867 = vmatpush.bf16.msra.mxu0 %v1675_v41  ;;  %v1679_v58 = vld [vmem:[%s1928_s11 + $0x48] sm:$0xff]  ;;  %v1678_v62 = vld [vmem:[%s1928_s11 + $0x40] sm:$0xff]  ;;  %v1379_v4 = vld [vmem:[%s1930_s12 + $0x10] sm:$0xf0] }
  0x59   : > { %916 = vmatpush.bf16.msra.mxu1 %v1683_v42  ;;  %v1687_v59 = vld [vmem:[%s1928_s11 + $0x88] sm:$0xff]  ;;  %v1686_v63 = vld [vmem:[%s1928_s11 + $0x80] sm:$0xff]  ;;  %v1641_v6 = vld [vmem:[%s1930_s12 + $0x14] sm:$0xf0] }
  0x5a   : > { %965 = vmatpush.bf16.msra.mxu2 %v1691_v43  ;;  %v1695_v60 = vld [vmem:[%s1928_s11 + $0xc8] sm:$0xff]  ;;  %v1694_v0 = vld [vmem:[%s1928_s11 + $0xc0] sm:$0xff]  ;;  %v1387_v8 = vld [vmem:[%s1930_s12 + $0x18] sm:$0xf0] }
  0x5b   : > { %1014 = vmatpush.bf16.msra.mxu3 %v1699_v44  ;;  %v1377_v1 = vld [vmem:[%s1930_s12] sm:$0xf]  ;;  %v1638_v3 = vld [vmem:[%s1930_s12 + $0x4] sm:$0xf]  ;;  %v1385_v5 = vld [vmem:[%s1930_s12 + $0x8] sm:$0xf] }
  0x5c   : > { %868 = vmatpush.bf16.msra.mxu0 %v1674_v45  ;;  %v1639_v7 = vld [vmem:[%s1930_s12 + $0xc] sm:$0xf]  ;;  %v1378_v9 = vor.u32 %v1640_v2, %v1377_v1  ;;  %v1382_v10 = vor.u32 %v1638_v3, %v1379_v4  ;;  %v1386_v11 = vor.u32 %v1641_v6, %v1385_v5  ;;  %v1393_v13 = vld [vmem:[%s1930_s12 + $0x20] sm:$0xf]  ;;  %v1644_v14 = vld [vmem:[%s1930_s12 + $0x2c] sm:$0xf0] }
  0x5d   : > { %917 = vmatpush.bf16.msra.mxu1 %v1682_v46  ;;  %v1390_v12 = vor.u32 %v1639_v7, %v1387_v8  ;;  %v1642_v15 = vld [vmem:[%s1930_s12 + $0x24] sm:$0xf]  ;;  %v1395_v16 = vld [vmem:[%s1930_s12 + $0x30] sm:$0xf0]  ;;  %v1401_v17 = vld [vmem:[%s1930_s12 + $0x28] sm:$0xf]  ;;  %v1394_v21 = vor.u32 %v1644_v14, %v1393_v13 }
  0x5e   : > { %966 = vmatpush.bf16.msra.mxu2 %v1690_v47  ;;  %v1645_v18 = vld [vmem:[%s1930_s12 + $0x34] sm:$0xf0]  ;;  %v1643_v19 = vld [vmem:[%s1930_s12 + $0x2c] sm:$0xf]  ;;  %v1403_v20 = vld [vmem:[%s1930_s12 + $0x38] sm:$0xf0]  ;;  %v1398_v22 = vor.u32 %v1642_v15, %v1395_v16 }
  0x5f   : > { %1015 = vmatpush.bf16.msra.mxu3 %v1698_v48  ;;  %v1402_v23 = vor.u32 %v1645_v18, %v1401_v17  ;;  %v1406_v24 = vor.u32 %v1643_v19, %v1403_v20  ;;  %v1409_v25 = vld [vmem:[%s1930_s12 + $0x40] sm:$0xf]  ;;  %v1648_v26 = vld [vmem:[%s1930_s12 + $0x4c] sm:$0xf0]  ;;  %v1646_v27 = vld [vmem:[%s1930_s12 + $0x44] sm:$0xf] }
  0x60   : > { %869 = vmatpush.bf16.msra.mxu0 %v1673_v49  ;;  %v1411_v28 = vld [vmem:[%s1930_s12 + $0x50] sm:$0xf0]  ;;  %v1417_v29 = vld [vmem:[%s1930_s12 + $0x48] sm:$0xf]  ;;  %v1649_v30 = vld [vmem:[%s1930_s12 + $0x54] sm:$0xf0]  ;;  %v1410_v33 = vor.u32 %v1648_v26, %v1409_v25 }
  0x61   : > { %918 = vmatpush.bf16.msra.mxu1 %v1681_v50  ;;  %v1647_v31 = vld [vmem:[%s1930_s12 + $0x4c] sm:$0xf]  ;;  %v1419_v32 = vld [vmem:[%s1930_s12 + $0x58] sm:$0xf0]  ;;  %v1414_v34 = vor.u32 %v1646_v27, %v1411_v28  ;;  %v1418_v35 = vor.u32 %v1649_v30, %v1417_v29  ;;  %v1425_v37 = vld [vmem:[%s1930_s12 + $0x60] sm:$0xf] }
  0x62   : > { %967 = vmatpush.bf16.msra.mxu2 %v1689_v51  ;;  %v1422_v36 = vor.u32 %v1647_v31, %v1419_v32  ;;  %v1652_v38 = vld [vmem:[%s1930_s12 + $0x6c] sm:$0xf0]  ;;  %v1650_v39 = vld [vmem:[%s1930_s12 + $0x64] sm:$0xf]  ;;  %v1427_v40 = vld [vmem:[%s1930_s12 + $0x70] sm:$0xf0] }
  0x63   : > { %1016 = vmatpush.bf16.msra.mxu3 %v1697_v52  ;;  %v1433_v41 = vld [vmem:[%s1930_s12 + $0x68] sm:$0xf]  ;;  %v1653_v42 = vld [vmem:[%s1930_s12 + $0x74] sm:$0xf0]  ;;  %v1651_v43 = vld [vmem:[%s1930_s12 + $0x6c] sm:$0xf]  ;;  %v1426_v45 = vor.u32 %v1652_v38, %v1425_v37  ;;  %v1430_v46 = vor.u32 %v1650_v39, %v1427_v40 }
  0x64   : > { %870 = vmatpush.bf16.msra.mxu0 %v1672_v53  ;;  %v1435_v44 = vld [vmem:[%s1930_s12 + $0x78] sm:$0xf0]  ;;  %v1434_v47 = vor.u32 %v1653_v42, %v1433_v41  ;;  %v1441_v49 = vld [vmem:[%s1930_s12 + $0x80] sm:$0xf]  ;;  %v1656_v50 = vld [vmem:[%s1930_s12 + $0x8c] sm:$0xf0] }
  0x65   : > { %919 = vmatpush.bf16.msra.mxu1 %v1680_v54  ;;  %v1438_v48 = vor.u32 %v1651_v43, %v1435_v44  ;;  %v1654_v51 = vld [vmem:[%s1930_s12 + $0x84] sm:$0xf]  ;;  %v1443_v52 = vld [vmem:[%s1930_s12 + $0x90] sm:$0xf0]  ;;  %v1449_v53 = vld [vmem:[%s1930_s12 + $0x88] sm:$0xf] }
  0x66   : > { %968 = vmatpush.bf16.msra.mxu2 %v1688_v55  ;;  %v1657_v54 = vld [vmem:[%s1930_s12 + $0x94] sm:$0xf0]  ;;  %v1655_v55 = vld [vmem:[%s1930_s12 + $0x8c] sm:$0xf]  ;;  %v1465_v1 = vld [vmem:[%s1930_s12 + $0xa8] sm:$0xf] }
  0x67   : > { %1017 = vmatpush.bf16.msra.mxu3 %v1696_v56  ;;  %v1451_v56 = vld [vmem:[%s1930_s12 + $0x98] sm:$0xf0]  ;;  %v1661_v2 = vld [vmem:[%s1930_s12 + $0xb4] sm:$0xf0]  ;;  %v1659_v3 = vld [vmem:[%s1930_s12 + $0xac] sm:$0xf] }
  0x68   : > { %871 = vmatpush.bf16.msra.mxu0 %v1671_v57  ;;  %v1442_v57 = vor.u32 %v1656_v50, %v1441_v49  ;;  %v1467_v4 = vld [vmem:[%s1930_s12 + $0xb8] sm:$0xf0]  ;;  %v1466_v7 = vor.u32 %v1661_v2, %v1465_v1  ;;  %v1481_v13 = vld [vmem:[%s1930_s12 + $0xc8] sm:$0xf]  ;;  %v1665_v14 = vld [vmem:[%s1930_s12 + $0xd4] sm:$0xf0] }
  0x69   : > { %920 = vmatpush.bf16.msra.mxu1 %v1679_v58  ;;  %v1446_v58 = vor.u32 %v1654_v51, %v1443_v52  ;;  %v1470_v8 = vor.u32 %v1659_v3, %v1467_v4  ;;  %v1663_v15 = vld [vmem:[%s1930_s12 + $0xcc] sm:$0xf]  ;;  %v1483_v16 = vld [vmem:[%s1930_s12 + $0xd8] sm:$0xf0]  ;;  %v1482_v19 = vor.u32 %v1665_v14, %v1481_v13  ;;  %v1497_v25 = vld [vmem:[%s1930_s12 + $0xe8] sm:$0xf] }
  0x6a   : > { %969 = vmatpush.bf16.msra.mxu2 %v1687_v59  ;;  %v1450_v59 = vor.u32 %v1657_v54, %v1449_v53  ;;  %v1486_v20 = vor.u32 %v1663_v15, %v1483_v16  ;;  %v1669_v26 = vld [vmem:[%s1930_s12 + $0xf4] sm:$0xf0]  ;;  %v1667_v27 = vld [vmem:[%s1930_s12 + $0xec] sm:$0xf]  ;;  %v1499_v28 = vld [vmem:[%s1930_s12 + $0xf8] sm:$0xf0] }
  0x6b   : > { %1018 = vmatpush.bf16.msra.mxu3 %v1695_v60  ;;  %v1454_v60 = vor.u32 %v1655_v55, %v1451_v56  ;;  %v1498_v31 = vor.u32 %v1669_v26, %v1497_v25  ;;  %v1502_v32 = vor.u32 %v1667_v27, %v1499_v28  ;;  %v401_v41 = vld [vmem:[#allocation2 + $0x30] sm:$0xff]  ;;  %v402_v50 = vld [vmem:[#allocation2] sm:$0xff]  ;;  %v404_v4 = vld [vmem:[#allocation2 + $0x18] sm:$0xff] }
  0x6c   : > { %872 = vmatpush.bf16.msra.mxu0 %v1670_v61  ;;  %v1457_v61 = vld [vmem:[%s1930_s12 + $0xa0] sm:$0xf]  ;;  %v405_v13 = vld [vmem:[#allocation2 + $0x50] sm:$0xff] }
  0x6d   : > { %921 = vmatpush.bf16.msra.mxu1 %v1678_v62  ;;  %v1660_v62 = vld [vmem:[%s1930_s12 + $0xac] sm:$0xf0] }
  0x6e   : > { %970 = vmatpush.bf16.msra.mxu2 %v1686_v63  ;;  %v1658_v63 = vld [vmem:[%s1930_s12 + $0xa4] sm:$0xf]  ;;  %v1458_v5 = vor.u32 %v1660_v62, %v1457_v61 }
  0x6f   : > { %1019 = vmatpush.bf16.msra.mxu3 %v1694_v0  ;;  %873 = vmatmul.bf16.vlgmr.msra.gmra.mxu0 %v1378_v9  ;;  %v1459_v0 = vld [vmem:[%s1930_s12 + $0xb0] sm:$0xf0]  ;;  %v1473_v9 = vld [vmem:[%s1930_s12 + $0xc0] sm:$0xf] }
  0x70   : > { %922 = vmatmul.bf16.vlgmr.msra.gmra.mxu1 %v1382_v10  ;;  %v1462_v6 = vor.u32 %v1658_v63, %v1459_v0  ;;  %v1664_v10 = vld [vmem:[%s1930_s12 + $0xcc] sm:$0xf0] }
  0x71   : > { %971 = vmatmul.bf16.vlgmr.msra.gmra.mxu2 %v1386_v11  ;;  %v1662_v11 = vld [vmem:[%s1930_s12 + $0xc4] sm:$0xf]  ;;  %v1474_v17 = vor.u32 %v1664_v10, %v1473_v9 }
  0x72   : > { %1020 = vmatmul.bf16.vlgmr.msra.gmra.mxu3 %v1390_v12  ;;  %v1475_v12 = vld [vmem:[%s1930_s12 + $0xd0] sm:$0xf0] }
  0x73   : > { %v1478_v18 = vor.u32 %v1662_v11, %v1475_v12 }
  0x7f   : > { %878 = vmatmul.bf16.gmra.mxu0 %v1394_v21  ;;  %v1489_v21 = vld [vmem:[%s1930_s12 + $0xe0] sm:$0xf] }
  0x80   : > { %927 = vmatmul.bf16.gmra.mxu1 %v1398_v22  ;;  %v1668_v22 = vld [vmem:[%s1930_s12 + $0xec] sm:$0xf0] }
  0x81   : > { %976 = vmatmul.bf16.gmra.mxu2 %v1402_v23  ;;  %v1666_v23 = vld [vmem:[%s1930_s12 + $0xe4] sm:$0xf]  ;;  %v1490_v29 = vor.u32 %v1668_v22, %v1489_v21  ;;  %v406_v22 = vld [vmem:[#allocation2 + $0x68] sm:$0xff] }
  0x82   : > { %1025 = vmatmul.bf16.gmra.mxu3 %v1406_v24  ;;  %v1491_v24 = vld [vmem:[%s1930_s12 + $0xf0] sm:$0xf0] }
  0x83   : > { %v1494_v30 = vor.u32 %v1666_v23, %v1491_v24 }
  0x8f   : > { %883 = vmatmul.bf16.gmra.mxu0 %v1410_v33 }
  0x90   : > { %932 = vmatmul.bf16.gmra.mxu1 %v1414_v34 }
  0x91   : > { %981 = vmatmul.bf16.gmra.mxu2 %v1418_v35 }
  0x92   : > { %1030 = vmatmul.bf16.gmra.mxu3 %v1422_v36 }
  0x9f   : > { %888 = vmatmul.bf16.gmra.mxu0 %v1426_v45 }
  0xa0   : > { %937 = vmatmul.bf16.gmra.mxu1 %v1430_v46 }
  0xa1   : > { %986 = vmatmul.bf16.gmra.mxu2 %v1434_v47 }
  0xa2   : > { %1035 = vmatmul.bf16.gmra.mxu3 %v1438_v48 }
  0xaf   : > { %893 = vmatmul.bf16.gmra.mxu0 %v1442_v57 }
  0xb0   : > { %942 = vmatmul.bf16.gmra.mxu1 %v1446_v58 }
  0xb1   : > { %991 = vmatmul.bf16.gmra.mxu2 %v1450_v59  ;;  %v403_v59 = vld [vmem:[#allocation2 + $0x58] sm:$0xff] }
  0xb2   : > { %1040 = vmatmul.bf16.gmra.mxu3 %v1454_v60 }
  0xbf   : > { %898 = vmatmul.bf16.gmra.mxu0 %v1458_v5 }
  0xc0   : > { %947 = vmatmul.bf16.gmra.mxu1 %v1462_v6 }
  0xc1   : > { %996 = vmatmul.bf16.gmra.mxu2 %v1466_v7 }
  0xc2   : > { %1045 = vmatmul.bf16.gmra.mxu3 %v1470_v8 }
  0xcf   : > { %903 = vmatmul.bf16.gmra.mxu0 %v1474_v17 }
  0xd0   : > { %952 = vmatmul.bf16.gmra.mxu1 %v1478_v18 }
  0xd1   : > { %1001 = vmatmul.bf16.gmra.mxu2 %v1482_v19 }
  0xd2   : > { %1050 = vmatmul.bf16.gmra.mxu3 %v1486_v20 }
  0xdf   : > { %908 = vmatmul.bf16.gmra.mxu0 %v1490_v29 }
  0xe0   : > { %957 = vmatmul.bf16.gmra.mxu1 %v1494_v30 }
  0xe1   : > { %1006 = vmatmul.bf16.gmra.mxu2 %v1498_v31  ;;  %v407_v31 = vld [vmem:[#allocation2 + $0x8] sm:$0xff] }
  0xe2   : > { %1055 = vmatmul.bf16.gmra.mxu3 %v1502_v32 }
  0xec   : > { %v874_v33 = vpop.f32.mrf.mxu0 }
  0xed   : > { %v923_v34 = vpop.f32.mrf.mxu1 }
  0xee   : > { %v924_v35 = vadd.f32 %v923_v34, %v874_v33 }
  0xf4   : > { %v972_v36 = vpop.f32.mrf.mxu2  ;;  %v876_v39 = vpop.f32.mrf.mxu0 }
  0xf5   : > { %v1021_v37 = vpop.f32.mrf.mxu3  ;;  %v973_v38 = vadd.f32 %v972_v36, %v924_v35  ;;  %v925_v40 = vpop.f32.mrf.mxu1 }
  0xf6   : > { %v926_v44 = vadd.f32 %v925_v40, %v876_v39  ;;  %v408_v40 = vld [vmem:[#allocation2 + $0x48] sm:$0xff] }
  0xf7   : > { %v1022_v42 = vadd.f32 %v1021_v37, %v973_v38 }
  0xf9   : > { %v1061_v43 = vadd.f32 %v1022_v42, %v401_v41 }
  0xfb   : > { %1077 = vst [vmem:[#allocation2 + $0x30] sm:$0xff] %v1061_v43 }
  0xfc   : > { %v974_v45 = vpop.f32.mrf.mxu2  ;;  %v879_v48 = vpop.f32.mrf.mxu0 }
  0xfd   : > { %v1023_v46 = vpop.f32.mrf.mxu3  ;;  %v975_v47 = vadd.f32 %v974_v45, %v926_v44  ;;  %v928_v49 = vpop.f32.mrf.mxu1 }
  0xfe   : > { %v929_v53 = vadd.f32 %v928_v49, %v879_v48  ;;  %v409_v49 = vld [vmem:[#allocation2 + $0x40] sm:$0xff] }
  0xff   : > { %v1024_v51 = vadd.f32 %v1023_v46, %v975_v47 }
 0x101   : > { %v1062_v52 = vadd.f32 %v1024_v51, %v402_v50 }
 0x103   : > { %1078 = vst [vmem:[#allocation2] sm:$0xff] %v1062_v52 }
 0x104   : > { %v977_v54 = vpop.f32.mrf.mxu2  ;;  %v881_v57 = vpop.f32.mrf.mxu0 }
 0x105   : > { %v1026_v55 = vpop.f32.mrf.mxu3  ;;  %v978_v56 = vadd.f32 %v977_v54, %v929_v53  ;;  %v930_v58 = vpop.f32.mrf.mxu1 }
 0x106   : > { %v931_v62 = vadd.f32 %v930_v58, %v881_v57  ;;  %v410_v58 = vld [vmem:[#allocation2 + $0x20] sm:$0xff] }
 0x107   : > { %v1027_v60 = vadd.f32 %v1026_v55, %v978_v56 }
 0x109   : > { %v1063_v61 = vadd.f32 %v1027_v60, %v403_v59 }
 0x10b   : > { %1079 = vst [vmem:[#allocation2 + $0x58] sm:$0xff] %v1063_v61 }
 0x10c   : > { %v979_v63 = vpop.f32.mrf.mxu2  ;;  %v884_v2 = vpop.f32.mrf.mxu0 }
 0x10d   : > { %v1028_v0 = vpop.f32.mrf.mxu3  ;;  %v980_v1 = vadd.f32 %v979_v63, %v931_v62  ;;  %v933_v3 = vpop.f32.mrf.mxu1 }
 0x10e   : > { %v934_v7 = vadd.f32 %v933_v3, %v884_v2  ;;  %v411_v3 = vld [vmem:[#allocation2 + $0x10] sm:$0xff] }
 0x10f   : > { %v1029_v5 = vadd.f32 %v1028_v0, %v980_v1 }
 0x111   : > { %v1064_v6 = vadd.f32 %v1029_v5, %v404_v4 }
 0x113   : > { %1080 = vst [vmem:[#allocation2 + $0x18] sm:$0xff] %v1064_v6 }
 0x114   : > { %v982_v8 = vpop.f32.mrf.mxu2  ;;  %v886_v11 = vpop.f32.mrf.mxu0 }
 0x115   : > { %v1031_v9 = vpop.f32.mrf.mxu3  ;;  %v983_v10 = vadd.f32 %v982_v8, %v934_v7  ;;  %v935_v12 = vpop.f32.mrf.mxu1 }
 0x116   : > { %v936_v16 = vadd.f32 %v935_v12, %v886_v11  ;;  %v412_v12 = vld [vmem:[#allocation2 + $0x38] sm:$0xff] }
 0x117   : > { %v1032_v14 = vadd.f32 %v1031_v9, %v983_v10 }
 0x119   : > { %v1065_v15 = vadd.f32 %v1032_v14, %v405_v13 }
 0x11b   : > { %1081 = vst [vmem:[#allocation2 + $0x50] sm:$0xff] %v1065_v15 }
 0x11c   : > { %v984_v17 = vpop.f32.mrf.mxu2  ;;  %v889_v20 = vpop.f32.mrf.mxu0 }
 0x11d   : > { %v1033_v18 = vpop.f32.mrf.mxu3  ;;  %v985_v19 = vadd.f32 %v984_v17, %v936_v16  ;;  %v938_v21 = vpop.f32.mrf.mxu1 }
 0x11e   : > { %v939_v25 = vadd.f32 %v938_v21, %v889_v20  ;;  %v413_v21 = vld [vmem:[#allocation2 + $0x60] sm:$0xff] }
 0x11f   : > { %v1034_v23 = vadd.f32 %v1033_v18, %v985_v19 }
 0x121   : > { %v1066_v24 = vadd.f32 %v1034_v23, %v406_v22 }
 0x123   : > { %1082 = vst [vmem:[#allocation2 + $0x68] sm:$0xff] %v1066_v24 }
 0x124   : > { %v987_v26 = vpop.f32.mrf.mxu2  ;;  %v891_v29 = vpop.f32.mrf.mxu0 }
 0x125   : > { %v1036_v27 = vpop.f32.mrf.mxu3  ;;  %v988_v28 = vadd.f32 %v987_v26, %v939_v25  ;;  %v940_v30 = vpop.f32.mrf.mxu1 }
 0x126   : > { %v941_v34 = vadd.f32 %v940_v30, %v891_v29 }
 0x127   : > { %v1037_v32 = vadd.f32 %v1036_v27, %v988_v28  ;;  %v414_v28 = vld [vmem:[#allocation2 + $0x70] sm:$0xff] }
 0x129   : > { %v1067_v33 = vadd.f32 %v1037_v32, %v407_v31 }
 0x12b   : > { %1083 = vst [vmem:[#allocation2 + $0x8] sm:$0xff] %v1067_v33 }
 0x12c   : > { %v989_v35 = vpop.f32.mrf.mxu2  ;;  %v894_v38 = vpop.f32.mrf.mxu0 }
 0x12d   : > { %v1038_v36 = vpop.f32.mrf.mxu3  ;;  %v990_v37 = vadd.f32 %v989_v35, %v941_v34  ;;  %v943_v39 = vpop.f32.mrf.mxu1 }
 0x12e   : > { %v944_v43 = vadd.f32 %v943_v39, %v894_v38 }
 0x12f   : > { %v1039_v41 = vadd.f32 %v1038_v36, %v990_v37  ;;  %v415_v37 = vld [vmem:[#allocation2 + $0x78] sm:$0xff] }
 0x131   : > { %v1068_v42 = vadd.f32 %v1039_v41, %v408_v40 }
 0x133   : > { %1084 = vst [vmem:[#allocation2 + $0x48] sm:$0xff] %v1068_v42 }
 0x134   : > { %v992_v44 = vpop.f32.mrf.mxu2  ;;  %v896_v47 = vpop.f32.mrf.mxu0 }
 0x135   : > { %v1041_v45 = vpop.f32.mrf.mxu3  ;;  %v993_v46 = vadd.f32 %v992_v44, %v944_v43  ;;  %v945_v48 = vpop.f32.mrf.mxu1 }
 0x136   : > { %v946_v52 = vadd.f32 %v945_v48, %v896_v47 }
 0x137   : > { %v1042_v50 = vadd.f32 %v1041_v45, %v993_v46  ;;  %v416_v45 = vld [vmem:[#allocation2 + $0x28] sm:$0xff] }
 0x139   : > { %v1069_v51 = vadd.f32 %v1042_v50, %v409_v49 }
 0x13b   : > { %1085 = vst [vmem:[#allocation2 + $0x40] sm:$0xff] %v1069_v51 }
 0x13c   : > { %v994_v53 = vpop.f32.mrf.mxu2  ;;  %v899_v56 = vpop.f32.mrf.mxu0 }
 0x13d   : > { %v1043_v54 = vpop.f32.mrf.mxu3  ;;  %v995_v55 = vadd.f32 %v994_v53, %v946_v52  ;;  %v948_v57 = vpop.f32.mrf.mxu1 }
 0x13e   : > { %v949_v61 = vadd.f32 %v948_v57, %v899_v56 }
 0x13f   : > { %v1044_v59 = vadd.f32 %v1043_v54, %v995_v55 }
 0x141   : > { %v1070_v60 = vadd.f32 %v1044_v59, %v410_v58 }
 0x143   : > { %1086 = vst [vmem:[#allocation2 + $0x20] sm:$0xff] %v1070_v60 }
 0x144   : > { %v997_v62 = vpop.f32.mrf.mxu2  ;;  %v901_v1 = vpop.f32.mrf.mxu0 }
 0x145   : > { %v1046_v63 = vpop.f32.mrf.mxu3  ;;  %v998_v0 = vadd.f32 %v997_v62, %v949_v61  ;;  %v950_v2 = vpop.f32.mrf.mxu1 }
 0x146   : > { %v951_v6 = vadd.f32 %v950_v2, %v901_v1 }
 0x147   : > { %v1047_v4 = vadd.f32 %v1046_v63, %v998_v0 }
 0x149   : > { %v1071_v5 = vadd.f32 %v1047_v4, %v411_v3 }
 0x14b   : > { %1087 = vst [vmem:[#allocation2 + $0x10] sm:$0xff] %v1071_v5 }
 0x14c   : > { %v999_v7 = vpop.f32.mrf.mxu2  ;;  %v904_v10 = vpop.f32.mrf.mxu0 }
 0x14d   : > { %v1048_v8 = vpop.f32.mrf.mxu3  ;;  %v1000_v9 = vadd.f32 %v999_v7, %v951_v6  ;;  %v953_v11 = vpop.f32.mrf.mxu1 }
 0x14e   : > { %v954_v15 = vadd.f32 %v953_v11, %v904_v10 }
 0x14f   : > { %v1049_v13 = vadd.f32 %v1048_v8, %v1000_v9 }
 0x151   : > { %v1072_v14 = vadd.f32 %v1049_v13, %v412_v12 }
 0x153   : > { %1088 = vst [vmem:[#allocation2 + $0x38] sm:$0xff] %v1072_v14 }
 0x154   : > { %v1002_v16 = vpop.f32.mrf.mxu2  ;;  %v906_v19 = vpop.f32.mrf.mxu0 }
 0x155   : > { %v1051_v17 = vpop.f32.mrf.mxu3  ;;  %v1003_v18 = vadd.f32 %v1002_v16, %v954_v15  ;;  %v955_v20 = vpop.f32.mrf.mxu1 }
 0x156   : > { %v956_v24 = vadd.f32 %v955_v20, %v906_v19 }
 0x157   : > { %v1052_v22 = vadd.f32 %v1051_v17, %v1003_v18 }
 0x159   : > { %v1073_v23 = vadd.f32 %v1052_v22, %v413_v21 }
 0x15b   : > { %1089 = vst [vmem:[#allocation2 + $0x60] sm:$0xff] %v1073_v23 }
 0x15c   : > { %v1004_v25 = vpop.f32.mrf.mxu2  ;;  %v909_v29 = vpop.f32.mrf.mxu0 }
 0x15d   : > { %v1053_v26 = vpop.f32.mrf.mxu3  ;;  %v1005_v27 = vadd.f32 %v1004_v25, %v956_v24  ;;  %v958_v30 = vpop.f32.mrf.mxu1 }
 0x15e   : > { %v959_v33 = vadd.f32 %v958_v30, %v909_v29 }
 0x15f   : > { %v1054_v31 = vadd.f32 %v1053_v26, %v1005_v27 }
 0x161   : > { %v1074_v32 = vadd.f32 %v1054_v31, %v414_v28 }
 0x163   : > { %1090 = vst [vmem:[#allocation2 + $0x70] sm:$0xff] %v1074_v32 }
 0x164   : > { %v1007_v34 = vpop.f32.mrf.mxu2  ;;  %v911_v39 = vpop.f32.mrf.mxu0 }
 0x165   : > { %v1056_v35 = vpop.f32.mrf.mxu3  ;;  %v1008_v36 = vadd.f32 %v1007_v34, %v959_v33  ;;  %v960_v40 = vpop.f32.mrf.mxu1 }
 0x166   : > { %v961_v42 = vadd.f32 %v960_v40, %v911_v39 }
 0x167   : > { %v1057_v38 = vadd.f32 %v1056_v35, %v1008_v36 }
 0x169   : > { %v1075_v41 = vadd.f32 %v1057_v38, %v415_v37 }
 0x16b   : > { %1091 = vst [vmem:[#allocation2 + $0x78] sm:$0xff] %v1075_v41 }
 0x16c   : > { %v1009_v43 = vpop.f32.mrf.mxu2 }
 0x16d   : > { %v1010_v44 = vadd.f32 %v1009_v43, %v961_v42  ;;  %v1058_v46 = vpop.f32.mrf.mxu3 }
 0x16f   : > { %v1059_v47 = vadd.f32 %v1058_v46, %v1010_v44  ;;  %1096 = sbr.rel (%p1631_p11) target bundleno = 423 (0x1a7), region = 63 }
 0x171   : > { %v1076_v48 = vadd.f32 %v1059_v47, %v416_v45 }
 0x173   : > { %1092 = vst [vmem:[#allocation2 + $0x28] sm:$0xff] %v1076_v48 }
 0x174   : > { %v1097_v49 = vld [vmem:[#allocation2 + $0x30] sm:$0xff]  ;;  %v1098_v50 = vld [vmem:[#allocation2] sm:$0xff]  ;;  %v1099_v52 = vld [vmem:[#allocation2 + $0x58] sm:$0xff] }
 0x175   : > { %v1743_v51 = vld [vmem:[%s2101_s2] ss:$0 sm:$0xff]  ;;  %v1100_v53 = vld [vmem:[#allocation2 + $0x18] sm:$0xff]  ;;  %v1101_v56 = vld [vmem:[#allocation2 + $0x50] sm:$0xff] }
 0x176   : > { %v1117_v54 = vadd.f32 %v1743_v51, %v1097_v49  ;;  %v1118_v55 = vadd.f32 %v1743_v51, %v1098_v50  ;;  %v1102_v57 = vld [vmem:[#allocation2 + $0x68] sm:$0xff]  ;;  %v1119_v58 = vadd.f32 %v1743_v51, %v1099_v52  ;;  %v1120_v60 = vadd.f32 %v1743_v51, %v1100_v53  ;;  %v1105_v2 = vld [vmem:[#allocation2 + $0x40] sm:$0xff]  ;;  %v1107_v8 = vld [vmem:[#allocation2 + $0x10] sm:$0xff] }
 0x177   : > { %v1103_v59 = vld [vmem:[#allocation2 + $0x8] sm:$0xff]  ;;  %v1121_v62 = vadd.f32 %v1743_v51, %v1101_v56  ;;  %v1122_v3 = vadd.f32 %v1743_v51, %v1102_v57  ;;  %v1106_v4 = vld [vmem:[#allocation2 + $0x20] sm:$0xff]  ;;  %v1108_v10 = vld [vmem:[#allocation2 + $0x38] sm:$0xff]  ;;  %v1125_v11 = vadd.f32 %v1743_v51, %v1105_v2  ;;  %v1127_v18 = vadd.f32 %v1743_v51, %v1107_v8 }
 0x178   : > { %1198 = vst [vmem:[%s2102_s3] sm:$0xff] %v1117_v54  ;;  %v1104_v61 = vld [vmem:[#allocation2 + $0x48] sm:$0xff]  ;;  %v1133_v63 = vadd.f32 %v1118_v55, %v1117_v54  ;;  %v1154_v0 = vmul.f32 %v1117_v54, %v1117_v54  ;;  %v1155_v1 = vmul.f32 %v1118_v55, %v1118_v55  ;;  %v1123_v5 = vadd.f32 %v1743_v51, %v1103_v59  ;;  %v1109_v15 = vld [vmem:[#allocation2 + $0x60] sm:$0xff]  ;;  %v1110_v17 = vld [vmem:[#allocation2 + $0x70] sm:$0xff] }
 0x179   : > { %1199 = vst [vmem:[%s2102_s3 + $0x8] sm:$0xff] %v1118_v55  ;;  %v1156_v7 = vmul.f32 %v1119_v58, %v1119_v58  ;;  %v1124_v9 = vadd.f32 %v1743_v51, %v1104_v61  ;;  %v1157_v13 = vmul.f32 %v1120_v60, %v1120_v60  ;;  %v1126_v16 = vadd.f32 %v1743_v51, %v1106_v4  ;;  %v1111_v22 = vld [vmem:[#allocation2 + $0x78] sm:$0xff] }
 0x17a   : > { %1200 = vst [vmem:[%s2102_s3 + $0x10] sm:$0xff] %v1119_v58  ;;  %v1134_v6 = vadd.f32 %v1133_v63, %v1119_v58  ;;  %v1170_v14 = vadd.f32 %v1155_v1, %v1154_v0  ;;  %v1158_v20 = vmul.f32 %v1121_v62, %v1121_v62  ;;  %v1128_v23 = vadd.f32 %v1743_v51, %v1108_v10  ;;  %v1112_v24 = vld [vmem:[#allocation2 + $0x28] sm:$0xff] }
 0x17b   : > { %1201 = vst [vmem:[%s2102_s3 + $0x18] sm:$0xff] %v1120_v60  ;;  %v1129_v25 = vadd.f32 %v1743_v51, %v1109_v15  ;;  %v1159_v27 = vmul.f32 %v1122_v3, %v1122_v3  ;;  %v1130_v29 = vadd.f32 %v1743_v51, %v1110_v17  ;;  %v1131_v30 = vadd.f32 %v1743_v51, %v1111_v22 }
 0x17c   : > { %1202 = vst [vmem:[%s2102_s3 + $0x20] sm:$0xff] %v1121_v62  ;;  %v1135_v12 = vadd.f32 %v1134_v6, %v1120_v60  ;;  %v1171_v21 = vadd.f32 %v1170_v14, %v1156_v7  ;;  %v1160_v32 = vmul.f32 %v1123_v5, %v1123_v5  ;;  %v1132_v34 = vadd.f32 %v1743_v51, %v1112_v24 }
 0x17d   : > { %1203 = vst [vmem:[%s2102_s3 + $0x28] sm:$0xff] %v1122_v3  ;;  %v1161_v36 = vmul.f32 %v1124_v9, %v1124_v9  ;;  %v1162_v39 = vmul.f32 %v1125_v11, %v1125_v11  ;;  %v1163_v42 = vmul.f32 %v1126_v16, %v1126_v16  ;;  %v1164_v45 = vmul.f32 %v1127_v18, %v1127_v18 }
 0x17e   : > { %1204 = vst [vmem:[%s2102_s3 + $0x30] sm:$0xff] %v1123_v5  ;;  %v1136_v19 = vadd.f32 %v1135_v12, %v1121_v62  ;;  %v1172_v28 = vadd.f32 %v1171_v21, %v1157_v13  ;;  %v1165_v48 = vmul.f32 %v1128_v23, %v1128_v23  ;;  %v1166_v51 = vmul.f32 %v1129_v25, %v1129_v25 }
 0x17f   : > { %1205 = vst [vmem:[%s2102_s3 + $0x38] sm:$0xff] %v1124_v9  ;;  %v1167_v54 = vmul.f32 %v1130_v29, %v1130_v29  ;;  %v1168_v57 = vmul.f32 %v1131_v30, %v1131_v30  ;;  %v1169_v60 = vmul.f32 %v1132_v34, %v1132_v34  ;;  %v1191_v4 = vlaneseq }
 0x180   : > { %1206 = vst [vmem:[%s2102_s3 + $0x40] sm:$0xff] %v1125_v11  ;;  %v1137_v26 = vadd.f32 %v1136_v19, %v1122_v3  ;;  %v1173_v33 = vadd.f32 %v1172_v28, %v1158_v20 }
 0x181   : > { %1207 = vst [vmem:[%s2102_s3 + $0x48] sm:$0xff] %v1126_v16 }
 0x182   : > { %1208 = vst [vmem:[%s2102_s3 + $0x50] sm:$0xff] %v1127_v18  ;;  %v1138_v31 = vadd.f32 %v1137_v26, %v1123_v5  ;;  %v1174_v37 = vadd.f32 %v1173_v33, %v1159_v27 }
 0x183   : > { %1209 = vst [vmem:[%s2102_s3 + $0x58] sm:$0xff] %v1128_v23 }
 0x184   : > { %1210 = vst [vmem:[%s2102_s3 + $0x60] sm:$0xff] %v1129_v25  ;;  %v1139_v35 = vadd.f32 %v1138_v31, %v1124_v9  ;;  %v1175_v40 = vadd.f32 %v1174_v37, %v1160_v32  ;;  %v1192_v9 = vshrl.u32 %v1191_v4, 7 }
 0x185   : > { %1211 = vst [vmem:[%s2102_s3 + $0x68] sm:$0xff] %v1130_v29 }
 0x186   : > { %1212 = vst [vmem:[%s2102_s3 + $0x70] sm:$0xff] %v1131_v30  ;;  %v1140_v38 = vadd.f32 %v1139_v35, %v1125_v11  ;;  %v1176_v43 = vadd.f32 %v1175_v40, %v1161_v36  ;;  %vm1194_vm0 = vcmp.eq.s32.totalorder %v1192_v9, 1  ;;  %vm1193_vm1 = vcmp.eq.s32.totalorder %v1192_v9, 0 }
 0x187   : > { %1213 = vst [vmem:[%s2102_s3 + $0x78] sm:$0xff] %v1132_v34 }
 0x188   : > { %v1141_v41 = vadd.f32 %v1140_v38, %v1126_v16  ;;  %v1177_v46 = vadd.f32 %v1176_v43, %v1162_v39 }
 0x18a   : > { %v1142_v44 = vadd.f32 %v1141_v41, %v1127_v18  ;;  %v1178_v49 = vadd.f32 %v1177_v46, %v1163_v42 }
 0x18c   : > { %v1143_v47 = vadd.f32 %v1142_v44, %v1128_v23  ;;  %v1179_v52 = vadd.f32 %v1178_v49, %v1164_v45 }
 0x18e   : > { %v1144_v50 = vadd.f32 %v1143_v47, %v1129_v25  ;;  %v1180_v55 = vadd.f32 %v1179_v52, %v1165_v48 }
 0x190   : > { %v1145_v53 = vadd.f32 %v1144_v50, %v1130_v29  ;;  %v1181_v58 = vadd.f32 %v1180_v55, %v1166_v51 }
 0x192   : > { %v1146_v56 = vadd.f32 %v1145_v53, %v1131_v30  ;;  %v1182_v61 = vadd.f32 %v1181_v58, %v1167_v54 }
 0x194   : > { %v1147_v59 = vadd.f32 %v1146_v56, %v1132_v34  ;;  %v1183_v63 = vadd.f32 %v1182_v61, %v1168_v57 }
 0x196   : > { %v1148_v62 = vrot.slane %v1147_v59, 4  ;;  %v1184_v1 = vadd.f32 %v1183_v63, %v1169_v60 }
 0x198   : > { %v1149_v0 = vadd.f32 %v1148_v62, %v1147_v59  ;;  %v1185_v3 = vrot.slane %v1184_v1, 4 }
 0x19a   : > { %v1150_v2 = vrot.slane %v1149_v0, 2  ;;  %v1186_v6 = vadd.f32 %v1185_v3, %v1184_v1 }
 0x19c   : > { %v1151_v5 = vadd.f32 %v1150_v2, %v1149_v0  ;;  %v1187_v7 = vrot.slane %v1186_v6, 2 }
 0x19e   : > { %v1152_v8 = vrot.slane %v1151_v5, 1  ;;  %v1188_v10 = vadd.f32 %v1187_v7, %v1186_v6 }
 0x1a0   : > { %v1189_v11 = vrot.slane %v1188_v10, 1  ;;  %v1153_v12 = vadd.f32 %v1152_v8, %v1151_v5 }
 0x1a2   : > { %v1190_v13 = vadd.f32 %v1189_v11, %v1188_v10 }
 0x1a4   : > { %v1195_v14 = vsel %vm1194_vm0, %v1190_v13, 0.0 }
 0x1a5   : > { %v1196_v15 = vsel %vm1193_vm1, %v1153_v12, %v1195_v14 }
 0x1a6   : > { %1197 = vst [vmem:[%s2103_s4] sm:$0xff] %v1196_v15 }
 0x1a7 PF: > { %s15_s19 = sadd.s32 1, %s1782_s19   ;;  %s2104_s15 = smov %s1770_s16 }
 0x1a8   : > { %p12_p12 = scmp.ge.s32.totalorder %s15_s19, 4   ;;  %s2105_s16 = smov %s1845_s23 }
 0x1a9   : > { %s2106_s17 = smov %s1778_s18  ;;  %s2107_s18 = smov %s2109_s20 }
 0x1aa   :  { %14 = sbr.rel (!%p12_p12) target bundleno = 3 (0x3), region = 116 }

// kernel: _lambda_.10
= control target key start
LH: loop header
LB: loop body
LE: loop exit
PB: predicated region body
PF: predicated region fallthrough
CT: control target
= control target key end

     0   :  { %s338_s0 = inlined_call_operand.vmem [shape: f32[128,128], index: 0, kind: input, shape index: {}]   ;;  %s339_s1 = inlined_call_operand.vmem [shape: f32[1,128], index: 1, kind: input, shape index: {}]   ;;  %s340_s2 = inlined_call_operand.vmem [shape: f32[1,128], index: 2, kind: input, shape index: {}]   ;;  %s341_s3 = inlined_call_operand.vmem [shape: bf16[128,128], index: 3, kind: output, shape index: {}]  }
   0x1   :  { %v14_v0 = vld [vmem:[%s338_s0] sm:$0xff]  ;;  %v15_v1 = vld [vmem:[%s338_s0 + $0x8] sm:$0xff]  ;;  %v16_v4 = vld [vmem:[%s338_s0 + $0x10] sm:$0xff] }
   0x2   :  { %v232_v2 = vld [vmem:[%s339_s1] ss:$0 sm:$0xff]  ;;  %v17_v5 = vld [vmem:[%s338_s0 + $0x18] sm:$0xff]  ;;  %v19_v11 = vld [vmem:[%s338_s0 + $0x28] sm:$0xff] }
   0x3   :  { %v237_v3 = vld [vmem:[%s340_s2] ss:$0 sm:$0xff]  ;;  %v34_v7 = vmul.f32 %v232_v2, %v14_v0  ;;  %v35_v8 = vmul.f32 %v232_v2, %v15_v1  ;;  %v36_v9 = vmul.f32 %v232_v2, %v16_v4  ;;  %v37_v10 = vmul.f32 %v232_v2, %v17_v5  ;;  %v20_v12 = vld [vmem:[%s338_s0 + $0x30] sm:$0xff]  ;;  %v21_v13 = vld [vmem:[%s338_s0 + $0x38] sm:$0xff] }
   0x4   :  { %v18_v6 = vld [vmem:[%s338_s0 + $0x20] sm:$0xff]  ;;  %v39_v15 = vmul.f32 %v232_v2, %v19_v11  ;;  %v40_v16 = vmul.f32 %v232_v2, %v20_v12  ;;  %v41_v17 = vmul.f32 %v232_v2, %v21_v13  ;;  %v23_v37 = vld [vmem:[%s338_s0 + $0x48] sm:$0xff]  ;;  %v24_v38 = vld [vmem:[%s338_s0 + $0x50] sm:$0xff] }
   0x5   :  { %v38_v14 = vmul.f32 %v232_v2, %v18_v6  ;;  %v54_v18 = vadd.f32 %v237_v3, %v34_v7  ;;  %v55_v19 = vadd.f32 %v237_v3, %v35_v8  ;;  %v56_v20 = vadd.f32 %v237_v3, %v36_v9  ;;  %v22_v32 = vld [vmem:[%s338_s0 + $0x40] sm:$0xff]  ;;  %v25_v39 = vld [vmem:[%s338_s0 + $0x58] sm:$0xff]  ;;  %v27_v51 = vld [vmem:[%s338_s0 + $0x68] sm:$0xff] }
   0x6   :  { %v57_v21 = vadd.f32 %v237_v3, %v37_v10  ;;  %v59_v23 = vadd.f32 %v237_v3, %v39_v15  ;;  %v60_v24 = vadd.f32 %v237_v3, %v40_v16  ;;  %v61_v25 = vadd.f32 %v237_v3, %v41_v17  ;;  %v26_v50 = vld [vmem:[%s338_s0 + $0x60] sm:$0xff]  ;;  %v28_v63 = vld [vmem:[%s338_s0 + $0x70] sm:$0xff]  ;;  %v29_v0 = vld [vmem:[%s338_s0 + $0x78] sm:$0xff] }
   0x7   :  { %v58_v22 = vadd.f32 %v237_v3, %v38_v14  ;;  %vm70_vm0 = vcmp.gt.f32.partialorder %v54_v18, 0.0  ;;  %vm71_vm1 = vcmp.gt.f32.partialorder %v55_v19, 0.0  ;;  %v86_v26 = vmul.f32 0.2, %v54_v18 }
   0x8   :  { %v87_v27 = vmul.f32 0.2, %v55_v19  ;;  %vm72_vm2 = vcmp.gt.f32.partialorder %v56_v20, 0.0  ;;  %vm73_vm3 = vcmp.gt.f32.partialorder %v57_v21, 0.0  ;;  %v88_v28 = vmul.f32 0.2, %v56_v20 }
   0x9   :  { %v89_v29 = vmul.f32 0.2, %v57_v21  ;;  %v102_v30 = vsel %vm70_vm0, %v54_v18, %v86_v26  ;;  %vm74_vm4 = vcmp.gt.f32.partialorder %v58_v22, 0.0  ;;  %vm75_vm5 = vcmp.gt.f32.partialorder %v59_v23, 0.0 }
   0xa   :  { %v103_v31 = vsel %vm71_vm1, %v55_v19, %v87_v27  ;;  %v104_v34 = vsel %vm72_vm2, %v56_v20, %v88_v28  ;;  %v90_v36 = vmul.f32 0.2, %v58_v22  ;;  %v91_v41 = vmul.f32 0.2, %v59_v23 }
   0xb   :  { %v157_v33 = vpack.c.bf16 %v103_v31, %v102_v30  ;;  %v105_v35 = vsel %vm73_vm3, %v57_v21, %v89_v29  ;;  %vm76_vm6 = vcmp.gt.f32.partialorder %v60_v24, 0.0  ;;  %vm77_vm7 = vcmp.gt.f32.partialorder %v61_v25, 0.0 }
   0xc   :  { %v162_v40 = vpack.c.bf16 %v105_v35, %v104_v34  ;;  %v106_v42 = vsel %vm74_vm4, %v58_v22, %v90_v36  ;;  %v92_v43 = vmul.f32 0.2, %v60_v24  ;;  %v93_v44 = vmul.f32 0.2, %v61_v25 }
   0xd   :  { %158 = vst [vmem:[%s341_s3] sm:$0xff] %v157_v33   ;;  %v42_v45 = vmul.f32 %v232_v2, %v22_v32  ;;  %v107_v46 = vsel %vm75_vm5, %v59_v23, %v91_v41  ;;  %v43_v47 = vmul.f32 %v232_v2, %v23_v37  ;;  %v44_v48 = vmul.f32 %v232_v2, %v24_v38 }
   0xe   :  { %194 = vst [vmem:[%s341_s3 + $0x8] sm:$0xff] %v162_v40   ;;  %v45_v49 = vmul.f32 %v232_v2, %v25_v39  ;;  %v167_v52 = vpack.c.bf16 %v107_v46, %v106_v42  ;;  %v108_v53 = vsel %vm76_vm6, %v60_v24, %v92_v43  ;;  %v109_v54 = vsel %vm77_vm7, %v61_v25, %v93_v44 }
   0xf   :  { %v62_v55 = vadd.f32 %v237_v3, %v42_v45  ;;  %v172_v56 = vpack.c.bf16 %v109_v54, %v108_v53  ;;  %v63_v57 = vadd.f32 %v237_v3, %v43_v47  ;;  %v64_v58 = vadd.f32 %v237_v3, %v44_v48 }
  0x10   :  { %v65_v59 = vadd.f32 %v237_v3, %v45_v49  ;;  %195 = vst [vmem:[%s341_s3 + $0x10] sm:$0xff] %v167_v52   ;;  %v46_v61 = vmul.f32 %v232_v2, %v26_v50  ;;  %v47_v62 = vmul.f32 %v232_v2, %v27_v51  ;;  %v48_v10 = vmul.f32 %v232_v2, %v28_v63 }
  0x11   :  { %vm78_vm8 = vcmp.gt.f32.partialorder %v62_v55, 0.0  ;;  %v94_v60 = vmul.f32 0.2, %v62_v55  ;;  %196 = vst [vmem:[%s341_s3 + $0x18] sm:$0xff] %v172_v56   ;;  %vm79_vm9 = vcmp.gt.f32.partialorder %v63_v57, 0.0  ;;  %vm80_vm10 = vcmp.gt.f32.partialorder %v64_v58, 0.0 }
  0x12   :  { %v95_v1 = vmul.f32 0.2, %v63_v57  ;;  %vm81_vm11 = vcmp.gt.f32.partialorder %v65_v59, 0.0  ;;  %v96_v5 = vmul.f32 0.2, %v64_v58  ;;  %v66_v7 = vadd.f32 %v237_v3, %v46_v61 }
  0x13   :  { %v110_v4 = vsel %vm78_vm8, %v62_v55, %v94_v60  ;;  %v97_v6 = vmul.f32 0.2, %v65_v59  ;;  %v67_v9 = vadd.f32 %v237_v3, %v47_v62  ;;  %v49_v11 = vmul.f32 %v232_v2, %v29_v0 }
  0x14   :  { %v111_v8 = vsel %vm79_vm9, %v63_v57, %v95_v1  ;;  %v112_v13 = vsel %vm80_vm10, %v64_v58, %v96_v5  ;;  %vm82_vm12 = vcmp.gt.f32.partialorder %v66_v7, 0.0  ;;  %v98_v16 = vmul.f32 0.2, %v66_v7 }
  0x15   :  { %v177_v12 = vpack.c.bf16 %v111_v8, %v110_v4  ;;  %v113_v14 = vsel %vm81_vm11, %v65_v59, %v97_v6  ;;  %vm83_vm13 = vcmp.gt.f32.partialorder %v67_v9, 0.0  ;;  %v99_v17 = vmul.f32 0.2, %v67_v9 }
  0x16   :  { %v182_v15 = vpack.c.bf16 %v113_v14, %v112_v13  ;;  %v68_v18 = vadd.f32 %v237_v3, %v48_v10  ;;  %v69_v19 = vadd.f32 %v237_v3, %v49_v11  ;;  %v114_v2 = vsel %vm82_vm12, %v66_v7, %v98_v16 }
  0x17   :  { %197 = vst [vmem:[%s341_s3 + $0x20] sm:$0xff] %v177_v12   ;;  %v115_v20 = vsel %vm83_vm13, %v67_v9, %v99_v17 }
  0x18   :  { %198 = vst [vmem:[%s341_s3 + $0x28] sm:$0xff] %v182_v15   ;;  %v187_v21 = vpack.c.bf16 %v115_v20, %v114_v2  ;;  %vm84_vm14 = vcmp.gt.f32.partialorder %v68_v18, 0.0  ;;  %vm85_vm15 = vcmp.gt.f32.partialorder %v69_v19, 0.0  ;;  %v100_v22 = vmul.f32 0.2, %v68_v18 }
  0x19   :  { %v101_v23 = vmul.f32 0.2, %v69_v19 }
  0x1a   :  { %199 = vst [vmem:[%s341_s3 + $0x30] sm:$0xff] %v187_v21   ;;  %v116_v24 = vsel %vm84_vm14, %v68_v18, %v100_v22 }
  0x1b   :  { %v117_v25 = vsel %vm85_vm15, %v69_v19, %v101_v23 }
  0x1c   :  { %v192_v26 = vpack.c.bf16 %v117_v25, %v116_v24 }
  0x1e   :  { %200 = vst [vmem:[%s341_s3 + $0x38] sm:$0xff] %v192_v26  }

// kernel: _lambda_.11
= control target key start
LH: loop header
LB: loop body
LE: loop exit
PB: predicated region body
PF: predicated region fallthrough
CT: control target
= control target key end

     0   :  { %s1723_s15 = smov 0   ;;  %s1725_s16 = smov 0   ;;  %s1999_s0 = inlined_call_operand.vmem [shape: bf16[32,2048], index: 0, kind: input, shape index: {}]   ;;  %s2000_s1 = inlined_call_operand.vmem [shape: bf16[2048,256], index: 1, kind: input, shape index: {}]   ;;  %s2001_s2 = inlined_call_operand.vmem [shape: f32[1,256], index: 2, kind: input, shape index: {}]   ;;  %s2002_s3 = inlined_call_operand.vmem [shape: f32[32,256], index: 3, kind: output, shape index: {0}]   ;;  %s2003_s4 = inlined_call_operand.vmem [shape: f32[1,8,256], index: 4, kind: output, shape index: {1}]  }
   0x1   :  { %s1727_s17 = smov 0   ;;  %s1729_s18 = smov 0  }
   0x2   :  { %s1731_s19 = smov 0  }
   0x3 LB: > { %s27_s20 = sadd.s32 1, %s1691_s18  ;;  %p50_p1 = scmp.ne.s32.totalorder %s1683_s16, %s1679_s15  ;;  %s1695_s19 = sphi %s1731_s19, %s15_s19   ;;  %s1691_s18 = sphi %s1729_s18, %s2007_s18   ;;  %s1687_s17 = sphi %s1727_s17, %s2006_s17   ;;  %s1683_s16 = sphi %s1725_s16, %s2005_s16   ;;  %s1679_s15 = sphi %s1723_s15, %s2004_s15  }
   0x4   : > { %p28_p0 = scmp.ge.s32.totalorder %s27_s20, 4  ;;  %p51_p2 = scmp.eq.s32.totalorder %s1695_s19, 0 }
   0x5   : > { %s43_s22 = sadd.s32 1, %s1683_s16  ;;  %p1237_p5 = scmp.ge.s32.totalorder %s1695_s19, 4 }
   0x6   : > { %s2009_s20 = smov (%p28_p0, %s27_s20), 0  ;;  %p52_p3 = por %p51_p2, %p50_p1 }
   0x7   : > { %s39_s21 = ssub.s32 %s1691_s18, %s2009_s20  ;;  %194 = sbr.rel (%p1237_p5) target bundleno = 24 (0x18), region = 20 }
   0x8   : > { %p41_p4 = scmp.eq.s32.totalorder %s39_s21, 0 }
   0xa   : > { %s1758_s23 = scalar_select %p41_p4, %s1683_s16, %s43_s22  }
   0xc   : > { %197 = sbr.rel (!%p52_p3) target bundleno = 24 (0x18), region = 24  ;;  %s199_s24 = sand.u32 (%p52_p3), 1, %s1683_s16  }
   0xd   : > { %s1542_s25 = sshll.u32 (%p52_p3), %s1691_s18, 4  ;;  %s1238_s26 = sshll.u32 (%p52_p3), %s199_s24, 6 }
   0xe   : > { %s207_s29 = scalar_lea.vmem (%p52_p3), %s1999_s0, %s1542_s25  ;;  %s201_s30 = scalar_lea.vmem (%p52_p3), [#allocation3], %s1238_s26 }
   0xf   : > { %v220_v0 = vld [vmem:[%s207_s29] sm:$0xff] (%p52_p3)  ;;  %v222_v1 = vld [vmem:[%s207_s29 + $0x8] sm:$0xff] (%p52_p3) }
  0x10   : > { %v224_v2 = vld [vmem:[%s207_s29 + $0x40] sm:$0xff] (%p52_p3)  ;;  %221 = vst [vmem:[%s201_s30] sm:$0xff] (%p52_p3), %v220_v0  ;;  %v226_v3 = vld [vmem:[%s207_s29 + $0x48] sm:$0xff] (%p52_p3) }
  0x11   : > { %223 = vst [vmem:[%s201_s30 + $0x8] sm:$0xff] %v222_v1  ;;  %v228_v4 = vld [vmem:[%s207_s29 + $0x80] sm:$0xff]  ;;  %v230_v5 = vld [vmem:[%s207_s29 + $0x88] sm:$0xff] }
  0x12   : > { %225 = vst [vmem:[%s201_s30 + $0x10] sm:$0xff] %v224_v2  ;;  %v232_v6 = vld [vmem:[%s207_s29 + $0xc0] sm:$0xff]  ;;  %v234_v7 = vld [vmem:[%s207_s29 + $0xc8] sm:$0xff] }
  0x13   : > { %227 = vst [vmem:[%s201_s30 + $0x18] sm:$0xff] %v226_v3 }
  0x14   : > { %229 = vst [vmem:[%s201_s30 + $0x20] sm:$0xff] %v228_v4 }
  0x15   : > { %231 = vst [vmem:[%s201_s30 + $0x28] sm:$0xff] %v230_v5 }
  0x16   : > { %233 = vst [vmem:[%s201_s30 + $0x30] sm:$0xff] %v232_v6 }
  0x17   : > { %235 = vst [vmem:[%s201_s30 + $0x38] sm:$0xff] %v234_v7 }
  0x18 PF: > { %p1241_p6 = scmp.ge.s32.totalorder %s1695_s19, 1  ;;  %p255_p7 = scmp.lt.s32.totalorder %s1695_s19, 5 }
  0x1a   : > { %p256_p8 = pnand %p1241_p6, %p255_p7 }
  0x1b   : > { %s262_s5 = sand.u32 (!%p256_p8), 1, %s1679_s15   ;;  %s1243_s6 = sshll.u32 (!%p256_p8), %s1687_s17, 6 }
  0x1c   : > { %259 = sbr.rel (%p256_p8) target bundleno = 309 (0x135), region = 51  ;;  %s1242_s7 = sshll.u32 (!%p256_p8), %s262_s5, 6 }
  0x1d   : > { %p319_p9 = scmp.lt.s32.totalorder (!%p256_p8), %s1243_s6, 255  ;;  %s1775_s12 = scalar_lea.vmem (!%p256_p8), [#allocation3], %s1242_s7 }
  0x1e   : > { %p1246_p10 = scmp.ne.s32.totalorder (!%p256_p8), %s1687_s17, 0 }
  0x21   : > { %s2011_s6 = smov (!%p319_p9, %s1243_s6), 255  ;;  %359 = sbr.rel (%p1246_p10) target bundleno = 47 (0x2f), region = 59 }
  0x22   : > { %s1543_s8 = sshll.u32 %s2011_s6, 3 }
  0x23   : > { %s1773_s11 = scalar_lea.vmem %s2000_s1, %s1543_s8 }
  0x26   : > { %v1697_v8 = vmov 0.0  }
  0x27   : > { %360 = vst [vmem:[#allocation2 + $0x30] sm:$0xff] %v1697_v8 }
  0x28   : > { %361 = vst [vmem:[#allocation2] sm:$0xff] %v1697_v8 }
  0x29   : > { %362 = vst [vmem:[#allocation2 + $0x18] sm:$0xff] %v1697_v8 }
  0x2a   : > { %363 = vst [vmem:[#allocation2 + $0x10] sm:$0xff] %v1697_v8 }
  0x2b   : > { %364 = vst [vmem:[#allocation2 + $0x8] sm:$0xff] %v1697_v8 }
  0x2c   : > { %365 = vst [vmem:[#allocation2 + $0x20] sm:$0xff] %v1697_v8 }
  0x2d   : > { %366 = vst [vmem:[#allocation2 + $0x28] sm:$0xff] %v1697_v8 }
  0x2e   : > { %367 = vst [vmem:[#allocation2 + $0x38] sm:$0xff] %v1697_v8 }
  0x2f PF: > { %v1337_v9 = vld [vmem:[%s1773_s11 + $0x70] sm:$0xf]  ;;  %v1567_v10 = vld [vmem:[%s1773_s11 + $0x74] sm:$0xf0]  ;;  %v1329_v20 = vld [vmem:[%s1773_s11 + $0x60] sm:$0xf] }
  0x30   : > { %v1401_v11 = vld [vmem:[%s1773_s11 + $0xf0] sm:$0xf]  ;;  %v1338_v12 = vor.u32 %v1567_v10, %v1337_v9  ;;  %v1583_v13 = vld [vmem:[%s1773_s11 + $0xf4] sm:$0xf0]  ;;  %v1565_v22 = vld [vmem:[%s1773_s11 + $0x64] sm:$0xf0] }
  0x31   : > { %v1465_v14 = vld [vmem:[%s1773_s11 + $0x170] sm:$0xf]  ;;  %v1599_v15 = vld [vmem:[%s1773_s11 + $0x174] sm:$0xf0]  ;;  %v1402_v16 = vor.u32 %v1583_v13, %v1401_v11  ;;  %v1393_v23 = vld [vmem:[%s1773_s11 + $0xe0] sm:$0xf]  ;;  %v1330_v25 = vor.u32 %v1565_v22, %v1329_v20 }
  0x32   : > { %v1466_v17 = vor.u32 %v1599_v15, %v1465_v14  ;;  %v1529_v18 = vld [vmem:[%s1773_s11 + $0x1f0] sm:$0xf]  ;;  %v1615_v19 = vld [vmem:[%s1773_s11 + $0x1f4] sm:$0xf0]  ;;  %808 = vmatpush.bf16.msra.mxu0 %v1338_v12  ;;  %v1581_v24 = vld [vmem:[%s1773_s11 + $0xe4] sm:$0xf0] }
  0x33   : > { %v1530_v21 = vor.u32 %v1615_v19, %v1529_v18  ;;  %827 = vmatpush.bf16.msra.mxu1 %v1402_v16  ;;  %v1394_v26 = vor.u32 %v1581_v24, %v1393_v23  ;;  %v1457_v27 = vld [vmem:[%s1773_s11 + $0x160] sm:$0xf]  ;;  %v1597_v28 = vld [vmem:[%s1773_s11 + $0x164] sm:$0xf0]  ;;  %v1321_v32 = vld [vmem:[%s1773_s11 + $0x50] sm:$0xf] }
  0x34   : > { %846 = vmatpush.bf16.msra.mxu2 %v1466_v17  ;;  %v1521_v29 = vld [vmem:[%s1773_s11 + $0x1e0] sm:$0xf]  ;;  %v1458_v30 = vor.u32 %v1597_v28, %v1457_v27  ;;  %v1613_v31 = vld [vmem:[%s1773_s11 + $0x1e4] sm:$0xf0]  ;;  %v1563_v33 = vld [vmem:[%s1773_s11 + $0x54] sm:$0xf0] }
  0x35   : > { %865 = vmatpush.bf16.msra.mxu3 %v1530_v21  ;;  %v1522_v34 = vor.u32 %v1613_v31, %v1521_v29  ;;  %v1385_v35 = vld [vmem:[%s1773_s11 + $0xd0] sm:$0xf]  ;;  %v1579_v36 = vld [vmem:[%s1773_s11 + $0xd4] sm:$0xf0]  ;;  %v1322_v38 = vor.u32 %v1563_v33, %v1321_v32  ;;  %v1313_v44 = vld [vmem:[%s1773_s11 + $0x40] sm:$0xf] }
  0x36   : > { %v1449_v37 = vld [vmem:[%s1773_s11 + $0x150] sm:$0xf]  ;;  %809 = vmatpush.bf16.msra.mxu0 %v1330_v25  ;;  %v1595_v39 = vld [vmem:[%s1773_s11 + $0x154] sm:$0xf0]  ;;  %v1386_v42 = vor.u32 %v1579_v36, %v1385_v35  ;;  %v1561_v45 = vld [vmem:[%s1773_s11 + $0x44] sm:$0xf0] }
  0x37   : > { %v1513_v40 = vld [vmem:[%s1773_s11 + $0x1d0] sm:$0xf]  ;;  %v1611_v41 = vld [vmem:[%s1773_s11 + $0x1d4] sm:$0xf0]  ;;  %828 = vmatpush.bf16.msra.mxu1 %v1394_v26  ;;  %v1450_v43 = vor.u32 %v1595_v39, %v1449_v37  ;;  %v1377_v46 = vld [vmem:[%s1773_s11 + $0xc0] sm:$0xf]  ;;  %v1314_v53 = vor.u32 %v1561_v45, %v1313_v44 }
  0x38   : > { %847 = vmatpush.bf16.msra.mxu2 %v1458_v30  ;;  %v1514_v47 = vor.u32 %v1611_v41, %v1513_v40  ;;  %v1577_v48 = vld [vmem:[%s1773_s11 + $0xc4] sm:$0xf0]  ;;  %v1441_v49 = vld [vmem:[%s1773_s11 + $0x140] sm:$0xf]  ;;  %v1305_v56 = vld [vmem:[%s1773_s11 + $0x30] sm:$0xf] }
  0x39   : > { %866 = vmatpush.bf16.msra.mxu3 %v1522_v34  ;;  %v1593_v50 = vld [vmem:[%s1773_s11 + $0x144] sm:$0xf0]  ;;  %v1505_v51 = vld [vmem:[%s1773_s11 + $0x1c0] sm:$0xf]  ;;  %v1378_v54 = vor.u32 %v1577_v48, %v1377_v46  ;;  %v1559_v57 = vld [vmem:[%s1773_s11 + $0x34] sm:$0xf0] }
  0x3a   : > { %v1609_v52 = vld [vmem:[%s1773_s11 + $0x1c4] sm:$0xf0]  ;;  %810 = vmatpush.bf16.msra.mxu0 %v1322_v38  ;;  %v1442_v55 = vor.u32 %v1593_v50, %v1441_v49  ;;  %v1369_v58 = vld [vmem:[%s1773_s11 + $0xb0] sm:$0xf]  ;;  %v1575_v60 = vld [vmem:[%s1773_s11 + $0xb4] sm:$0xf0]  ;;  %v1306_v1 = vor.u32 %v1559_v57, %v1305_v56 }
  0x3b   : > { %829 = vmatpush.bf16.msra.mxu1 %v1386_v42  ;;  %v1506_v59 = vor.u32 %v1609_v52, %v1505_v51  ;;  %v1433_v61 = vld [vmem:[%s1773_s11 + $0x130] sm:$0xf]  ;;  %v1591_v62 = vld [vmem:[%s1773_s11 + $0x134] sm:$0xf0]  ;;  %v1370_v2 = vor.u32 %v1575_v60, %v1369_v58  ;;  %v1297_v4 = vld [vmem:[%s1773_s11 + $0x20] sm:$0xf] }
  0x3c   : > { %848 = vmatpush.bf16.msra.mxu2 %v1450_v43  ;;  %v1497_v63 = vld [vmem:[%s1773_s11 + $0x1b0] sm:$0xf]  ;;  %v1607_v0 = vld [vmem:[%s1773_s11 + $0x1b4] sm:$0xf0]  ;;  %v1434_v3 = vor.u32 %v1591_v62, %v1433_v61  ;;  %v1557_v5 = vld [vmem:[%s1773_s11 + $0x24] sm:$0xf0] }
  0x3d   : > { %867 = vmatpush.bf16.msra.mxu3 %v1514_v47  ;;  %v1361_v6 = vld [vmem:[%s1773_s11 + $0xa0] sm:$0xf]  ;;  %v1498_v7 = vor.u32 %v1607_v0, %v1497_v63  ;;  %v1573_v8 = vld [vmem:[%s1773_s11 + $0xa4] sm:$0xf0]  ;;  %v1298_v13 = vor.u32 %v1557_v5, %v1297_v4  ;;  %v1289_v16 = vld [vmem:[%s1773_s11 + $0x10] sm:$0xf] }
  0x3e   : > { %811 = vmatpush.bf16.msra.mxu0 %v1314_v53  ;;  %v1425_v9 = vld [vmem:[%s1773_s11 + $0x120] sm:$0xf]  ;;  %v1589_v10 = vld [vmem:[%s1773_s11 + $0x124] sm:$0xf0]  ;;  %v1362_v14 = vor.u32 %v1573_v8, %v1361_v6  ;;  %v1555_v17 = vld [vmem:[%s1773_s11 + $0x14] sm:$0xf0] }
  0x3f   : > { %830 = vmatpush.bf16.msra.mxu1 %v1378_v54  ;;  %v1489_v11 = vld [vmem:[%s1773_s11 + $0x1a0] sm:$0xf]  ;;  %v1605_v12 = vld [vmem:[%s1773_s11 + $0x1a4] sm:$0xf0]  ;;  %v1426_v15 = vor.u32 %v1589_v10, %v1425_v9  ;;  %v1353_v18 = vld [vmem:[%s1773_s11 + $0x90] sm:$0xf]  ;;  %v1290_v26 = vor.u32 %v1555_v17, %v1289_v16 }
  0x40   : > { %849 = vmatpush.bf16.msra.mxu2 %v1442_v55  ;;  %v1490_v19 = vor.u32 %v1605_v12, %v1489_v11  ;;  %v1571_v20 = vld [vmem:[%s1773_s11 + $0x94] sm:$0xf0]  ;;  %v1417_v21 = vld [vmem:[%s1773_s11 + $0x110] sm:$0xf]  ;;  %v1281_v25 = vld [vmem:[%s1773_s11] sm:$0xf] }
  0x41   : > { %868 = vmatpush.bf16.msra.mxu3 %v1506_v59  ;;  %v1587_v22 = vld [vmem:[%s1773_s11 + $0x114] sm:$0xf0]  ;;  %v1481_v23 = vld [vmem:[%s1773_s11 + $0x190] sm:$0xf]  ;;  %v1553_v27 = vld [vmem:[%s1773_s11 + $0x4] sm:$0xf0]  ;;  %v1354_v30 = vor.u32 %v1571_v20, %v1353_v18 }
  0x42   : > { %812 = vmatpush.bf16.msra.mxu0 %v1306_v1  ;;  %v1603_v24 = vld [vmem:[%s1773_s11 + $0x194] sm:$0xf0]  ;;  %v1345_v28 = vld [vmem:[%s1773_s11 + $0x80] sm:$0xf]  ;;  %v1569_v29 = vld [vmem:[%s1773_s11 + $0x84] sm:$0xf0]  ;;  %v1418_v31 = vor.u32 %v1587_v22, %v1417_v21  ;;  %v1282_v43 = vor.u32 %v1553_v27, %v1281_v25 }
  0x43   : > { %831 = vmatpush.bf16.msra.mxu1 %v1370_v2  ;;  %v1409_v32 = vld [vmem:[%s1773_s11 + $0x100] sm:$0xf]  ;;  %v1585_v33 = vld [vmem:[%s1773_s11 + $0x104] sm:$0xf0]  ;;  %v1482_v35 = vor.u32 %v1603_v24, %v1481_v23  ;;  %v1546_v38 = vld [vmem:[%s1775_s12 + $0xc] sm:$0xf0]  ;;  %v1346_v47 = vor.u32 %v1569_v29, %v1345_v28 }
  0x44   : > { %850 = vmatpush.bf16.msra.mxu2 %v1434_v3  ;;  %v1473_v34 = vld [vmem:[%s1773_s11 + $0x180] sm:$0xf]  ;;  %v1601_v36 = vld [vmem:[%s1773_s11 + $0x184] sm:$0xf0]  ;;  %v1544_v39 = vld [vmem:[%s1775_s12 + $0x4] sm:$0xf]  ;;  %v1410_v48 = vor.u32 %v1585_v33, %v1409_v32 }
  0x45   : > { %869 = vmatpush.bf16.msra.mxu3 %v1498_v7  ;;  %v1249_v37 = vld [vmem:[%s1775_s12] sm:$0xf]  ;;  %v1251_v40 = vld [vmem:[%s1775_s12 + $0x10] sm:$0xf0]  ;;  %v1467_v42 = vld [vmem:[%s1773_s11 + $0x178] sm:$0xf0]  ;;  %v1474_v52 = vor.u32 %v1601_v36, %v1473_v34 }
  0x46   : > { %813 = vmatpush.bf16.msra.mxu0 %v1298_v13  ;;  %v1598_v41 = vld [vmem:[%s1773_s11 + $0x174] sm:$0xf]  ;;  %v1257_v44 = vld [vmem:[%s1775_s12 + $0x8] sm:$0xf]  ;;  %v1403_v46 = vld [vmem:[%s1773_s11 + $0xf8] sm:$0xf0]  ;;  %v1857_v57 = vor.u32 %v1546_v38, %v1249_v37  ;;  %v1862_v62 = vor.u32 %v1544_v39, %v1251_v40 }
  0x47   : > { %832 = vmatpush.bf16.msra.mxu1 %v1362_v14  ;;  %v1582_v45 = vld [vmem:[%s1773_s11 + $0xf4] sm:$0xf]  ;;  %v1547_v49 = vld [vmem:[%s1775_s12 + $0x14] sm:$0xf0]  ;;  %v1545_v50 = vld [vmem:[%s1775_s12 + $0xc] sm:$0xf]  ;;  %v1470_v53 = vor.u32 %v1598_v41, %v1467_v42 }
  0x48   : > { %851 = vmatpush.bf16.msra.mxu2 %v1426_v15  ;;  %v1259_v51 = vld [vmem:[%s1775_s12 + $0x18] sm:$0xf0]  ;;  %v1566_v54 = vld [vmem:[%s1773_s11 + $0x74] sm:$0xf]  ;;  %v1406_v58 = vor.u32 %v1582_v45, %v1403_v46  ;;  %v1596_v60 = vld [vmem:[%s1773_s11 + $0x164] sm:$0xf]  ;;  %v1864_v63 = vor.u32 %v1547_v49, %v1257_v44 }
  0x49   : > { %870 = vmatpush.bf16.msra.mxu3 %v1490_v19  ;;  %v1339_v55 = vld [vmem:[%s1773_s11 + $0x78] sm:$0xf0]  ;;  %v1614_v56 = vld [vmem:[%s1773_s11 + $0x1f4] sm:$0xf]  ;;  %v1459_v61 = vld [vmem:[%s1773_s11 + $0x168] sm:$0xf0]  ;;  %v1868_v2 = vor.u32 %v1545_v50, %v1259_v51 }
  0x4a   : > { %814 = vmatpush.bf16.msra.mxu0 %v1290_v26  ;;  %v1531_v59 = vld [vmem:[%s1773_s11 + $0x1f8] sm:$0xf0]  ;;  %v1580_v0 = vld [vmem:[%s1773_s11 + $0xe4] sm:$0xf]  ;;  %v1395_v1 = vld [vmem:[%s1773_s11 + $0xe8] sm:$0xf0]  ;;  %v1342_v3 = vor.u32 %v1566_v54, %v1339_v55  ;;  %v1462_v5 = vor.u32 %v1596_v60, %v1459_v61 }
  0x4b   : > { %833 = vmatpush.bf16.msra.mxu1 %v1354_v30  ;;  %v1534_v4 = vor.u32 %v1614_v56, %v1531_v59  ;;  %v1564_v6 = vld [vmem:[%s1773_s11 + $0x64] sm:$0xf]  ;;  %v1331_v7 = vld [vmem:[%s1773_s11 + $0x68] sm:$0xf0]  ;;  %v1398_v9 = vor.u32 %v1580_v0, %v1395_v1  ;;  %v1594_v11 = vld [vmem:[%s1773_s11 + $0x154] sm:$0xf] }
  0x4c   : > { %852 = vmatpush.bf16.msra.mxu2 %v1418_v31  ;;  %v1612_v8 = vld [vmem:[%s1773_s11 + $0x1e4] sm:$0xf]  ;;  %v1523_v10 = vld [vmem:[%s1773_s11 + $0x1e8] sm:$0xf0]  ;;  %v1451_v12 = vld [vmem:[%s1773_s11 + $0x158] sm:$0xf0]  ;;  %v1334_v15 = vor.u32 %v1564_v6, %v1331_v7 }
  0x4d   : > { %871 = vmatpush.bf16.msra.mxu3 %v1482_v35  ;;  %v1578_v13 = vld [vmem:[%s1773_s11 + $0xd4] sm:$0xf]  ;;  %v1387_v14 = vld [vmem:[%s1773_s11 + $0xd8] sm:$0xf0]  ;;  %v1526_v16 = vor.u32 %v1612_v8, %v1523_v10  ;;  %v1454_v17 = vor.u32 %v1594_v11, %v1451_v12  ;;  %v1592_v23 = vld [vmem:[%s1773_s11 + $0x144] sm:$0xf] }
  0x4e   : > { %815 = vmatpush.bf16.msra.mxu0 %v1282_v43  ;;  %v1562_v18 = vld [vmem:[%s1773_s11 + $0x54] sm:$0xf]  ;;  %v1323_v19 = vld [vmem:[%s1773_s11 + $0x58] sm:$0xf0]  ;;  %v1390_v21 = vor.u32 %v1578_v13, %v1387_v14  ;;  %v1443_v24 = vld [vmem:[%s1773_s11 + $0x148] sm:$0xf0] }
  0x4f   : > { %834 = vmatpush.bf16.msra.mxu1 %v1346_v47  ;;  %v1610_v20 = vld [vmem:[%s1773_s11 + $0x1d4] sm:$0xf]  ;;  %v1515_v22 = vld [vmem:[%s1773_s11 + $0x1d8] sm:$0xf0]  ;;  %v1576_v25 = vld [vmem:[%s1773_s11 + $0xc4] sm:$0xf]  ;;  %v1326_v27 = vor.u32 %v1562_v18, %v1323_v19  ;;  %v1446_v32 = vor.u32 %v1592_v23, %v1443_v24 }
  0x50   : > { %853 = vmatpush.bf16.msra.mxu2 %v1410_v48  ;;  %v1379_v26 = vld [vmem:[%s1773_s11 + $0xc8] sm:$0xf0]  ;;  %v1560_v28 = vld [vmem:[%s1773_s11 + $0x44] sm:$0xf]  ;;  %v1518_v31 = vor.u32 %v1610_v20, %v1515_v22  ;;  %v1265_v34 = vld [vmem:[%s1775_s12 + $0x20] sm:$0xf] }
  0x51   : > { %872 = vmatpush.bf16.msra.mxu3 %v1474_v52  ;;  %816 = vmatmul.bf16.vlgmr.msra.gmra.mxu0 %v1857_v57  ;;  %v1315_v29 = vld [vmem:[%s1773_s11 + $0x48] sm:$0xf0]  ;;  %v1608_v30 = vld [vmem:[%s1773_s11 + $0x1c4] sm:$0xf]  ;;  %v1550_v35 = vld [vmem:[%s1775_s12 + $0x2c] sm:$0xf0]  ;;  %v1382_v36 = vor.u32 %v1576_v25, %v1379_v26 }
  0x52   : > { %835 = vmatmul.bf16.vlgmr.msra.gmra.mxu1 %v1862_v62  ;;  %884 = vmatpush.bf16.msrb.mxu0 %v1342_v3  ;;  %v1507_v33 = vld [vmem:[%s1773_s11 + $0x1c8] sm:$0xf0]  ;;  %v1548_v37 = vld [vmem:[%s1775_s12 + $0x24] sm:$0xf]  ;;  %v1267_v38 = vld [vmem:[%s1775_s12 + $0x30] sm:$0xf0]  ;;  %v1318_v44 = vor.u32 %v1560_v28, %v1315_v29 }
  0x53   : > { %903 = vmatpush.bf16.msrb.mxu1 %v1406_v58  ;;  %854 = vmatmul.bf16.vlgmr.msra.gmra.mxu2 %v1864_v63  ;;  %v1590_v39 = vld [vmem:[%s1773_s11 + $0x134] sm:$0xf]  ;;  %v1435_v40 = vld [vmem:[%s1773_s11 + $0x138] sm:$0xf0]  ;;  %v1273_v41 = vld [vmem:[%s1775_s12 + $0x28] sm:$0xf]  ;;  %v1510_v48 = vor.u32 %v1608_v30, %v1507_v33  ;;  %v1914_v59 = vor.u32 %v1548_v37, %v1267_v38 }
  0x54   : > { %922 = vmatpush.bf16.msrb.mxu2 %v1470_v53  ;;  %873 = vmatmul.bf16.vlgmr.msra.gmra.mxu3 %v1868_v2  ;;  %v1574_v42 = vld [vmem:[%s1773_s11 + $0xb4] sm:$0xf]  ;;  %v1371_v43 = vld [vmem:[%s1773_s11 + $0xb8] sm:$0xf0]  ;;  %v1551_v45 = vld [vmem:[%s1775_s12 + $0x34] sm:$0xf0]  ;;  %v1438_v49 = vor.u32 %v1590_v39, %v1435_v40  ;;  %v1909_v53 = vor.u32 %v1550_v35, %v1265_v34 }
  0x55   : > { %941 = vmatpush.bf16.msrb.mxu3 %v1534_v4  ;;  %v1549_v46 = vld [vmem:[%s1775_s12 + $0x2c] sm:$0xf]  ;;  %v1275_v47 = vld [vmem:[%s1775_s12 + $0x38] sm:$0xf0]  ;;  %v1558_v50 = vld [vmem:[%s1773_s11 + $0x34] sm:$0xf]  ;;  %v1374_v54 = vor.u32 %v1574_v42, %v1371_v43  ;;  %v1916_v60 = vor.u32 %v1551_v45, %v1273_v41 }
  0x56   : > { %885 = vmatpush.bf16.msrb.mxu0 %v1334_v15  ;;  %v1307_v51 = vld [vmem:[%s1773_s11 + $0x38] sm:$0xf0]  ;;  %v1606_v52 = vld [vmem:[%s1773_s11 + $0x1b4] sm:$0xf]  ;;  %v1588_v56 = vld [vmem:[%s1773_s11 + $0x124] sm:$0xf]  ;;  %v1278_v1 = vor.u32 %v1549_v46, %v1275_v47 }
  0x57   : > { %904 = vmatpush.bf16.msrb.mxu1 %v1398_v9  ;;  %v1499_v55 = vld [vmem:[%s1773_s11 + $0x1b8] sm:$0xf0]  ;;  %v1427_v58 = vld [vmem:[%s1773_s11 + $0x128] sm:$0xf0]  ;;  %v1572_v61 = vld [vmem:[%s1773_s11 + $0xa4] sm:$0xf]  ;;  %v1310_v3 = vor.u32 %v1558_v50, %v1307_v51 }
  0x58   : > { %923 = vmatpush.bf16.msrb.mxu2 %v1462_v5  ;;  %v1363_v0 = vld [vmem:[%s1773_s11 + $0xa8] sm:$0xf0]  ;;  %v1502_v4 = vor.u32 %v1606_v52, %v1499_v55  ;;  %v1430_v5 = vor.u32 %v1588_v56, %v1427_v58  ;;  %v1556_v6 = vld [vmem:[%s1773_s11 + $0x24] sm:$0xf]  ;;  %v1586_v11 = vld [vmem:[%s1773_s11 + $0x114] sm:$0xf] }
  0x59   : > { %942 = vmatpush.bf16.msrb.mxu3 %v1526_v16  ;;  %v1299_v7 = vld [vmem:[%s1773_s11 + $0x28] sm:$0xf0]  ;;  %v1604_v8 = vld [vmem:[%s1773_s11 + $0x1a4] sm:$0xf]  ;;  %v1366_v9 = vor.u32 %v1572_v61, %v1363_v0  ;;  %v1419_v12 = vld [vmem:[%s1773_s11 + $0x118] sm:$0xf0] }
  0x5a   : > { %886 = vmatpush.bf16.msrb.mxu0 %v1326_v27  ;;  %v1491_v10 = vld [vmem:[%s1773_s11 + $0x1a8] sm:$0xf0]  ;;  %v1570_v13 = vld [vmem:[%s1773_s11 + $0x94] sm:$0xf]  ;;  %v1355_v14 = vld [vmem:[%s1773_s11 + $0x98] sm:$0xf0]  ;;  %v1302_v15 = vor.u32 %v1556_v6, %v1299_v7 }
  0x5b   : > { %905 = vmatpush.bf16.msrb.mxu1 %v1390_v21  ;;  %v1494_v16 = vor.u32 %v1604_v8, %v1491_v10  ;;  %v1554_v18 = vld [vmem:[%s1773_s11 + $0x14] sm:$0xf]  ;;  %v1291_v19 = vld [vmem:[%s1773_s11 + $0x18] sm:$0xf0]  ;;  %v1358_v21 = vor.u32 %v1570_v13, %v1355_v14  ;;  %v1584_v23 = vld [vmem:[%s1773_s11 + $0x104] sm:$0xf] }
  0x5c   : > { %924 = vmatpush.bf16.msrb.mxu2 %v1454_v17  ;;  %v1422_v17 = vor.u32 %v1586_v11, %v1419_v12  ;;  %v1602_v20 = vld [vmem:[%s1773_s11 + $0x194] sm:$0xf]  ;;  %v1483_v22 = vld [vmem:[%s1773_s11 + $0x198] sm:$0xf0]  ;;  %v1411_v24 = vld [vmem:[%s1773_s11 + $0x108] sm:$0xf0]  ;;  %v1294_v27 = vor.u32 %v1554_v18, %v1291_v19 }
  0x5d   : > { %943 = vmatpush.bf16.msrb.mxu3 %v1518_v31  ;;  %v1568_v25 = vld [vmem:[%s1773_s11 + $0x84] sm:$0xf]  ;;  %v1347_v26 = vld [vmem:[%s1773_s11 + $0x88] sm:$0xf0]  ;;  %v1486_v28 = vor.u32 %v1602_v20, %v1483_v22  ;;  %v1414_v29 = vor.u32 %v1584_v23, %v1411_v24  ;;  %v368_v43 = vld [vmem:[#allocation2 + $0x30] sm:$0xff]  ;;  %p1535_p11 = scmp.ne.s32.totalorder %s1687_s17, 3 }
  0x5e   : > { %887 = vmatpush.bf16.msrb.mxu0 %v1318_v44  ;;  %v1552_v30 = vld [vmem:[%s1773_s11 + $0x4] sm:$0xf]  ;;  %v1283_v31 = vld [vmem:[%s1773_s11 + $0x8] sm:$0xf0]  ;;  %v371_v24 = vld [vmem:[#allocation2 + $0x10] sm:$0xff] }
  0x5f   : > { %906 = vmatpush.bf16.msrb.mxu1 %v1382_v36  ;;  %v1600_v33 = vld [vmem:[%s1773_s11 + $0x184] sm:$0xf]  ;;  %v1475_v34 = vld [vmem:[%s1773_s11 + $0x188] sm:$0xf0]  ;;  %v1286_v35 = vor.u32 %v1552_v30, %v1283_v31 }
  0x60   : > { %925 = vmatpush.bf16.msrb.mxu2 %v1446_v32  ;;  %v1350_v32 = vor.u32 %v1568_v25, %v1347_v26  ;;  %v1478_v36 = vor.u32 %v1600_v33, %v1475_v34  ;;  %v374_v6 = vld [vmem:[#allocation2 + $0x28] sm:$0xff]  ;;  %v373_v33 = vld [vmem:[#allocation2 + $0x20] sm:$0xff] }
  0x61   : > { %944 = vmatpush.bf16.msrb.mxu3 %v1510_v48  ;;  %821 = vmatmul.bf16.gmra.mxu0 %v1909_v53 }
  0x62   : > { %840 = vmatmul.bf16.gmra.mxu1 %v1914_v59  ;;  %888 = vmatpush.bf16.msrb.mxu0 %v1310_v3 }
  0x63   : > { %907 = vmatpush.bf16.msrb.mxu1 %v1374_v54  ;;  %859 = vmatmul.bf16.gmra.mxu2 %v1916_v60 }
  0x64   : > { %926 = vmatpush.bf16.msrb.mxu2 %v1438_v49  ;;  %878 = vmatmul.bf16.gmra.mxu3 %v1278_v1  ;;  %v370_v49 = vld [vmem:[#allocation2 + $0x18] sm:$0xff] }
  0x65   : > { %945 = vmatpush.bf16.msrb.mxu3 %v1502_v4 }
  0x66   : > { %889 = vmatpush.bf16.msrb.mxu0 %v1302_v15 }
  0x67   : > { %908 = vmatpush.bf16.msrb.mxu1 %v1366_v9 }
  0x68   : > { %927 = vmatpush.bf16.msrb.mxu2 %v1430_v5 }
  0x69   : > { %946 = vmatpush.bf16.msrb.mxu3 %v1494_v16 }
  0x6a   : > { %890 = vmatpush.bf16.msrb.mxu0 %v1294_v27 }
  0x6b   : > { %909 = vmatpush.bf16.msrb.mxu1 %v1358_v21 }
  0x6c   : > { %928 = vmatpush.bf16.msrb.mxu2 %v1422_v17  ;;  %v369_v17 = vld [vmem:[#allocation2] sm:$0xff] }
  0x6d   : > { %947 = vmatpush.bf16.msrb.mxu3 %v1486_v28 }
  0x6e   : > { %891 = vmatpush.bf16.msrb.mxu0 %v1286_v35 }
  0x6f   : > { %910 = vmatpush.bf16.msrb.mxu1 %v1350_v32 }
  0x70   : > { %929 = vmatpush.bf16.msrb.mxu2 %v1414_v29 }
  0x71   : > { %948 = vmatpush.bf16.msrb.mxu3 %v1478_v36  ;;  %892 = vmatmul.bf16.vlgmr.msrb.gmra.mxu0 %v1857_v57 }
  0x72   : > { %911 = vmatmul.bf16.vlgmr.msrb.gmra.mxu1 %v1862_v62 }
  0x73   : > { %930 = vmatmul.bf16.vlgmr.msrb.gmra.mxu2 %v1864_v63 }
  0x74   : > { %949 = vmatmul.bf16.vlgmr.msrb.gmra.mxu3 %v1868_v2 }
  0x81   : > { %897 = vmatmul.bf16.gmra.mxu0 %v1909_v53 }
  0x82   : > { %916 = vmatmul.bf16.gmra.mxu1 %v1914_v59  ;;  %v372_v59 = vld [vmem:[#allocation2 + $0x8] sm:$0xff] }
  0x83   : > { %935 = vmatmul.bf16.gmra.mxu2 %v1916_v60 }
  0x84   : > { %954 = vmatmul.bf16.gmra.mxu3 %v1278_v1 }
  0xce   : > { %v817_v37 = vpop.f32.mrf.mxu0 }
  0xcf   : > { %v836_v38 = vpop.f32.mrf.mxu1 }
  0xd0   : > { %v837_v39 = vadd.f32 %v836_v38, %v817_v37 }
  0xd6   : > { %v855_v40 = vpop.f32.mrf.mxu2  ;;  %v819_v57 = vpop.f32.mrf.mxu0 }
  0xd7   : > { %v856_v41 = vadd.f32 %v855_v40, %v837_v39  ;;  %v874_v42 = vpop.f32.mrf.mxu3  ;;  %v838_v62 = vpop.f32.mrf.mxu1 }
  0xd8   : > { %v839_v2 = vadd.f32 %v838_v62, %v819_v57 }
  0xd9   : > { %v875_v44 = vadd.f32 %v874_v42, %v856_v41  ;;  %v375_v41 = vld [vmem:[#allocation2 + $0x38] sm:$0xff] }
  0xdb   : > { %v960_v63 = vadd.f32 %v875_v44, %v368_v43 }
  0xdd   : > { %968 = vst [vmem:[#allocation2 + $0x30] sm:$0xff] %v960_v63 }
  0xde   : > { %v857_v45 = vpop.f32.mrf.mxu2  ;;  %v822_v48 = vpop.f32.mrf.mxu0 }
  0xdf   : > { %v858_v46 = vadd.f32 %v857_v45, %v839_v2  ;;  %v876_v47 = vpop.f32.mrf.mxu3  ;;  %v841_v50 = vpop.f32.mrf.mxu1 }
  0xe0   : > { %v842_v53 = vadd.f32 %v841_v50, %v822_v48 }
  0xe1   : > { %v877_v51 = vadd.f32 %v876_v47, %v858_v46 }
  0xe3   : > { %v962_v52 = vadd.f32 %v877_v51, %v370_v49 }
  0xe5   : > { %970 = vst [vmem:[#allocation2 + $0x18] sm:$0xff] %v962_v52 }
  0xe6   : > { %v860_v54 = vpop.f32.mrf.mxu2  ;;  %v824_v58 = vpop.f32.mrf.mxu0 }
  0xe7   : > { %v861_v55 = vadd.f32 %v860_v54, %v842_v53  ;;  %v879_v56 = vpop.f32.mrf.mxu3  ;;  %v843_v60 = vpop.f32.mrf.mxu1 }
  0xe8   : > { %v844_v1 = vadd.f32 %v843_v60, %v824_v58 }
  0xe9   : > { %v880_v61 = vadd.f32 %v879_v56, %v861_v55 }
  0xeb   : > { %v964_v0 = vadd.f32 %v880_v61, %v372_v59 }
  0xed   : > { %972 = vst [vmem:[#allocation2 + $0x8] sm:$0xff] %v964_v0 }
  0xee   : > { %v862_v3 = vpop.f32.mrf.mxu2  ;;  %v893_v7 = vpop.f32.mrf.mxu0 }
  0xef   : > { %v863_v4 = vadd.f32 %v862_v3, %v844_v1  ;;  %v881_v5 = vpop.f32.mrf.mxu3  ;;  %v912_v8 = vpop.f32.mrf.mxu1 }
  0xf0   : > { %v913_v11 = vadd.f32 %v912_v8, %v893_v7 }
  0xf1   : > { %v882_v9 = vadd.f32 %v881_v5, %v863_v4 }
  0xf3   : > { %v966_v10 = vadd.f32 %v882_v9, %v374_v6 }
  0xf5   : > { %974 = vst [vmem:[#allocation2 + $0x28] sm:$0xff] %v966_v10 }
  0xf6   : > { %v931_v12 = vpop.f32.mrf.mxu2  ;;  %v895_v15 = vpop.f32.mrf.mxu0 }
  0xf7   : > { %v950_v13 = vpop.f32.mrf.mxu3  ;;  %v932_v14 = vadd.f32 %v931_v12, %v913_v11  ;;  %v914_v16 = vpop.f32.mrf.mxu1 }
  0xf8   : > { %v915_v20 = vadd.f32 %v914_v16, %v895_v15 }
  0xf9   : > { %v951_v18 = vadd.f32 %v950_v13, %v932_v14 }
  0xfb   : > { %v961_v19 = vadd.f32 %v951_v18, %v369_v17 }
  0xfd   : > { %969 = vst [vmem:[#allocation2] sm:$0xff] %v961_v19 }
  0xfe   : > { %v933_v21 = vpop.f32.mrf.mxu2  ;;  %v898_v25 = vpop.f32.mrf.mxu0 }
  0xff   : > { %v952_v22 = vpop.f32.mrf.mxu3  ;;  %v934_v23 = vadd.f32 %v933_v21, %v915_v20  ;;  %v917_v26 = vpop.f32.mrf.mxu1 }
 0x100   : > { %v918_v29 = vadd.f32 %v917_v26, %v898_v25 }
 0x101   : > { %v953_v27 = vadd.f32 %v952_v22, %v934_v23 }
 0x103   : > { %v963_v28 = vadd.f32 %v953_v27, %v371_v24 }
 0x105   : > { %971 = vst [vmem:[#allocation2 + $0x10] sm:$0xff] %v963_v28 }
 0x106   : > { %v936_v30 = vpop.f32.mrf.mxu2  ;;  %v900_v35 = vpop.f32.mrf.mxu0 }
 0x107   : > { %v955_v31 = vpop.f32.mrf.mxu3  ;;  %v937_v32 = vadd.f32 %v936_v30, %v918_v29  ;;  %v919_v36 = vpop.f32.mrf.mxu1 }
 0x108   : > { %v920_v38 = vadd.f32 %v919_v36, %v900_v35 }
 0x109   : > { %v956_v34 = vadd.f32 %v955_v31, %v937_v32 }
 0x10b   : > { %v965_v37 = vadd.f32 %v956_v34, %v373_v33 }
 0x10d   : > { %973 = vst [vmem:[#allocation2 + $0x20] sm:$0xff] %v965_v37 }
 0x10e   : > { %v938_v39 = vpop.f32.mrf.mxu2 }
 0x10f   : > { %v939_v40 = vadd.f32 %v938_v39, %v920_v38  ;;  %v957_v42 = vpop.f32.mrf.mxu3 }
 0x111   : > { %v958_v57 = vadd.f32 %v957_v42, %v939_v40  ;;  %979 = sbr.rel (%p1535_p11) target bundleno = 309 (0x135), region = 63 }
 0x113   : > { %v967_v43 = vadd.f32 %v958_v57, %v375_v41 }
 0x115   : > { %975 = vst [vmem:[#allocation2 + $0x38] sm:$0xff] %v967_v43 }
 0x116   : > { %v980_v62 = vld [vmem:[#allocation2 + $0x30] sm:$0xff]  ;;  %v982_v44 = vld [vmem:[#allocation2 + $0x18] sm:$0xff]  ;;  %v984_v63 = vld [vmem:[#allocation2 + $0x8] sm:$0xff]  ;;  %v1046_v24 = vlaneseq }
 0x117   : > { %v986_v2 = vld [vmem:[#allocation2 + $0x28] sm:$0xff]  ;;  %v988_v45 = vld [vmem:[%s2001_s2] sm:$0x3]  ;;  %v983_v48 = vld [vmem:[#allocation2 + $0x10] sm:$0xff] }
 0x118   : > { %v990_v46 = vperm.slane %v988_v45, 0  ;;  %v981_v47 = vld [vmem:[#allocation2] sm:$0xff]  ;;  %v991_v49 = vperm.slane %v988_v45, 1  ;;  %v1047_v33 = vshrl.u32 %v1046_v24, 7 }
 0x119   : > { %v985_v54 = vld [vmem:[#allocation2 + $0x20] sm:$0xff] }
 0x11a   : > { %v994_v50 = vadd.f32 %v990_v46, %v980_v62  ;;  %v996_v51 = vadd.f32 %v990_v46, %v982_v44  ;;  %v998_v52 = vadd.f32 %v990_v46, %v984_v63  ;;  %v1000_v53 = vadd.f32 %v990_v46, %v986_v2 }
 0x11b   : > { %v995_v56 = vadd.f32 %v991_v49, %v981_v47  ;;  %v997_v58 = vadd.f32 %v991_v49, %v983_v48  ;;  %v999_v3 = vadd.f32 %v991_v49, %v985_v54  ;;  %vm1049_vm0 = vcmp.eq.s32.totalorder %v1047_v33, 1 }
 0x11c   : > { %v987_v55 = vld [vmem:[#allocation2 + $0x38] sm:$0xff]  ;;  %v1002_v59 = vadd.f32 %v996_v51, %v994_v50  ;;  %v1020_v60 = vmul.f32 %v994_v50, %v994_v50  ;;  %v1022_v61 = vmul.f32 %v996_v51, %v996_v51  ;;  %v1024_v0 = vmul.f32 %v998_v52, %v998_v52  ;;  %1056 = vst [vmem:[%s2002_s3] sm:$0xff] %v994_v50 }
 0x11d   : > { %v1026_v1 = vmul.f32 %v1000_v53, %v1000_v53  ;;  %1058 = vst [vmem:[%s2002_s3 + $0x10] sm:$0xff] %v996_v51  ;;  %v1001_v4 = vadd.f32 %v991_v49, %v987_v55  ;;  %v1011_v5 = vadd.f32 %v997_v58, %v995_v56  ;;  %v1021_v8 = vmul.f32 %v995_v56, %v995_v56 }
 0x11e   : > { %v1003_v6 = vadd.f32 %v1002_v59, %v998_v52  ;;  %v1028_v7 = vadd.f32 %v1022_v61, %v1020_v60  ;;  %1060 = vst [vmem:[%s2002_s3 + $0x20] sm:$0xff] %v998_v52  ;;  %v1023_v9 = vmul.f32 %v997_v58, %v997_v58  ;;  %v1025_v11 = vmul.f32 %v999_v3, %v999_v3 }
 0x11f   : > { %1062 = vst [vmem:[%s2002_s3 + $0x30] sm:$0xff] %v1000_v53  ;;  %v1012_v10 = vadd.f32 %v1011_v5, %v999_v3  ;;  %v1027_v14 = vmul.f32 %v1001_v4, %v1001_v4  ;;  %vm1048_vm1 = vcmp.eq.s32.totalorder %v1047_v33, 0 }
 0x120   : > { %v1004_v12 = vadd.f32 %v1003_v6, %v1000_v53  ;;  %v1029_v13 = vadd.f32 %v1028_v7, %v1024_v0  ;;  %v1037_v15 = vadd.f32 %v1023_v9, %v1021_v8  ;;  %1057 = vst [vmem:[%s2002_s3 + $0x8] sm:$0xff] %v995_v56 }
 0x121   : > { %v1013_v16 = vadd.f32 %v1012_v10, %v1001_v4  ;;  %1059 = vst [vmem:[%s2002_s3 + $0x18] sm:$0xff] %v997_v58 }
 0x122   : > { %v1005_v17 = vrot.slane %v1004_v12, 4  ;;  %v1030_v18 = vadd.f32 %v1029_v13, %v1026_v1  ;;  %v1038_v19 = vadd.f32 %v1037_v15, %v1025_v11  ;;  %1061 = vst [vmem:[%s2002_s3 + $0x28] sm:$0xff] %v999_v3 }
 0x123   : > { %v1014_v20 = vrot.slane %v1013_v16, 4  ;;  %1063 = vst [vmem:[%s2002_s3 + $0x38] sm:$0xff] %v1001_v4 }
 0x124   : > { %v1006_v21 = vadd.f32 %v1005_v17, %v1004_v12  ;;  %v1031_v22 = vrot.slane %v1030_v18, 4  ;;  %v1039_v23 = vadd.f32 %v1038_v19, %v1027_v14 }
 0x125   : > { %v1015_v25 = vadd.f32 %v1014_v20, %v1013_v16 }
 0x126   : > { %v1007_v26 = vrot.slane %v1006_v21, 2  ;;  %v1032_v27 = vadd.f32 %v1031_v22, %v1030_v18  ;;  %v1040_v28 = vrot.slane %v1039_v23, 4 }
 0x127   : > { %v1016_v29 = vrot.slane %v1015_v25, 2 }
 0x128   : > { %v1008_v30 = vadd.f32 %v1007_v26, %v1006_v21  ;;  %v1033_v31 = vrot.slane %v1032_v27, 2  ;;  %v1041_v32 = vadd.f32 %v1040_v28, %v1039_v23 }
 0x129   : > { %v1017_v34 = vadd.f32 %v1016_v29, %v1015_v25 }
 0x12a   : > { %v1009_v35 = vrot.slane %v1008_v30, 1  ;;  %v1034_v36 = vadd.f32 %v1033_v31, %v1032_v27  ;;  %v1042_v37 = vrot.slane %v1041_v32, 2 }
 0x12b   : > { %v1018_v38 = vrot.slane %v1017_v34, 1 }
 0x12c   : > { %v1035_v39 = vrot.slane %v1034_v36, 1  ;;  %v1043_v40 = vadd.f32 %v1042_v37, %v1041_v32  ;;  %v1010_v41 = vadd.f32 %v1009_v35, %v1008_v30 }
 0x12d   : > { %v1019_v43 = vadd.f32 %v1018_v38, %v1017_v34 }
 0x12e   : > { %v1036_v42 = vadd.f32 %v1035_v39, %v1034_v36  ;;  %v1044_v57 = vrot.slane %v1043_v40, 1 }
 0x130   : > { %v1050_v62 = vsel %vm1049_vm0, %v1036_v42, 0.0  ;;  %v1045_v44 = vadd.f32 %v1044_v57, %v1043_v40 }
 0x131   : > { %v1052_v63 = vsel %vm1048_vm1, %v1010_v41, %v1050_v62 }
 0x132   : > { %1054 = vst [vmem:[%s2003_s4] sm:$0xff] %v1052_v63  ;;  %v1051_v2 = vsel %vm1049_vm0, %v1045_v44, 0.0 }
 0x133   : > { %v1053_v45 = vsel %vm1048_vm1, %v1019_v43, %v1051_v2 }
 0x134   : > { %1055 = vst [vmem:[%s2003_s4 + $0x8] sm:$0xff] %v1053_v45 }
 0x135 PF: > { %s15_s19 = sadd.s32 1, %s1695_s19   ;;  %s2004_s15 = smov %s1683_s16 }
 0x136   : > { %p12_p12 = scmp.ge.s32.totalorder %s15_s19, 6   ;;  %s2005_s16 = smov %s1758_s23 }
 0x137   : > { %s2006_s17 = smov %s1691_s18  ;;  %s2007_s18 = smov %s2009_s20 }
 0x138   :  { %14 = sbr.rel (!%p12_p12) target bundleno = 3 (0x3), region = 116 }

// kernel: _lambda_.12
= control target key start
LH: loop header
LB: loop body
LE: loop exit
PB: predicated region body
PF: predicated region fallthrough
CT: control target
= control target key end

     0   :  { %s148_s0 = inlined_call_operand.vmem [shape: f32[32,256], index: 0, kind: input, shape index: {}]   ;;  %s149_s1 = inlined_call_operand.vmem [shape: f32[1,256], index: 1, kind: input, shape index: {}]   ;;  %s150_s2 = inlined_call_operand.vmem [shape: f32[1,256], index: 2, kind: input, shape index: {}]   ;;  %s151_s3 = inlined_call_operand.vmem [shape: bf16[32,256], index: 3, kind: output, shape index: {}]  }
   0x1   :  { %v14_v0 = vld [vmem:[%s148_s0] sm:$0xff]  ;;  %v15_v1 = vld [vmem:[%s148_s0 + $0x8] sm:$0xff]  ;;  %v16_v6 = vld [vmem:[%s148_s0 + $0x10] sm:$0xff] }
   0x2   :  { %v22_v2 = vld [vmem:[%s149_s1] sm:$0x3]  ;;  %v17_v7 = vld [vmem:[%s148_s0 + $0x18] sm:$0xff]  ;;  %v19_v11 = vld [vmem:[%s148_s0 + $0x28] sm:$0xff] }
   0x3   :  { %v24_v3 = vperm.slane %v22_v2, 0  ;;  %v25_v4 = vperm.slane %v22_v2, 1  ;;  %v36_v5 = vld [vmem:[%s150_s2] sm:$0x3]  ;;  %v20_v12 = vld [vmem:[%s148_s0 + $0x30] sm:$0xff]  ;;  %v21_v17 = vld [vmem:[%s148_s0 + $0x38] sm:$0xff] }
   0x4   :  { %v38_v8 = vperm.slane %v36_v5, 0  ;;  %v39_v9 = vperm.slane %v36_v5, 1  ;;  %v18_v10 = vld [vmem:[%s148_s0 + $0x20] sm:$0xff] }
   0x5   :  { %v28_v13 = vmul.f32 %v24_v3, %v14_v0  ;;  %v29_v14 = vmul.f32 %v25_v4, %v15_v1  ;;  %v30_v15 = vmul.f32 %v24_v3, %v16_v6  ;;  %v31_v16 = vmul.f32 %v25_v4, %v17_v7 }
   0x6   :  { %v32_v18 = vmul.f32 %v24_v3, %v18_v10  ;;  %v33_v19 = vmul.f32 %v25_v4, %v19_v11  ;;  %v34_v20 = vmul.f32 %v24_v3, %v20_v12  ;;  %v35_v21 = vmul.f32 %v25_v4, %v21_v17 }
   0x7   :  { %v42_v22 = vadd.f32 %v38_v8, %v28_v13  ;;  %v43_v23 = vadd.f32 %v39_v9, %v29_v14  ;;  %v44_v24 = vadd.f32 %v38_v8, %v30_v15  ;;  %v45_v25 = vadd.f32 %v39_v9, %v31_v16 }
   0x8   :  { %v46_v26 = vadd.f32 %v38_v8, %v32_v18  ;;  %v47_v27 = vadd.f32 %v39_v9, %v33_v19  ;;  %v48_v28 = vadd.f32 %v38_v8, %v34_v20  ;;  %v49_v29 = vadd.f32 %v39_v9, %v35_v21 }
   0x9   :  { %vm50_vm0 = vcmp.gt.f32.partialorder %v42_v22, 0.0  ;;  %vm51_vm1 = vcmp.gt.f32.partialorder %v43_v23, 0.0  ;;  %v58_v30 = vmul.f32 0.2, %v42_v22  ;;  %v59_v31 = vmul.f32 0.2, %v43_v23 }
   0xa   :  { %vm52_vm2 = vcmp.gt.f32.partialorder %v44_v24, 0.0  ;;  %vm53_vm3 = vcmp.gt.f32.partialorder %v45_v25, 0.0  ;;  %v60_v32 = vmul.f32 0.2, %v44_v24  ;;  %v61_v33 = vmul.f32 0.2, %v45_v25 }
   0xb   :  { %v66_v34 = vsel %vm50_vm0, %v42_v22, %v58_v30  ;;  %v67_v35 = vsel %vm51_vm1, %v43_v23, %v59_v31  ;;  %vm54_vm4 = vcmp.gt.f32.partialorder %v46_v26, 0.0  ;;  %vm55_vm5 = vcmp.gt.f32.partialorder %v47_v27, 0.0 }
   0xc   :  { %v74_v36 = vpack.c.bf16 %v67_v35, %v66_v34  ;;  %v68_v37 = vsel %vm52_vm2, %v44_v24, %v60_v32  ;;  %v69_v38 = vsel %vm53_vm3, %v45_v25, %v61_v33  ;;  %v62_v39 = vmul.f32 0.2, %v46_v26 }
   0xd   :  { %v75_v40 = vpack.c.bf16 %v69_v38, %v68_v37  ;;  %v63_v41 = vmul.f32 0.2, %v47_v27  ;;  %vm56_vm6 = vcmp.gt.f32.partialorder %v48_v28, 0.0  ;;  %vm57_vm7 = vcmp.gt.f32.partialorder %v49_v29, 0.0 }
   0xe   :  { %78 = vst [vmem:[%s151_s3] sm:$0xff] %v74_v36  ;;  %v70_v42 = vsel %vm54_vm4, %v46_v26, %v62_v39  ;;  %v64_v43 = vmul.f32 0.2, %v48_v28  ;;  %v65_v44 = vmul.f32 0.2, %v49_v29 }
   0xf   :  { %79 = vst [vmem:[%s151_s3 + $0x8] sm:$0xff] %v75_v40  ;;  %v71_v45 = vsel %vm55_vm5, %v47_v27, %v63_v41 }
  0x10   :  { %v76_v46 = vpack.c.bf16 %v71_v45, %v70_v42  ;;  %v72_v47 = vsel %vm56_vm6, %v48_v28, %v64_v43  ;;  %v73_v48 = vsel %vm57_vm7, %v49_v29, %v65_v44 }
  0x11   :  { %v77_v49 = vpack.c.bf16 %v73_v48, %v72_v47 }
  0x12   :  { %80 = vst [vmem:[%s151_s3 + $0x10] sm:$0xff] %v76_v46 }
  0x13   :  { %81 = vst [vmem:[%s151_s3 + $0x18] sm:$0xff] %v77_v49 }

// kernel: _lambda_.13
= control target key start
LH: loop header
LB: loop body
LE: loop exit
PB: predicated region body
PF: predicated region fallthrough
CT: control target
= control target key end

     0   :  { %s2621_s0 = inlined_call_operand.vmem [shape: bf16[32,4096], index: 0, kind: input, shape index: {}]   ;;  %s2622_s1 = inlined_call_operand.vmem [shape: bf16[4096,512], index: 1, kind: input, shape index: {}]   ;;  %s2623_s2 = inlined_call_operand.vmem [shape: f32[1,512], index: 2, kind: input, shape index: {}]   ;;  %s2624_s3 = inlined_call_operand.vmem [shape: f32[32,512], index: 3, kind: output, shape index: {0}]   ;;  %s2625_s4 = inlined_call_operand.vmem [shape: f32[1,8,512], index: 4, kind: output, shape index: {1}]  }
   0x1   :  { %2628 = sst [smem:[#allocation8_spill]] %s2621_s0 }
   0x2   :  { %2629 = sst [smem:[#allocation9_spill]] %s2622_s1 }
   0x3   :  { %s2115_s15 = smov 0   ;;  %s2117_s16 = smov 0  }
   0x4   :  { %s2119_s17 = smov 0   ;;  %s2121_s18 = smov 0  }
   0x5   :  { %s2123_s19 = smov 0   ;;  %s2125_s20 = smov 0  }
   0x6   :  { %s2127_s21 = smov 0   ;;  %s2129_s22 = smov 0  }
   0x7   :  { %s2131_s23 = smov 0   ;;  %s2133_s24 = smov 0  }
   0x8   :  { %s2135_s25 = smov 0  }
   0x9 LB: > { %s1523_s26 = sadd.s32 4294967295, %s2087_s25   ;;  %s27_s27 = sadd.s32 1, %s2079_s23  ;;  %s2087_s25 = sphi %s2135_s25, %s15_s25   ;;  %s2083_s24 = sphi %s2133_s24, %s2648_s24   ;;  %s2079_s23 = sphi %s2131_s23, %s2647_s23   ;;  %s2075_s22 = sphi %s2129_s22, %s2646_s22   ;;  %s2071_s21 = sphi %s2127_s21, %s2645_s21   ;;  %s2067_s20 = sphi %s2125_s20, %s2644_s20   ;;  %s2063_s19 = sphi %s2123_s19, %s2643_s19   ;;  %s2059_s18 = sphi %s2121_s18, %s2642_s18   ;;  %s2055_s17 = sphi %s2119_s17, %s2641_s17   ;;  %s2051_s16 = sphi %s2117_s16, %s2640_s16   ;;  %s2047_s15 = sphi %s2115_s15, %s2639_s15  }
   0xa   : > { %p28_p0 = scmp.ge.s32.totalorder %s27_s27, 8  ;;  %s30_s28 = sadd.s32 1, %s2083_s24 }
   0xb   : > { %s43_s29 = sadd.s32 1, %s2067_s20  ;;  %p50_p1 = scmp.ne.s32.totalorder %s2067_s20, %s2063_s19 }
   0xc   : > { %s2650_s27 = smov (%p28_p0, %s27_s27), 0  ;;  %s2652_s28 = smov (!%p28_p0, %s30_s28), %s2083_s24 }
   0xd   : > { %2630 = sst [smem:[#allocation6_spill]] %s2650_s27  ;;  %s39_s30 = ssub.s32 %s2079_s23, %s2650_s27 }
   0xe   : > { %p51_p2 = scmp.eq.s32.totalorder %s2087_s25, 0  ;;  %p32_p3 = scmp.ge.s32.totalorder %s2652_s28, 2 }
   0xf   : > { %p41_p4 = scmp.eq.s32.totalorder %s39_s30, 0  ;;  %s71_s6 = sadd.s32 1, %s2059_s18 }
  0x10   : > { %p2182_p5 = por %p51_p2, %p50_p1  ;;  %s2654_s28 = smov (%p32_p3, %s2652_s28), 0 }
  0x11   : > { %2632 = sst [smem:[#allocation7_spill]] %s2654_s28  ;;  %s67_s8 = ssub.s32 %s2083_s24, %s2654_s28 }
  0x12   : > { %s2190_s7 = scalar_select %p41_p4, %s2067_s20, %s43_s29  }
  0x13   : > { %p78_p6 = scmp.ne.s32.totalorder %s2059_s18, %s2055_s17  ;;  %s68_s9 = sor.u32 %s67_s8, %s39_s30 }
  0x14   : > { %p123_p7 = scmp.eq.s32.totalorder %s67_s8, 0  ;;  %p69_p8 = scmp.eq.s32.totalorder %s68_s9, 0 }
  0x15   : > { %p2196_p9 = por %p78_p6, %p51_p2  ;;  %s125_s11 = sadd.s32 1, %s2051_s16 }
  0x16   : > { %p135_p10 = scmp.ne.s32.totalorder %s2051_s16, %s2047_s15  ;;  %p136_p11 = scmp.eq.s32.totalorder %s1523_s26, 15 }
  0x17   : > { %s2204_s12 = scalar_select %p69_p8, %s2059_s18, %s71_s6  }
  0x18   : > { %s2207_s13 = scalar_select %p123_p7, %s2051_s16, %s125_s11  }
  0x19   : > { %p2209_p12 = por %p136_p11, %p135_p10  ;;  %p1526_p13 = scmp.ge.s32.totalorder %s2087_s25, 16 }
  0x1b   : > { %186 = sbr.rel (%p1526_p13) target bundleno = 124 (0x7c), region = 16 }
  0x20   : > { %189 = sbr.rel (!%p2182_p5) target bundleno = 50 (0x32), region = 20  ;;  %s191_s29 = sand.u32 (%p2182_p5), 1, %s2067_s20  }
  0x21   : > { %s1837_s30 = sshll.u32 (%p2182_p5), %s2079_s23, 4  ;;  %s1527_s8 = sshll.u32 (%p2182_p5), %s191_s29, 6 }
  0x22   : > { %s2635_s0 = sld [smem:[#allocation8_spill]] (%p2182_p5)  ;;  %s193_s26 = scalar_lea.vmem (%p2182_p5), [#allocation3], %s1527_s8 }
  0x28   : > { %s199_s11 = scalar_lea.vmem %s2635_s0, %s1837_s30 }
  0x29   : > { %v212_v0 = vld [vmem:[%s199_s11] sm:$0xff]  ;;  %v214_v1 = vld [vmem:[%s199_s11 + $0x8] sm:$0xff] }
  0x2a   : > { %v216_v2 = vld [vmem:[%s199_s11 + $0x80] sm:$0xff]  ;;  %213 = vst [vmem:[%s193_s26] sm:$0xff] %v212_v0  ;;  %v218_v3 = vld [vmem:[%s199_s11 + $0x88] sm:$0xff] }
  0x2b   : > { %215 = vst [vmem:[%s193_s26 + $0x8] sm:$0xff] %v214_v1  ;;  %v220_v4 = vld [vmem:[%s199_s11 + $0x100] sm:$0xff]  ;;  %v222_v5 = vld [vmem:[%s199_s11 + $0x108] sm:$0xff] }
  0x2c   : > { %217 = vst [vmem:[%s193_s26 + $0x10] sm:$0xff] %v216_v2  ;;  %v224_v6 = vld [vmem:[%s199_s11 + $0x180] sm:$0xff]  ;;  %v226_v7 = vld [vmem:[%s199_s11 + $0x188] sm:$0xff] }
  0x2d   : > { %219 = vst [vmem:[%s193_s26 + $0x18] sm:$0xff] %v218_v3 }
  0x2e   : > { %221 = vst [vmem:[%s193_s26 + $0x20] sm:$0xff] %v220_v4 }
  0x2f   : > { %223 = vst [vmem:[%s193_s26 + $0x28] sm:$0xff] %v222_v5 }
  0x30   : > { %225 = vst [vmem:[%s193_s26 + $0x30] sm:$0xff] %v224_v6 }
  0x31   : > { %227 = vst [vmem:[%s193_s26 + $0x38] sm:$0xff] %v226_v7 }
  0x32 PF: > { %233 = sbr.rel (!%p2196_p9) target bundleno = 124 (0x7c), region = 43  ;;  %s235_s5 = sand.u32 (%p2196_p9), 1, %s2059_s18  }
  0x33   : > { %s1532_s29 = sshll.u32 (%p2196_p9), %s2083_s24, 1  ;;  %s1530_s30 = sshll.u32 (%p2196_p9), %s235_s5, 9 }
  0x34   : > { %s1838_s8 = sshll.u32 (%p2196_p9), %s2079_s23, 8  ;;  %s2636_s1 = sld [smem:[#allocation9_spill]] (%p2196_p9) }
  0x35   : > { %s241_s6 = sadd.s32 (%p2196_p9), %s1838_s8, %s1532_s29  ;;  %s2234_s10 = scalar_lea.vmem (%p2196_p9), [#allocation4], %s1530_s30 }
  0x36   : > { %s1534_s9 = sshll.u32 (%p2196_p9), %s241_s6, 2 }
  0x3a   : > { %s2229_s11 = scalar_lea.vmem %s2636_s1, %s1534_s9 }
  0x3b   : > { %v398_v8 = vld [vmem:[%s2229_s11] sm:$0xff]  ;;  %v400_v9 = vld [vmem:[%s2229_s11 + $0x10] sm:$0xff] }
  0x3c   : > { %v402_v10 = vld [vmem:[%s2229_s11 + $0x20] sm:$0xff]  ;;  %399 = vst [vmem:[%s2234_s10] sm:$0xff] %v398_v8  ;;  %v404_v11 = vld [vmem:[%s2229_s11 + $0x30] sm:$0xff] }
  0x3d   : > { %401 = vst [vmem:[%s2234_s10 + $0x8] sm:$0xff] %v400_v9  ;;  %v406_v12 = vld [vmem:[%s2229_s11 + $0x40] sm:$0xff]  ;;  %v408_v13 = vld [vmem:[%s2229_s11 + $0x50] sm:$0xff] }
  0x3e   : > { %403 = vst [vmem:[%s2234_s10 + $0x10] sm:$0xff] %v402_v10  ;;  %v410_v14 = vld [vmem:[%s2229_s11 + $0x60] sm:$0xff]  ;;  %v412_v15 = vld [vmem:[%s2229_s11 + $0x70] sm:$0xff] }
  0x3f   : > { %405 = vst [vmem:[%s2234_s10 + $0x18] sm:$0xff] %v404_v11  ;;  %v414_v16 = vld [vmem:[%s2229_s11 + $0x80] sm:$0xff]  ;;  %v416_v17 = vld [vmem:[%s2229_s11 + $0x90] sm:$0xff] }
  0x40   : > { %407 = vst [vmem:[%s2234_s10 + $0x20] sm:$0xff] %v406_v12  ;;  %v418_v18 = vld [vmem:[%s2229_s11 + $0xa0] sm:$0xff]  ;;  %v420_v19 = vld [vmem:[%s2229_s11 + $0xb0] sm:$0xff] }
  0x41   : > { %409 = vst [vmem:[%s2234_s10 + $0x28] sm:$0xff] %v408_v13  ;;  %v422_v20 = vld [vmem:[%s2229_s11 + $0xc0] sm:$0xff]  ;;  %v424_v21 = vld [vmem:[%s2229_s11 + $0xd0] sm:$0xff] }
  0x42   : > { %411 = vst [vmem:[%s2234_s10 + $0x30] sm:$0xff] %v410_v14  ;;  %v426_v22 = vld [vmem:[%s2229_s11 + $0xe0] sm:$0xff]  ;;  %v428_v23 = vld [vmem:[%s2229_s11 + $0xf0] sm:$0xff] }
  0x43   : > { %413 = vst [vmem:[%s2234_s10 + $0x38] sm:$0xff] %v412_v15  ;;  %v430_v24 = vld [vmem:[%s2229_s11 + $0x100] sm:$0xff]  ;;  %v432_v25 = vld [vmem:[%s2229_s11 + $0x110] sm:$0xff] }
  0x44   : > { %415 = vst [vmem:[%s2234_s10 + $0x40] sm:$0xff] %v414_v16  ;;  %v434_v26 = vld [vmem:[%s2229_s11 + $0x120] sm:$0xff]  ;;  %v436_v27 = vld [vmem:[%s2229_s11 + $0x130] sm:$0xff] }
  0x45   : > { %417 = vst [vmem:[%s2234_s10 + $0x48] sm:$0xff] %v416_v17  ;;  %v438_v28 = vld [vmem:[%s2229_s11 + $0x140] sm:$0xff]  ;;  %v440_v29 = vld [vmem:[%s2229_s11 + $0x150] sm:$0xff] }
  0x46   : > { %419 = vst [vmem:[%s2234_s10 + $0x50] sm:$0xff] %v418_v18  ;;  %v442_v30 = vld [vmem:[%s2229_s11 + $0x160] sm:$0xff]  ;;  %v444_v31 = vld [vmem:[%s2229_s11 + $0x170] sm:$0xff] }
  0x47   : > { %421 = vst [vmem:[%s2234_s10 + $0x58] sm:$0xff] %v420_v19  ;;  %v446_v32 = vld [vmem:[%s2229_s11 + $0x180] sm:$0xff]  ;;  %v448_v33 = vld [vmem:[%s2229_s11 + $0x190] sm:$0xff] }
  0x48   : > { %423 = vst [vmem:[%s2234_s10 + $0x60] sm:$0xff] %v422_v20  ;;  %v450_v34 = vld [vmem:[%s2229_s11 + $0x1a0] sm:$0xff]  ;;  %v452_v35 = vld [vmem:[%s2229_s11 + $0x1b0] sm:$0xff] }
  0x49   : > { %425 = vst [vmem:[%s2234_s10 + $0x68] sm:$0xff] %v424_v21  ;;  %v454_v36 = vld [vmem:[%s2229_s11 + $0x1c0] sm:$0xff]  ;;  %v456_v37 = vld [vmem:[%s2229_s11 + $0x1d0] sm:$0xff] }
  0x4a   : > { %427 = vst [vmem:[%s2234_s10 + $0x70] sm:$0xff] %v426_v22  ;;  %v458_v38 = vld [vmem:[%s2229_s11 + $0x1e0] sm:$0xff]  ;;  %v460_v39 = vld [vmem:[%s2229_s11 + $0x1f0] sm:$0xff] }
  0x4b   : > { %429 = vst [vmem:[%s2234_s10 + $0x78] sm:$0xff] %v428_v23  ;;  %v462_v40 = vld [vmem:[%s2229_s11 + $0x200] sm:$0xff]  ;;  %v464_v41 = vld [vmem:[%s2229_s11 + $0x210] sm:$0xff] }
  0x4c   : > { %431 = vst [vmem:[%s2234_s10 + $0x80] sm:$0xff] %v430_v24  ;;  %v466_v42 = vld [vmem:[%s2229_s11 + $0x220] sm:$0xff]  ;;  %v468_v43 = vld [vmem:[%s2229_s11 + $0x230] sm:$0xff] }
  0x4d   : > { %433 = vst [vmem:[%s2234_s10 + $0x88] sm:$0xff] %v432_v25  ;;  %v470_v44 = vld [vmem:[%s2229_s11 + $0x240] sm:$0xff]  ;;  %v472_v45 = vld [vmem:[%s2229_s11 + $0x250] sm:$0xff] }
  0x4e   : > { %435 = vst [vmem:[%s2234_s10 + $0x90] sm:$0xff] %v434_v26  ;;  %v474_v46 = vld [vmem:[%s2229_s11 + $0x260] sm:$0xff]  ;;  %v476_v47 = vld [vmem:[%s2229_s11 + $0x270] sm:$0xff] }
  0x4f   : > { %437 = vst [vmem:[%s2234_s10 + $0x98] sm:$0xff] %v436_v27  ;;  %v478_v48 = vld [vmem:[%s2229_s11 + $0x280] sm:$0xff]  ;;  %v480_v49 = vld [vmem:[%s2229_s11 + $0x290] sm:$0xff] }
  0x50   : > { %439 = vst [vmem:[%s2234_s10 + $0xa0] sm:$0xff] %v438_v28  ;;  %v482_v50 = vld [vmem:[%s2229_s11 + $0x2a0] sm:$0xff]  ;;  %v484_v51 = vld [vmem:[%s2229_s11 + $0x2b0] sm:$0xff] }
  0x51   : > { %441 = vst [vmem:[%s2234_s10 + $0xa8] sm:$0xff] %v440_v29  ;;  %v486_v52 = vld [vmem:[%s2229_s11 + $0x2c0] sm:$0xff]  ;;  %v488_v53 = vld [vmem:[%s2229_s11 + $0x2d0] sm:$0xff] }
  0x52   : > { %443 = vst [vmem:[%s2234_s10 + $0xb0] sm:$0xff] %v442_v30  ;;  %v490_v54 = vld [vmem:[%s2229_s11 + $0x2e0] sm:$0xff]  ;;  %v492_v55 = vld [vmem:[%s2229_s11 + $0x2f0] sm:$0xff] }
  0x53   : > { %445 = vst [vmem:[%s2234_s10 + $0xb8] sm:$0xff] %v444_v31  ;;  %v494_v56 = vld [vmem:[%s2229_s11 + $0x300] sm:$0xff]  ;;  %v496_v57 = vld [vmem:[%s2229_s11 + $0x310] sm:$0xff] }
  0x54   : > { %447 = vst [vmem:[%s2234_s10 + $0xc0] sm:$0xff] %v446_v32  ;;  %v498_v58 = vld [vmem:[%s2229_s11 + $0x320] sm:$0xff]  ;;  %v500_v59 = vld [vmem:[%s2229_s11 + $0x330] sm:$0xff] }
  0x55   : > { %449 = vst [vmem:[%s2234_s10 + $0xc8] sm:$0xff] %v448_v33  ;;  %v502_v60 = vld [vmem:[%s2229_s11 + $0x340] sm:$0xff]  ;;  %v504_v61 = vld [vmem:[%s2229_s11 + $0x350] sm:$0xff] }
  0x56   : > { %451 = vst [vmem:[%s2234_s10 + $0xd0] sm:$0xff] %v450_v34  ;;  %v506_v62 = vld [vmem:[%s2229_s11 + $0x360] sm:$0xff]  ;;  %v508_v63 = vld [vmem:[%s2229_s11 + $0x370] sm:$0xff] }
  0x57   : > { %453 = vst [vmem:[%s2234_s10 + $0xd8] sm:$0xff] %v452_v35  ;;  %v510_v0 = vld [vmem:[%s2229_s11 + $0x380] sm:$0xff]  ;;  %v512_v1 = vld [vmem:[%s2229_s11 + $0x390] sm:$0xff] }
  0x58   : > { %455 = vst [vmem:[%s2234_s10 + $0xe0] sm:$0xff] %v454_v36  ;;  %v514_v2 = vld [vmem:[%s2229_s11 + $0x3a0] sm:$0xff]  ;;  %v516_v3 = vld [vmem:[%s2229_s11 + $0x3b0] sm:$0xff] }
  0x59   : > { %457 = vst [vmem:[%s2234_s10 + $0xe8] sm:$0xff] %v456_v37  ;;  %v518_v4 = vld [vmem:[%s2229_s11 + $0x3c0] sm:$0xff]  ;;  %v520_v5 = vld [vmem:[%s2229_s11 + $0x3d0] sm:$0xff] }
  0x5a   : > { %459 = vst [vmem:[%s2234_s10 + $0xf0] sm:$0xff] %v458_v38  ;;  %v522_v6 = vld [vmem:[%s2229_s11 + $0x3e0] sm:$0xff]  ;;  %v524_v7 = vld [vmem:[%s2229_s11 + $0x3f0] sm:$0xff] }
  0x5b   : > { %461 = vst [vmem:[%s2234_s10 + $0xf8] sm:$0xff] %v460_v39 }
  0x5c   : > { %463 = vst [vmem:[%s2234_s10 + $0x100] sm:$0xff] %v462_v40 }
  0x5d   : > { %465 = vst [vmem:[%s2234_s10 + $0x108] sm:$0xff] %v464_v41 }
  0x5e   : > { %467 = vst [vmem:[%s2234_s10 + $0x110] sm:$0xff] %v466_v42 }
  0x5f   : > { %469 = vst [vmem:[%s2234_s10 + $0x118] sm:$0xff] %v468_v43 }
  0x60   : > { %471 = vst [vmem:[%s2234_s10 + $0x120] sm:$0xff] %v470_v44 }
  0x61   : > { %473 = vst [vmem:[%s2234_s10 + $0x128] sm:$0xff] %v472_v45 }
  0x62   : > { %475 = vst [vmem:[%s2234_s10 + $0x130] sm:$0xff] %v474_v46 }
  0x63   : > { %477 = vst [vmem:[%s2234_s10 + $0x138] sm:$0xff] %v476_v47 }
  0x64   : > { %479 = vst [vmem:[%s2234_s10 + $0x140] sm:$0xff] %v478_v48 }
  0x65   : > { %481 = vst [vmem:[%s2234_s10 + $0x148] sm:$0xff] %v480_v49 }
  0x66   : > { %483 = vst [vmem:[%s2234_s10 + $0x150] sm:$0xff] %v482_v50 }
  0x67   : > { %485 = vst [vmem:[%s2234_s10 + $0x158] sm:$0xff] %v484_v51 }
  0x68   : > { %487 = vst [vmem:[%s2234_s10 + $0x160] sm:$0xff] %v486_v52 }
  0x69   : > { %489 = vst [vmem:[%s2234_s10 + $0x168] sm:$0xff] %v488_v53 }
  0x6a   : > { %491 = vst [vmem:[%s2234_s10 + $0x170] sm:$0xff] %v490_v54 }
  0x6b   : > { %493 = vst [vmem:[%s2234_s10 + $0x178] sm:$0xff] %v492_v55 }
  0x6c   : > { %495 = vst [vmem:[%s2234_s10 + $0x180] sm:$0xff] %v494_v56 }
  0x6d   : > { %497 = vst [vmem:[%s2234_s10 + $0x188] sm:$0xff] %v496_v57 }
  0x6e   : > { %499 = vst [vmem:[%s2234_s10 + $0x190] sm:$0xff] %v498_v58 }
  0x6f   : > { %501 = vst [vmem:[%s2234_s10 + $0x198] sm:$0xff] %v500_v59 }
  0x70   : > { %503 = vst [vmem:[%s2234_s10 + $0x1a0] sm:$0xff] %v502_v60 }
  0x71   : > { %505 = vst [vmem:[%s2234_s10 + $0x1a8] sm:$0xff] %v504_v61 }
  0x72   : > { %507 = vst [vmem:[%s2234_s10 + $0x1b0] sm:$0xff] %v506_v62 }
  0x73   : > { %509 = vst [vmem:[%s2234_s10 + $0x1b8] sm:$0xff] %v508_v63 }
  0x74   : > { %511 = vst [vmem:[%s2234_s10 + $0x1c0] sm:$0xff] %v510_v0 }
  0x75   : > { %513 = vst [vmem:[%s2234_s10 + $0x1c8] sm:$0xff] %v512_v1 }
  0x76   : > { %515 = vst [vmem:[%s2234_s10 + $0x1d0] sm:$0xff] %v514_v2 }
  0x77   : > { %517 = vst [vmem:[%s2234_s10 + $0x1d8] sm:$0xff] %v516_v3 }
  0x78   : > { %519 = vst [vmem:[%s2234_s10 + $0x1e0] sm:$0xff] %v518_v4 }
  0x79   : > { %521 = vst [vmem:[%s2234_s10 + $0x1e8] sm:$0xff] %v520_v5 }
  0x7a   : > { %523 = vst [vmem:[%s2234_s10 + $0x1f0] sm:$0xff] %v522_v6 }
  0x7b   : > { %525 = vst [vmem:[%s2234_s10 + $0x1f8] sm:$0xff] %v524_v7 }
  0x7c PF: > { %p1535_p0 = scmp.ge.s32.totalorder %s2087_s25, 1  ;;  %p538_p1 = scmp.lt.s32.totalorder %s2087_s25, 17 }
  0x7e   : > { %p539_p2 = pnand %p1535_p0, %p538_p1 }
  0x7f   : > { %s545_s0 = sand.u32 (!%p539_p2), 1, %s2063_s19   ;;  %s552_s28 = sand.u32 (!%p539_p2), 1, %s2055_s17  }
  0x80   : > { %542 = sbr.rel (%p539_p2) target bundleno = 421 (0x1a5), region = 85  ;;  %s1536_s26 = sshll.u32 (!%p539_p2), %s545_s0, 6 }
  0x81   : > { %s1537_s5 = sshll.u32 (!%p539_p2), %s552_s28, 9  ;;  %s579_s29 = sand.u32 (!%p539_p2), 1, %s2047_s15  }
  0x82   : > { %s1539_s30 = sshll.u32 (!%p539_p2), %s2075_s22, 1  ;;  %s1538_s8 = sshll.u32 (!%p539_p2), %s579_s29, 6 }
  0x83   : > { %p598_p3 = scmp.lt.s32.totalorder (!%p539_p2), %s1539_s30, 3  ;;  %s2379_s17 = scalar_lea.vmem (!%p539_p2), [#allocation3], %s1536_s26 }
  0x84   : > { %s2381_s15 = scalar_lea.vmem (!%p539_p2), [#allocation4], %s1537_s5  ;;  %s2383_s0 = scalar_lea.vmem (!%p539_p2), [#allocation5], %s1538_s8 }
  0x85   : > { %s2656_s30 = smov (!%p598_p3, %s1539_s30), 3  ;;  %p1542_p4 = scmp.ne.s32.totalorder %s2071_s21, 0 }
  0x86   : > { %s600_s11 = scalar_lea.vmem %s2623_s2, %s2656_s30  ;;  %s1541_s10 = sshll.u32 %s2656_s30, 3 }
  0x87   : > { %s2377_s19 = scalar_lea.vmem %s2625_s4, %s1541_s10  ;;  %617 = sbr.rel (%p1542_p4) target bundleno = 149 (0x95), region = 97 }
  0x8c   : > { %v2089_v8 = vmov 0.0  }
  0x8d   : > { %618 = vst [vmem:[#allocation2 + $0x30] sm:$0xff] %v2089_v8 }
  0x8e   : > { %619 = vst [vmem:[#allocation2] sm:$0xff] %v2089_v8 }
  0x8f   : > { %620 = vst [vmem:[#allocation2 + $0x18] sm:$0xff] %v2089_v8 }
  0x90   : > { %621 = vst [vmem:[#allocation2 + $0x10] sm:$0xff] %v2089_v8 }
  0x91   : > { %622 = vst [vmem:[#allocation2 + $0x8] sm:$0xff] %v2089_v8 }
  0x92   : > { %623 = vst [vmem:[#allocation2 + $0x20] sm:$0xff] %v2089_v8 }
  0x93   : > { %624 = vst [vmem:[#allocation2 + $0x28] sm:$0xff] %v2089_v8 }
  0x94   : > { %625 = vst [vmem:[#allocation2 + $0x38] sm:$0xff] %v2089_v8 }
  0x95 PF: > { %v1633_v9 = vld [vmem:[%s2381_s15 + $0x70] sm:$0xf]  ;;  %v1862_v10 = vld [vmem:[%s2381_s15 + $0x74] sm:$0xf0]  ;;  %v1625_v20 = vld [vmem:[%s2381_s15 + $0x60] sm:$0xf] }
  0x96   : > { %v1697_v11 = vld [vmem:[%s2381_s15 + $0xf0] sm:$0xf]  ;;  %v1634_v12 = vor.u32 %v1862_v10, %v1633_v9  ;;  %v1878_v13 = vld [vmem:[%s2381_s15 + $0xf4] sm:$0xf0]  ;;  %v1860_v22 = vld [vmem:[%s2381_s15 + $0x64] sm:$0xf0] }
  0x97   : > { %v1761_v14 = vld [vmem:[%s2381_s15 + $0x170] sm:$0xf]  ;;  %v1894_v15 = vld [vmem:[%s2381_s15 + $0x174] sm:$0xf0]  ;;  %v1698_v16 = vor.u32 %v1878_v13, %v1697_v11  ;;  %v1689_v23 = vld [vmem:[%s2381_s15 + $0xe0] sm:$0xf]  ;;  %v1626_v25 = vor.u32 %v1860_v22, %v1625_v20 }
  0x98   : > { %v1762_v17 = vor.u32 %v1894_v15, %v1761_v14  ;;  %v1825_v18 = vld [vmem:[%s2381_s15 + $0x1f0] sm:$0xf]  ;;  %v1910_v19 = vld [vmem:[%s2381_s15 + $0x1f4] sm:$0xf0]  ;;  %1066 = vmatpush.bf16.msra.mxu0 %v1634_v12  ;;  %v1876_v24 = vld [vmem:[%s2381_s15 + $0xe4] sm:$0xf0] }
  0x99   : > { %v1826_v21 = vor.u32 %v1910_v19, %v1825_v18  ;;  %1085 = vmatpush.bf16.msra.mxu1 %v1698_v16  ;;  %v1690_v26 = vor.u32 %v1876_v24, %v1689_v23  ;;  %v1753_v27 = vld [vmem:[%s2381_s15 + $0x160] sm:$0xf]  ;;  %v1892_v28 = vld [vmem:[%s2381_s15 + $0x164] sm:$0xf0]  ;;  %v1617_v32 = vld [vmem:[%s2381_s15 + $0x50] sm:$0xf] }
  0x9a   : > { %1104 = vmatpush.bf16.msra.mxu2 %v1762_v17  ;;  %v1817_v29 = vld [vmem:[%s2381_s15 + $0x1e0] sm:$0xf]  ;;  %v1754_v30 = vor.u32 %v1892_v28, %v1753_v27  ;;  %v1908_v31 = vld [vmem:[%s2381_s15 + $0x1e4] sm:$0xf0]  ;;  %v1858_v33 = vld [vmem:[%s2381_s15 + $0x54] sm:$0xf0] }
  0x9b   : > { %1123 = vmatpush.bf16.msra.mxu3 %v1826_v21  ;;  %v1818_v34 = vor.u32 %v1908_v31, %v1817_v29  ;;  %v1681_v35 = vld [vmem:[%s2381_s15 + $0xd0] sm:$0xf]  ;;  %v1874_v36 = vld [vmem:[%s2381_s15 + $0xd4] sm:$0xf0]  ;;  %v1618_v38 = vor.u32 %v1858_v33, %v1617_v32  ;;  %v1609_v44 = vld [vmem:[%s2381_s15 + $0x40] sm:$0xf] }
  0x9c   : > { %v1745_v37 = vld [vmem:[%s2381_s15 + $0x150] sm:$0xf]  ;;  %1067 = vmatpush.bf16.msra.mxu0 %v1626_v25  ;;  %v1890_v39 = vld [vmem:[%s2381_s15 + $0x154] sm:$0xf0]  ;;  %v1682_v42 = vor.u32 %v1874_v36, %v1681_v35  ;;  %v1856_v45 = vld [vmem:[%s2381_s15 + $0x44] sm:$0xf0] }
  0x9d   : > { %v1809_v40 = vld [vmem:[%s2381_s15 + $0x1d0] sm:$0xf]  ;;  %v1906_v41 = vld [vmem:[%s2381_s15 + $0x1d4] sm:$0xf0]  ;;  %1086 = vmatpush.bf16.msra.mxu1 %v1690_v26  ;;  %v1746_v43 = vor.u32 %v1890_v39, %v1745_v37  ;;  %v1673_v46 = vld [vmem:[%s2381_s15 + $0xc0] sm:$0xf]  ;;  %v1610_v53 = vor.u32 %v1856_v45, %v1609_v44 }
  0x9e   : > { %1105 = vmatpush.bf16.msra.mxu2 %v1754_v30  ;;  %v1810_v47 = vor.u32 %v1906_v41, %v1809_v40  ;;  %v1872_v48 = vld [vmem:[%s2381_s15 + $0xc4] sm:$0xf0]  ;;  %v1737_v49 = vld [vmem:[%s2381_s15 + $0x140] sm:$0xf]  ;;  %v1601_v56 = vld [vmem:[%s2381_s15 + $0x30] sm:$0xf] }
  0x9f   : > { %1124 = vmatpush.bf16.msra.mxu3 %v1818_v34  ;;  %v1888_v50 = vld [vmem:[%s2381_s15 + $0x144] sm:$0xf0]  ;;  %v1801_v51 = vld [vmem:[%s2381_s15 + $0x1c0] sm:$0xf]  ;;  %v1674_v54 = vor.u32 %v1872_v48, %v1673_v46  ;;  %v1854_v57 = vld [vmem:[%s2381_s15 + $0x34] sm:$0xf0] }
  0xa0   : > { %v1904_v52 = vld [vmem:[%s2381_s15 + $0x1c4] sm:$0xf0]  ;;  %1068 = vmatpush.bf16.msra.mxu0 %v1618_v38  ;;  %v1738_v55 = vor.u32 %v1888_v50, %v1737_v49  ;;  %v1665_v58 = vld [vmem:[%s2381_s15 + $0xb0] sm:$0xf]  ;;  %v1870_v60 = vld [vmem:[%s2381_s15 + $0xb4] sm:$0xf0]  ;;  %v1602_v1 = vor.u32 %v1854_v57, %v1601_v56 }
  0xa1   : > { %1087 = vmatpush.bf16.msra.mxu1 %v1682_v42  ;;  %v1802_v59 = vor.u32 %v1904_v52, %v1801_v51  ;;  %v1729_v61 = vld [vmem:[%s2381_s15 + $0x130] sm:$0xf]  ;;  %v1886_v62 = vld [vmem:[%s2381_s15 + $0x134] sm:$0xf0]  ;;  %v1666_v2 = vor.u32 %v1870_v60, %v1665_v58  ;;  %v1593_v4 = vld [vmem:[%s2381_s15 + $0x20] sm:$0xf] }
  0xa2   : > { %1106 = vmatpush.bf16.msra.mxu2 %v1746_v43  ;;  %v1793_v63 = vld [vmem:[%s2381_s15 + $0x1b0] sm:$0xf]  ;;  %v1902_v0 = vld [vmem:[%s2381_s15 + $0x1b4] sm:$0xf0]  ;;  %v1730_v3 = vor.u32 %v1886_v62, %v1729_v61  ;;  %v1852_v5 = vld [vmem:[%s2381_s15 + $0x24] sm:$0xf0] }
  0xa3   : > { %1125 = vmatpush.bf16.msra.mxu3 %v1810_v47  ;;  %v1657_v6 = vld [vmem:[%s2381_s15 + $0xa0] sm:$0xf]  ;;  %v1794_v7 = vor.u32 %v1902_v0, %v1793_v63  ;;  %v1868_v8 = vld [vmem:[%s2381_s15 + $0xa4] sm:$0xf0]  ;;  %v1594_v13 = vor.u32 %v1852_v5, %v1593_v4  ;;  %v1585_v16 = vld [vmem:[%s2381_s15 + $0x10] sm:$0xf] }
  0xa4   : > { %1069 = vmatpush.bf16.msra.mxu0 %v1610_v53  ;;  %v1721_v9 = vld [vmem:[%s2381_s15 + $0x120] sm:$0xf]  ;;  %v1884_v10 = vld [vmem:[%s2381_s15 + $0x124] sm:$0xf0]  ;;  %v1658_v14 = vor.u32 %v1868_v8, %v1657_v6  ;;  %v1850_v17 = vld [vmem:[%s2381_s15 + $0x14] sm:$0xf0] }
  0xa5   : > { %1088 = vmatpush.bf16.msra.mxu1 %v1674_v54  ;;  %v1785_v11 = vld [vmem:[%s2381_s15 + $0x1a0] sm:$0xf]  ;;  %v1900_v12 = vld [vmem:[%s2381_s15 + $0x1a4] sm:$0xf0]  ;;  %v1722_v15 = vor.u32 %v1884_v10, %v1721_v9  ;;  %v1649_v18 = vld [vmem:[%s2381_s15 + $0x90] sm:$0xf]  ;;  %v1586_v26 = vor.u32 %v1850_v17, %v1585_v16 }
  0xa6   : > { %1107 = vmatpush.bf16.msra.mxu2 %v1738_v55  ;;  %v1786_v19 = vor.u32 %v1900_v12, %v1785_v11  ;;  %v1866_v20 = vld [vmem:[%s2381_s15 + $0x94] sm:$0xf0]  ;;  %v1713_v21 = vld [vmem:[%s2381_s15 + $0x110] sm:$0xf]  ;;  %v1577_v25 = vld [vmem:[%s2381_s15] sm:$0xf] }
  0xa7   : > { %1126 = vmatpush.bf16.msra.mxu3 %v1802_v59  ;;  %v1882_v22 = vld [vmem:[%s2381_s15 + $0x114] sm:$0xf0]  ;;  %v1777_v23 = vld [vmem:[%s2381_s15 + $0x190] sm:$0xf]  ;;  %v1848_v27 = vld [vmem:[%s2381_s15 + $0x4] sm:$0xf0]  ;;  %v1650_v30 = vor.u32 %v1866_v20, %v1649_v18 }
  0xa8   : > { %1070 = vmatpush.bf16.msra.mxu0 %v1602_v1  ;;  %v1898_v24 = vld [vmem:[%s2381_s15 + $0x194] sm:$0xf0]  ;;  %v1641_v28 = vld [vmem:[%s2381_s15 + $0x80] sm:$0xf]  ;;  %v1864_v29 = vld [vmem:[%s2381_s15 + $0x84] sm:$0xf0]  ;;  %v1714_v31 = vor.u32 %v1882_v22, %v1713_v21  ;;  %v1578_v43 = vor.u32 %v1848_v27, %v1577_v25 }
  0xa9   : > { %1089 = vmatpush.bf16.msra.mxu1 %v1666_v2  ;;  %v1705_v32 = vld [vmem:[%s2381_s15 + $0x100] sm:$0xf]  ;;  %v1880_v33 = vld [vmem:[%s2381_s15 + $0x104] sm:$0xf0]  ;;  %v1778_v35 = vor.u32 %v1898_v24, %v1777_v23  ;;  %v1841_v38 = vld [vmem:[%s2379_s17 + $0xc] sm:$0xf0]  ;;  %v1642_v47 = vor.u32 %v1864_v29, %v1641_v28 }
  0xaa   : > { %1108 = vmatpush.bf16.msra.mxu2 %v1730_v3  ;;  %v1769_v34 = vld [vmem:[%s2381_s15 + $0x180] sm:$0xf]  ;;  %v1896_v36 = vld [vmem:[%s2381_s15 + $0x184] sm:$0xf0]  ;;  %v1839_v39 = vld [vmem:[%s2379_s17 + $0x4] sm:$0xf]  ;;  %v1706_v48 = vor.u32 %v1880_v33, %v1705_v32 }
  0xab   : > { %1127 = vmatpush.bf16.msra.mxu3 %v1794_v7  ;;  %v1545_v37 = vld [vmem:[%s2379_s17] sm:$0xf]  ;;  %v1547_v40 = vld [vmem:[%s2379_s17 + $0x10] sm:$0xf0]  ;;  %v1763_v42 = vld [vmem:[%s2381_s15 + $0x178] sm:$0xf0]  ;;  %v1770_v52 = vor.u32 %v1896_v36, %v1769_v34 }
  0xac   : > { %1071 = vmatpush.bf16.msra.mxu0 %v1594_v13  ;;  %v1893_v41 = vld [vmem:[%s2381_s15 + $0x174] sm:$0xf]  ;;  %v1553_v44 = vld [vmem:[%s2379_s17 + $0x8] sm:$0xf]  ;;  %v1699_v46 = vld [vmem:[%s2381_s15 + $0xf8] sm:$0xf0]  ;;  %v2465_v57 = vor.u32 %v1841_v38, %v1545_v37  ;;  %v2470_v62 = vor.u32 %v1839_v39, %v1547_v40 }
  0xad   : > { %1090 = vmatpush.bf16.msra.mxu1 %v1658_v14  ;;  %v1877_v45 = vld [vmem:[%s2381_s15 + $0xf4] sm:$0xf]  ;;  %v1842_v49 = vld [vmem:[%s2379_s17 + $0x14] sm:$0xf0]  ;;  %v1840_v50 = vld [vmem:[%s2379_s17 + $0xc] sm:$0xf]  ;;  %v1766_v53 = vor.u32 %v1893_v41, %v1763_v42 }
  0xae   : > { %1109 = vmatpush.bf16.msra.mxu2 %v1722_v15  ;;  %v1555_v51 = vld [vmem:[%s2379_s17 + $0x18] sm:$0xf0]  ;;  %v1861_v54 = vld [vmem:[%s2381_s15 + $0x74] sm:$0xf]  ;;  %v1702_v58 = vor.u32 %v1877_v45, %v1699_v46  ;;  %v1891_v60 = vld [vmem:[%s2381_s15 + $0x164] sm:$0xf]  ;;  %v2472_v63 = vor.u32 %v1842_v49, %v1553_v44 }
  0xaf   : > { %1128 = vmatpush.bf16.msra.mxu3 %v1786_v19  ;;  %v1635_v55 = vld [vmem:[%s2381_s15 + $0x78] sm:$0xf0]  ;;  %v1909_v56 = vld [vmem:[%s2381_s15 + $0x1f4] sm:$0xf]  ;;  %v1755_v61 = vld [vmem:[%s2381_s15 + $0x168] sm:$0xf0]  ;;  %v2476_v2 = vor.u32 %v1840_v50, %v1555_v51 }
  0xb0   : > { %1072 = vmatpush.bf16.msra.mxu0 %v1586_v26  ;;  %v1827_v59 = vld [vmem:[%s2381_s15 + $0x1f8] sm:$0xf0]  ;;  %v1875_v0 = vld [vmem:[%s2381_s15 + $0xe4] sm:$0xf]  ;;  %v1691_v1 = vld [vmem:[%s2381_s15 + $0xe8] sm:$0xf0]  ;;  %v1638_v3 = vor.u32 %v1861_v54, %v1635_v55  ;;  %v1758_v5 = vor.u32 %v1891_v60, %v1755_v61 }
  0xb1   : > { %1091 = vmatpush.bf16.msra.mxu1 %v1650_v30  ;;  %v1830_v4 = vor.u32 %v1909_v56, %v1827_v59  ;;  %v1859_v6 = vld [vmem:[%s2381_s15 + $0x64] sm:$0xf]  ;;  %v1627_v7 = vld [vmem:[%s2381_s15 + $0x68] sm:$0xf0]  ;;  %v1694_v9 = vor.u32 %v1875_v0, %v1691_v1  ;;  %v1889_v11 = vld [vmem:[%s2381_s15 + $0x154] sm:$0xf] }
  0xb2   : > { %1110 = vmatpush.bf16.msra.mxu2 %v1714_v31  ;;  %v1907_v8 = vld [vmem:[%s2381_s15 + $0x1e4] sm:$0xf]  ;;  %v1819_v10 = vld [vmem:[%s2381_s15 + $0x1e8] sm:$0xf0]  ;;  %v1747_v12 = vld [vmem:[%s2381_s15 + $0x158] sm:$0xf0]  ;;  %v1630_v15 = vor.u32 %v1859_v6, %v1627_v7 }
  0xb3   : > { %1129 = vmatpush.bf16.msra.mxu3 %v1778_v35  ;;  %v1873_v13 = vld [vmem:[%s2381_s15 + $0xd4] sm:$0xf]  ;;  %v1683_v14 = vld [vmem:[%s2381_s15 + $0xd8] sm:$0xf0]  ;;  %v1822_v16 = vor.u32 %v1907_v8, %v1819_v10  ;;  %v1750_v17 = vor.u32 %v1889_v11, %v1747_v12  ;;  %v1887_v23 = vld [vmem:[%s2381_s15 + $0x144] sm:$0xf] }
  0xb4   : > { %1073 = vmatpush.bf16.msra.mxu0 %v1578_v43  ;;  %v1857_v18 = vld [vmem:[%s2381_s15 + $0x54] sm:$0xf]  ;;  %v1619_v19 = vld [vmem:[%s2381_s15 + $0x58] sm:$0xf0]  ;;  %v1686_v21 = vor.u32 %v1873_v13, %v1683_v14  ;;  %v1739_v24 = vld [vmem:[%s2381_s15 + $0x148] sm:$0xf0] }
  0xb5   : > { %1092 = vmatpush.bf16.msra.mxu1 %v1642_v47  ;;  %v1905_v20 = vld [vmem:[%s2381_s15 + $0x1d4] sm:$0xf]  ;;  %v1811_v22 = vld [vmem:[%s2381_s15 + $0x1d8] sm:$0xf0]  ;;  %v1871_v25 = vld [vmem:[%s2381_s15 + $0xc4] sm:$0xf]  ;;  %v1622_v27 = vor.u32 %v1857_v18, %v1619_v19  ;;  %v1742_v32 = vor.u32 %v1887_v23, %v1739_v24 }
  0xb6   : > { %1111 = vmatpush.bf16.msra.mxu2 %v1706_v48  ;;  %v1675_v26 = vld [vmem:[%s2381_s15 + $0xc8] sm:$0xf0]  ;;  %v1855_v28 = vld [vmem:[%s2381_s15 + $0x44] sm:$0xf]  ;;  %v1814_v31 = vor.u32 %v1905_v20, %v1811_v22  ;;  %v1561_v34 = vld [vmem:[%s2379_s17 + $0x20] sm:$0xf] }
  0xb7   : > { %1130 = vmatpush.bf16.msra.mxu3 %v1770_v52  ;;  %1074 = vmatmul.bf16.vlgmr.msra.gmra.mxu0 %v2465_v57  ;;  %v1611_v29 = vld [vmem:[%s2381_s15 + $0x48] sm:$0xf0]  ;;  %v1903_v30 = vld [vmem:[%s2381_s15 + $0x1c4] sm:$0xf]  ;;  %v1845_v35 = vld [vmem:[%s2379_s17 + $0x2c] sm:$0xf0]  ;;  %v1678_v36 = vor.u32 %v1871_v25, %v1675_v26 }
  0xb8   : > { %1093 = vmatmul.bf16.vlgmr.msra.gmra.mxu1 %v2470_v62  ;;  %1142 = vmatpush.bf16.msrb.mxu0 %v1638_v3  ;;  %v1803_v33 = vld [vmem:[%s2381_s15 + $0x1c8] sm:$0xf0]  ;;  %v1843_v37 = vld [vmem:[%s2379_s17 + $0x24] sm:$0xf]  ;;  %v1563_v38 = vld [vmem:[%s2379_s17 + $0x30] sm:$0xf0]  ;;  %v1614_v44 = vor.u32 %v1855_v28, %v1611_v29 }
  0xb9   : > { %1161 = vmatpush.bf16.msrb.mxu1 %v1702_v58  ;;  %1112 = vmatmul.bf16.vlgmr.msra.gmra.mxu2 %v2472_v63  ;;  %v1885_v39 = vld [vmem:[%s2381_s15 + $0x134] sm:$0xf]  ;;  %v1731_v40 = vld [vmem:[%s2381_s15 + $0x138] sm:$0xf0]  ;;  %v1569_v41 = vld [vmem:[%s2379_s17 + $0x28] sm:$0xf]  ;;  %v1806_v48 = vor.u32 %v1903_v30, %v1803_v33  ;;  %v2522_v59 = vor.u32 %v1843_v37, %v1563_v38 }
  0xba   : > { %1180 = vmatpush.bf16.msrb.mxu2 %v1766_v53  ;;  %1131 = vmatmul.bf16.vlgmr.msra.gmra.mxu3 %v2476_v2  ;;  %v1869_v42 = vld [vmem:[%s2381_s15 + $0xb4] sm:$0xf]  ;;  %v1667_v43 = vld [vmem:[%s2381_s15 + $0xb8] sm:$0xf0]  ;;  %v1846_v45 = vld [vmem:[%s2379_s17 + $0x34] sm:$0xf0]  ;;  %v1734_v49 = vor.u32 %v1885_v39, %v1731_v40  ;;  %v2517_v53 = vor.u32 %v1845_v35, %v1561_v34 }
  0xbb   : > { %1199 = vmatpush.bf16.msrb.mxu3 %v1830_v4  ;;  %v1844_v46 = vld [vmem:[%s2379_s17 + $0x2c] sm:$0xf]  ;;  %v1571_v47 = vld [vmem:[%s2379_s17 + $0x38] sm:$0xf0]  ;;  %v1853_v50 = vld [vmem:[%s2381_s15 + $0x34] sm:$0xf]  ;;  %v1670_v54 = vor.u32 %v1869_v42, %v1667_v43  ;;  %v2524_v60 = vor.u32 %v1846_v45, %v1569_v41 }
  0xbc   : > { %1143 = vmatpush.bf16.msrb.mxu0 %v1630_v15  ;;  %v1603_v51 = vld [vmem:[%s2381_s15 + $0x38] sm:$0xf0]  ;;  %v1901_v52 = vld [vmem:[%s2381_s15 + $0x1b4] sm:$0xf]  ;;  %v1883_v56 = vld [vmem:[%s2381_s15 + $0x124] sm:$0xf]  ;;  %v1574_v1 = vor.u32 %v1844_v46, %v1571_v47 }
  0xbd   : > { %1162 = vmatpush.bf16.msrb.mxu1 %v1694_v9  ;;  %v1795_v55 = vld [vmem:[%s2381_s15 + $0x1b8] sm:$0xf0]  ;;  %v1723_v58 = vld [vmem:[%s2381_s15 + $0x128] sm:$0xf0]  ;;  %v1867_v61 = vld [vmem:[%s2381_s15 + $0xa4] sm:$0xf]  ;;  %v1606_v3 = vor.u32 %v1853_v50, %v1603_v51 }
  0xbe   : > { %1181 = vmatpush.bf16.msrb.mxu2 %v1758_v5  ;;  %v1659_v0 = vld [vmem:[%s2381_s15 + $0xa8] sm:$0xf0]  ;;  %v1798_v4 = vor.u32 %v1901_v52, %v1795_v55  ;;  %v1726_v5 = vor.u32 %v1883_v56, %v1723_v58  ;;  %v1851_v6 = vld [vmem:[%s2381_s15 + $0x24] sm:$0xf]  ;;  %v1881_v11 = vld [vmem:[%s2381_s15 + $0x114] sm:$0xf] }
  0xbf   : > { %1200 = vmatpush.bf16.msrb.mxu3 %v1822_v16  ;;  %v1595_v7 = vld [vmem:[%s2381_s15 + $0x28] sm:$0xf0]  ;;  %v1899_v8 = vld [vmem:[%s2381_s15 + $0x1a4] sm:$0xf]  ;;  %v1662_v9 = vor.u32 %v1867_v61, %v1659_v0  ;;  %v1715_v12 = vld [vmem:[%s2381_s15 + $0x118] sm:$0xf0] }
  0xc0   : > { %1144 = vmatpush.bf16.msrb.mxu0 %v1622_v27  ;;  %v1787_v10 = vld [vmem:[%s2381_s15 + $0x1a8] sm:$0xf0]  ;;  %v1865_v13 = vld [vmem:[%s2381_s15 + $0x94] sm:$0xf]  ;;  %v1651_v14 = vld [vmem:[%s2381_s15 + $0x98] sm:$0xf0]  ;;  %v1598_v15 = vor.u32 %v1851_v6, %v1595_v7 }
  0xc1   : > { %1163 = vmatpush.bf16.msrb.mxu1 %v1686_v21  ;;  %v1790_v16 = vor.u32 %v1899_v8, %v1787_v10  ;;  %v1849_v18 = vld [vmem:[%s2381_s15 + $0x14] sm:$0xf]  ;;  %v1587_v19 = vld [vmem:[%s2381_s15 + $0x18] sm:$0xf0]  ;;  %v1654_v21 = vor.u32 %v1865_v13, %v1651_v14  ;;  %v1879_v23 = vld [vmem:[%s2381_s15 + $0x104] sm:$0xf] }
  0xc2   : > { %1182 = vmatpush.bf16.msrb.mxu2 %v1750_v17  ;;  %v1718_v17 = vor.u32 %v1881_v11, %v1715_v12  ;;  %v1897_v20 = vld [vmem:[%s2381_s15 + $0x194] sm:$0xf]  ;;  %v1779_v22 = vld [vmem:[%s2381_s15 + $0x198] sm:$0xf0]  ;;  %v1707_v24 = vld [vmem:[%s2381_s15 + $0x108] sm:$0xf0]  ;;  %v1590_v27 = vor.u32 %v1849_v18, %v1587_v19 }
  0xc3   : > { %1201 = vmatpush.bf16.msrb.mxu3 %v1814_v31  ;;  %v1863_v25 = vld [vmem:[%s2381_s15 + $0x84] sm:$0xf]  ;;  %v1643_v26 = vld [vmem:[%s2381_s15 + $0x88] sm:$0xf0]  ;;  %v1782_v28 = vor.u32 %v1897_v20, %v1779_v22  ;;  %v1710_v29 = vor.u32 %v1879_v23, %v1707_v24  ;;  %v626_v43 = vld [vmem:[#allocation2 + $0x30] sm:$0xff]  ;;  %p1831_p5 = scmp.ne.s32.totalorder %s2071_s21, 7 }
  0xc4   : > { %1145 = vmatpush.bf16.msrb.mxu0 %v1614_v44  ;;  %v1847_v30 = vld [vmem:[%s2381_s15 + $0x4] sm:$0xf]  ;;  %v1579_v31 = vld [vmem:[%s2381_s15 + $0x8] sm:$0xf0]  ;;  %v629_v24 = vld [vmem:[#allocation2 + $0x10] sm:$0xff] }
  0xc5   : > { %1164 = vmatpush.bf16.msrb.mxu1 %v1678_v36  ;;  %v1895_v33 = vld [vmem:[%s2381_s15 + $0x184] sm:$0xf]  ;;  %v1771_v34 = vld [vmem:[%s2381_s15 + $0x188] sm:$0xf0]  ;;  %v1582_v35 = vor.u32 %v1847_v30, %v1579_v31 }
  0xc6   : > { %1183 = vmatpush.bf16.msrb.mxu2 %v1742_v32  ;;  %v1646_v32 = vor.u32 %v1863_v25, %v1643_v26  ;;  %v1774_v36 = vor.u32 %v1895_v33, %v1771_v34  ;;  %v632_v6 = vld [vmem:[#allocation2 + $0x28] sm:$0xff]  ;;  %v631_v33 = vld [vmem:[#allocation2 + $0x20] sm:$0xff] }
  0xc7   : > { %1202 = vmatpush.bf16.msrb.mxu3 %v1806_v48  ;;  %1079 = vmatmul.bf16.gmra.mxu0 %v2517_v53 }
  0xc8   : > { %1098 = vmatmul.bf16.gmra.mxu1 %v2522_v59  ;;  %1146 = vmatpush.bf16.msrb.mxu0 %v1606_v3 }
  0xc9   : > { %1165 = vmatpush.bf16.msrb.mxu1 %v1670_v54  ;;  %1117 = vmatmul.bf16.gmra.mxu2 %v2524_v60 }
  0xca   : > { %1184 = vmatpush.bf16.msrb.mxu2 %v1734_v49  ;;  %1136 = vmatmul.bf16.gmra.mxu3 %v1574_v1  ;;  %v628_v49 = vld [vmem:[#allocation2 + $0x18] sm:$0xff] }
  0xcb   : > { %1203 = vmatpush.bf16.msrb.mxu3 %v1798_v4 }
  0xcc   : > { %1147 = vmatpush.bf16.msrb.mxu0 %v1598_v15 }
  0xcd   : > { %1166 = vmatpush.bf16.msrb.mxu1 %v1662_v9 }
  0xce   : > { %1185 = vmatpush.bf16.msrb.mxu2 %v1726_v5 }
  0xcf   : > { %1204 = vmatpush.bf16.msrb.mxu3 %v1790_v16 }
  0xd0   : > { %1148 = vmatpush.bf16.msrb.mxu0 %v1590_v27 }
  0xd1   : > { %1167 = vmatpush.bf16.msrb.mxu1 %v1654_v21 }
  0xd2   : > { %1186 = vmatpush.bf16.msrb.mxu2 %v1718_v17  ;;  %v627_v17 = vld [vmem:[#allocation2] sm:$0xff] }
  0xd3   : > { %1205 = vmatpush.bf16.msrb.mxu3 %v1782_v28 }
  0xd4   : > { %1149 = vmatpush.bf16.msrb.mxu0 %v1582_v35 }
  0xd5   : > { %1168 = vmatpush.bf16.msrb.mxu1 %v1646_v32 }
  0xd6   : > { %1187 = vmatpush.bf16.msrb.mxu2 %v1710_v29 }
  0xd7   : > { %1206 = vmatpush.bf16.msrb.mxu3 %v1774_v36  ;;  %1150 = vmatmul.bf16.vlgmr.msrb.gmra.mxu0 %v2465_v57 }
  0xd8   : > { %1169 = vmatmul.bf16.vlgmr.msrb.gmra.mxu1 %v2470_v62 }
  0xd9   : > { %1188 = vmatmul.bf16.vlgmr.msrb.gmra.mxu2 %v2472_v63 }
  0xda   : > { %1207 = vmatmul.bf16.vlgmr.msrb.gmra.mxu3 %v2476_v2 }
  0xe7   : > { %1155 = vmatmul.bf16.gmra.mxu0 %v2517_v53 }
  0xe8   : > { %1174 = vmatmul.bf16.gmra.mxu1 %v2522_v59  ;;  %v630_v59 = vld [vmem:[#allocation2 + $0x8] sm:$0xff] }
  0xe9   : > { %1193 = vmatmul.bf16.gmra.mxu2 %v2524_v60 }
  0xea   : > { %1212 = vmatmul.bf16.gmra.mxu3 %v1574_v1 }
 0x134   : > { %v1075_v37 = vpop.f32.mrf.mxu0 }
 0x135   : > { %v1094_v38 = vpop.f32.mrf.mxu1 }
 0x136   : > { %v1095_v39 = vadd.f32 %v1094_v38, %v1075_v37 }
 0x13c   : > { %v1113_v40 = vpop.f32.mrf.mxu2  ;;  %v1077_v57 = vpop.f32.mrf.mxu0 }
 0x13d   : > { %v1114_v41 = vadd.f32 %v1113_v40, %v1095_v39  ;;  %v1132_v42 = vpop.f32.mrf.mxu3  ;;  %v1096_v62 = vpop.f32.mrf.mxu1 }
 0x13e   : > { %v1097_v2 = vadd.f32 %v1096_v62, %v1077_v57 }
 0x13f   : > { %v1133_v44 = vadd.f32 %v1132_v42, %v1114_v41  ;;  %v633_v41 = vld [vmem:[#allocation2 + $0x38] sm:$0xff] }
 0x141   : > { %v1218_v63 = vadd.f32 %v1133_v44, %v626_v43 }
 0x143   : > { %1226 = vst [vmem:[#allocation2 + $0x30] sm:$0xff] %v1218_v63 }
 0x144   : > { %v1115_v45 = vpop.f32.mrf.mxu2  ;;  %v1080_v48 = vpop.f32.mrf.mxu0 }
 0x145   : > { %v1116_v46 = vadd.f32 %v1115_v45, %v1097_v2  ;;  %v1134_v47 = vpop.f32.mrf.mxu3  ;;  %v1099_v50 = vpop.f32.mrf.mxu1 }
 0x146   : > { %v1100_v53 = vadd.f32 %v1099_v50, %v1080_v48 }
 0x147   : > { %v1135_v51 = vadd.f32 %v1134_v47, %v1116_v46 }
 0x149   : > { %v1220_v52 = vadd.f32 %v1135_v51, %v628_v49 }
 0x14b   : > { %1228 = vst [vmem:[#allocation2 + $0x18] sm:$0xff] %v1220_v52 }
 0x14c   : > { %v1118_v54 = vpop.f32.mrf.mxu2  ;;  %v1082_v58 = vpop.f32.mrf.mxu0 }
 0x14d   : > { %v1119_v55 = vadd.f32 %v1118_v54, %v1100_v53  ;;  %v1137_v56 = vpop.f32.mrf.mxu3  ;;  %v1101_v60 = vpop.f32.mrf.mxu1 }
 0x14e   : > { %v1102_v1 = vadd.f32 %v1101_v60, %v1082_v58 }
 0x14f   : > { %v1138_v61 = vadd.f32 %v1137_v56, %v1119_v55 }
 0x151   : > { %v1222_v0 = vadd.f32 %v1138_v61, %v630_v59 }
 0x153   : > { %1230 = vst [vmem:[#allocation2 + $0x8] sm:$0xff] %v1222_v0 }
 0x154   : > { %v1120_v3 = vpop.f32.mrf.mxu2  ;;  %v1151_v7 = vpop.f32.mrf.mxu0 }
 0x155   : > { %v1121_v4 = vadd.f32 %v1120_v3, %v1102_v1  ;;  %v1139_v5 = vpop.f32.mrf.mxu3  ;;  %v1170_v8 = vpop.f32.mrf.mxu1 }
 0x156   : > { %v1171_v11 = vadd.f32 %v1170_v8, %v1151_v7 }
 0x157   : > { %v1140_v9 = vadd.f32 %v1139_v5, %v1121_v4 }
 0x159   : > { %v1224_v10 = vadd.f32 %v1140_v9, %v632_v6 }
 0x15b   : > { %1232 = vst [vmem:[#allocation2 + $0x28] sm:$0xff] %v1224_v10 }
 0x15c   : > { %v1189_v12 = vpop.f32.mrf.mxu2  ;;  %v1153_v15 = vpop.f32.mrf.mxu0 }
 0x15d   : > { %v1208_v13 = vpop.f32.mrf.mxu3  ;;  %v1190_v14 = vadd.f32 %v1189_v12, %v1171_v11  ;;  %v1172_v16 = vpop.f32.mrf.mxu1 }
 0x15e   : > { %v1173_v20 = vadd.f32 %v1172_v16, %v1153_v15 }
 0x15f   : > { %v1209_v18 = vadd.f32 %v1208_v13, %v1190_v14 }
 0x161   : > { %v1219_v19 = vadd.f32 %v1209_v18, %v627_v17 }
 0x163   : > { %1227 = vst [vmem:[#allocation2] sm:$0xff] %v1219_v19 }
 0x164   : > { %v1191_v21 = vpop.f32.mrf.mxu2  ;;  %v1156_v25 = vpop.f32.mrf.mxu0 }
 0x165   : > { %v1210_v22 = vpop.f32.mrf.mxu3  ;;  %v1192_v23 = vadd.f32 %v1191_v21, %v1173_v20  ;;  %v1175_v26 = vpop.f32.mrf.mxu1 }
 0x166   : > { %v1176_v29 = vadd.f32 %v1175_v26, %v1156_v25 }
 0x167   : > { %v1211_v27 = vadd.f32 %v1210_v22, %v1192_v23 }
 0x169   : > { %v1221_v28 = vadd.f32 %v1211_v27, %v629_v24 }
 0x16b   : > { %1229 = vst [vmem:[#allocation2 + $0x10] sm:$0xff] %v1221_v28 }
 0x16c   : > { %v1194_v30 = vpop.f32.mrf.mxu2  ;;  %v1158_v35 = vpop.f32.mrf.mxu0 }
 0x16d   : > { %v1213_v31 = vpop.f32.mrf.mxu3  ;;  %v1195_v32 = vadd.f32 %v1194_v30, %v1176_v29  ;;  %v1177_v36 = vpop.f32.mrf.mxu1 }
 0x16e   : > { %v1178_v38 = vadd.f32 %v1177_v36, %v1158_v35 }
 0x16f   : > { %v1214_v34 = vadd.f32 %v1213_v31, %v1195_v32 }
 0x171   : > { %v1223_v37 = vadd.f32 %v1214_v34, %v631_v33 }
 0x173   : > { %1231 = vst [vmem:[#allocation2 + $0x20] sm:$0xff] %v1223_v37 }
 0x174   : > { %v1196_v39 = vpop.f32.mrf.mxu2 }
 0x175   : > { %v1197_v40 = vadd.f32 %v1196_v39, %v1178_v38  ;;  %v1215_v42 = vpop.f32.mrf.mxu3 }
 0x177   : > { %v1216_v57 = vadd.f32 %v1215_v42, %v1197_v40  ;;  %1237 = sbr.rel (%p1831_p5) target bundleno = 411 (0x19b), region = 101 }
 0x179   : > { %v1225_v43 = vadd.f32 %v1216_v57, %v633_v41 }
 0x17b   : > { %1233 = vst [vmem:[#allocation2 + $0x38] sm:$0xff] %v1225_v43 }
 0x17c   : > { %v1238_v62 = vld [vmem:[#allocation2 + $0x30] sm:$0xff]  ;;  %v1240_v44 = vld [vmem:[#allocation2 + $0x18] sm:$0xff]  ;;  %v1242_v63 = vld [vmem:[#allocation2 + $0x8] sm:$0xff]  ;;  %v1304_v24 = vlaneseq }
 0x17d   : > { %v1244_v2 = vld [vmem:[#allocation2 + $0x28] sm:$0xff]  ;;  %v1246_v45 = vld [vmem:[%s600_s11] sm:$0x3]  ;;  %v1241_v48 = vld [vmem:[#allocation2 + $0x10] sm:$0xff] }
 0x17e   : > { %v1248_v46 = vperm.slane %v1246_v45, 0  ;;  %v1239_v47 = vld [vmem:[#allocation2] sm:$0xff]  ;;  %v1249_v49 = vperm.slane %v1246_v45, 1  ;;  %v1305_v33 = vshrl.u32 %v1304_v24, 7 }
 0x17f   : > { %v1243_v54 = vld [vmem:[#allocation2 + $0x20] sm:$0xff] }
 0x180   : > { %v1252_v50 = vadd.f32 %v1248_v46, %v1238_v62  ;;  %v1254_v51 = vadd.f32 %v1248_v46, %v1240_v44  ;;  %v1256_v52 = vadd.f32 %v1248_v46, %v1242_v63  ;;  %v1258_v53 = vadd.f32 %v1248_v46, %v1244_v2 }
 0x181   : > { %v1253_v56 = vadd.f32 %v1249_v49, %v1239_v47  ;;  %v1255_v58 = vadd.f32 %v1249_v49, %v1241_v48  ;;  %v1257_v3 = vadd.f32 %v1249_v49, %v1243_v54  ;;  %vm1307_vm0 = vcmp.eq.s32.totalorder %v1305_v33, 1 }
 0x182   : > { %v1245_v55 = vld [vmem:[#allocation2 + $0x38] sm:$0xff]  ;;  %v1260_v59 = vadd.f32 %v1254_v51, %v1252_v50  ;;  %v1278_v60 = vmul.f32 %v1252_v50, %v1252_v50  ;;  %v1280_v61 = vmul.f32 %v1254_v51, %v1254_v51  ;;  %v1282_v0 = vmul.f32 %v1256_v52, %v1256_v52  ;;  %1314 = vst [vmem:[%s2383_s0] sm:$0xff] %v1252_v50 }
 0x183   : > { %v1284_v1 = vmul.f32 %v1258_v53, %v1258_v53  ;;  %1316 = vst [vmem:[%s2383_s0 + $0x10] sm:$0xff] %v1254_v51  ;;  %v1259_v4 = vadd.f32 %v1249_v49, %v1245_v55  ;;  %v1269_v5 = vadd.f32 %v1255_v58, %v1253_v56  ;;  %v1279_v8 = vmul.f32 %v1253_v56, %v1253_v56 }
 0x184   : > { %v1261_v6 = vadd.f32 %v1260_v59, %v1256_v52  ;;  %v1286_v7 = vadd.f32 %v1280_v61, %v1278_v60  ;;  %1318 = vst [vmem:[%s2383_s0 + $0x20] sm:$0xff] %v1256_v52  ;;  %v1281_v9 = vmul.f32 %v1255_v58, %v1255_v58  ;;  %v1283_v11 = vmul.f32 %v1257_v3, %v1257_v3 }
 0x185   : > { %1320 = vst [vmem:[%s2383_s0 + $0x30] sm:$0xff] %v1258_v53  ;;  %v1270_v10 = vadd.f32 %v1269_v5, %v1257_v3  ;;  %v1285_v14 = vmul.f32 %v1259_v4, %v1259_v4  ;;  %vm1306_vm1 = vcmp.eq.s32.totalorder %v1305_v33, 0 }
 0x186   : > { %v1262_v12 = vadd.f32 %v1261_v6, %v1258_v53  ;;  %v1287_v13 = vadd.f32 %v1286_v7, %v1282_v0  ;;  %v1295_v15 = vadd.f32 %v1281_v9, %v1279_v8  ;;  %1315 = vst [vmem:[%s2383_s0 + $0x8] sm:$0xff] %v1253_v56 }
 0x187   : > { %v1271_v16 = vadd.f32 %v1270_v10, %v1259_v4  ;;  %1317 = vst [vmem:[%s2383_s0 + $0x18] sm:$0xff] %v1255_v58 }
 0x188   : > { %v1263_v17 = vrot.slane %v1262_v12, 4  ;;  %v1288_v18 = vadd.f32 %v1287_v13, %v1284_v1  ;;  %v1296_v19 = vadd.f32 %v1295_v15, %v1283_v11  ;;  %1319 = vst [vmem:[%s2383_s0 + $0x28] sm:$0xff] %v1257_v3 }
 0x189   : > { %v1272_v20 = vrot.slane %v1271_v16, 4  ;;  %1321 = vst [vmem:[%s2383_s0 + $0x38] sm:$0xff] %v1259_v4 }
 0x18a   : > { %v1264_v21 = vadd.f32 %v1263_v17, %v1262_v12  ;;  %v1289_v22 = vrot.slane %v1288_v18, 4  ;;  %v1297_v23 = vadd.f32 %v1296_v19, %v1285_v14 }
 0x18b   : > { %v1273_v25 = vadd.f32 %v1272_v20, %v1271_v16 }
 0x18c   : > { %v1265_v26 = vrot.slane %v1264_v21, 2  ;;  %v1290_v27 = vadd.f32 %v1289_v22, %v1288_v18  ;;  %v1298_v28 = vrot.slane %v1297_v23, 4 }
 0x18d   : > { %v1274_v29 = vrot.slane %v1273_v25, 2 }
 0x18e   : > { %v1266_v30 = vadd.f32 %v1265_v26, %v1264_v21  ;;  %v1291_v31 = vrot.slane %v1290_v27, 2  ;;  %v1299_v32 = vadd.f32 %v1298_v28, %v1297_v23 }
 0x18f   : > { %v1275_v34 = vadd.f32 %v1274_v29, %v1273_v25 }
 0x190   : > { %v1267_v35 = vrot.slane %v1266_v30, 1  ;;  %v1292_v36 = vadd.f32 %v1291_v31, %v1290_v27  ;;  %v1300_v37 = vrot.slane %v1299_v32, 2 }
 0x191   : > { %v1276_v38 = vrot.slane %v1275_v34, 1 }
 0x192   : > { %v1293_v39 = vrot.slane %v1292_v36, 1  ;;  %v1301_v40 = vadd.f32 %v1300_v37, %v1299_v32  ;;  %v1268_v41 = vadd.f32 %v1267_v35, %v1266_v30 }
 0x193   : > { %v1277_v43 = vadd.f32 %v1276_v38, %v1275_v34 }
 0x194   : > { %v1294_v42 = vadd.f32 %v1293_v39, %v1292_v36  ;;  %v1302_v57 = vrot.slane %v1301_v40, 1 }
 0x196   : > { %v1308_v62 = vsel %vm1307_vm0, %v1294_v42, 0.0  ;;  %v1303_v44 = vadd.f32 %v1302_v57, %v1301_v40 }
 0x197   : > { %v1310_v63 = vsel %vm1306_vm1, %v1268_v41, %v1308_v62 }
 0x198   : > { %1312 = vst [vmem:[%s2377_s19] sm:$0xff] %v1310_v63  ;;  %v1309_v2 = vsel %vm1307_vm0, %v1303_v44, 0.0 }
 0x199   : > { %v1311_v45 = vsel %vm1306_vm1, %v1277_v43, %v1309_v2 }
 0x19a   : > { %1313 = vst [vmem:[%s2377_s19 + $0x8] sm:$0xff] %v1311_v45 }
 0x19b PF: > { %1337 = sbr.rel (!%p2209_p12) target bundleno = 421 (0x1a5), region = 105  ;;  %s1911_s21 = sshll.u32 (%p2209_p12), %s2075_s22, 4  ;;  %v1356_v46 = vld [vmem:[%s2383_s0] sm:$0xff] (%p2209_p12)  ;;  %v1358_v47 = vld [vmem:[%s2383_s0 + $0x8] sm:$0xff] (%p2209_p12)  ;;  %v1360_v48 = vld [vmem:[%s2383_s0 + $0x10] sm:$0xff] (%p2209_p12) }
 0x19c   : > { %s1343_s5 = scalar_lea.vmem (%p2209_p12), %s2624_s3, %s1911_s21  ;;  %v1362_v49 = vld [vmem:[%s2383_s0 + $0x18] sm:$0xff] (%p2209_p12)  ;;  %v1364_v50 = vld [vmem:[%s2383_s0 + $0x20] sm:$0xff] (%p2209_p12)  ;;  %v1366_v51 = vld [vmem:[%s2383_s0 + $0x28] sm:$0xff] (%p2209_p12) }
 0x19d   : > { %1357 = vst [vmem:[%s1343_s5] sm:$0xff] (%p2209_p12), %v1356_v46  ;;  %v1368_v52 = vld [vmem:[%s2383_s0 + $0x30] sm:$0xff] (%p2209_p12)  ;;  %v1370_v53 = vld [vmem:[%s2383_s0 + $0x38] sm:$0xff] (%p2209_p12) }
 0x19e   : > { %1359 = vst [vmem:[%s1343_s5 + $0x8] sm:$0xff] (%p2209_p12), %v1358_v47 }
 0x19f   : > { %1361 = vst [vmem:[%s1343_s5 + $0x20] sm:$0xff] (%p2209_p12), %v1360_v48 }
 0x1a0   : > { %1363 = vst [vmem:[%s1343_s5 + $0x28] sm:$0xff] %v1362_v49 }
 0x1a1   : > { %1365 = vst [vmem:[%s1343_s5 + $0x40] sm:$0xff] %v1364_v50 }
 0x1a2   : > { %1367 = vst [vmem:[%s1343_s5 + $0x48] sm:$0xff] %v1366_v51 }
 0x1a3   : > { %1369 = vst [vmem:[%s1343_s5 + $0x60] sm:$0xff] %v1368_v52 }
 0x1a4   : > { %1371 = vst [vmem:[%s1343_s5 + $0x68] sm:$0xff] %v1370_v53 }
 0x1a5 PF: > { %s15_s25 = sadd.s32 1, %s2087_s25   ;;  %s2637_s14 = sld [smem:[#allocation6_spill]] }
 0x1a6   : > { %p12_p6 = scmp.ge.s32.totalorder %s15_s25, 18   ;;  %s2638_s29 = sld [smem:[#allocation7_spill]] }
 0x1a7   : > { %s2639_s15 = smov %s2051_s16  ;;  %s2640_s16 = smov %s2207_s13 }
 0x1a8   : > { %s2641_s17 = smov %s2059_s18  ;;  %s2642_s18 = smov %s2204_s12 }
 0x1a9   : > { %s2643_s19 = smov %s2067_s20  ;;  %s2644_s20 = smov %s2190_s7 }
 0x1aa   : > { %s2645_s21 = smov %s2079_s23  ;;  %s2646_s22 = smov %s2083_s24 }
 0x1ab   : > { %s2647_s23 = smov %s2637_s14  ;;  %14 = sbr.rel (!%p12_p6) target bundleno = 9 (0x9), region = 182 }
 0x1ac   : > { %s2648_s24 = smov %s2638_s29 }

// kernel: _lambda_.14
= control target key start
LH: loop header
LB: loop body
LE: loop exit
PB: predicated region body
PF: predicated region fallthrough
CT: control target
= control target key end

     0   :  { %s594_s12 = smov 0   ;;  %s596_s13 = smov 0   ;;  %s677_s0 = inlined_call_operand.vmem [shape: f32[32,512], index: 0, kind: input, shape index: {}]   ;;  %s678_s1 = inlined_call_operand.vmem [shape: f32[1,512], index: 1, kind: input, shape index: {}]   ;;  %s679_s2 = inlined_call_operand.vmem [shape: f32[1,512], index: 2, kind: input, shape index: {}]   ;;  %s680_s3 = inlined_call_operand.vmem [shape: bf16[32,512], index: 3, kind: output, shape index: {}]  }
   0x1   :  { %s598_s14 = smov 0   ;;  %s600_s15 = smov 0  }
   0x2   :  { %s602_s16 = smov 0  }
   0x3 LB: > { %s22_s17 = sadd.s32 1, %s568_s15  ;;  %s475_s18 = sadd.s32 4294967295, %s572_s16   ;;  %s572_s16 = sphi %s602_s16, %s13_s16   ;;  %s568_s15 = sphi %s600_s15, %s685_s15   ;;  %s564_s14 = sphi %s598_s14, %s684_s14   ;;  %s560_s13 = sphi %s596_s13, %s683_s13   ;;  %s556_s12 = sphi %s594_s12, %s682_s12  }
   0x4   : > { %p23_p0 = scmp.ge.s32.totalorder %s22_s17, 2  ;;  %p41_p1 = scmp.ne.s32.totalorder %s560_s13, %s556_s12 }
   0x5   : > { %p42_p2 = scmp.eq.s32.totalorder %s572_s16, 0  ;;  %p125_p4 = scmp.eq.s32.totalorder %s475_s18, 1 }
   0x6   : > { %s687_s17 = smov (%p23_p0, %s22_s17), 0  ;;  %s34_s20 = sadd.s32 1, %s560_s13 }
   0x7   : > { %p43_p3 = por %p42_p2, %p41_p1  ;;  %s30_s19 = ssub.s32 %s568_s15, %s687_s17 }
   0x8   : > { %p32_p5 = scmp.eq.s32.totalorder %s30_s19, 0  ;;  %p629_p6 = por %p125_p4, %p41_p1 }
   0x9   : > { %p478_p7 = scmp.ge.s32.totalorder %s572_s16, 2 }
   0xa   : > { %s634_s22 = scalar_select %p32_p5, %s560_s13, %s34_s20  }
   0xb   : > { %147 = sbr.rel (%p478_p7) target bundleno = 28 (0x1c), region = 16 }
  0x10   : > { %150 = sbr.rel (!%p43_p3) target bundleno = 28 (0x1c), region = 20  ;;  %s152_s23 = sand.u32 (%p43_p3), 1, %s560_s13  }
  0x11   : > { %s492_s24 = sshll.u32 (%p43_p3), %s568_s15, 4  ;;  %s479_s25 = sshll.u32 (%p43_p3), %s152_s23, 6 }
  0x12   : > { %s160_s28 = scalar_lea.vmem (%p43_p3), %s677_s0, %s492_s24  ;;  %s154_s29 = scalar_lea.vmem (%p43_p3), [#allocation2], %s479_s25 }
  0x13   : > { %v173_v0 = vld [vmem:[%s160_s28] sm:$0xff] (%p43_p3)  ;;  %v175_v1 = vld [vmem:[%s160_s28 + $0x8] sm:$0xff] (%p43_p3) }
  0x14   : > { %v177_v2 = vld [vmem:[%s160_s28 + $0x20] sm:$0xff] (%p43_p3)  ;;  %174 = vst [vmem:[%s154_s29] sm:$0xff] (%p43_p3), %v173_v0  ;;  %v179_v3 = vld [vmem:[%s160_s28 + $0x28] sm:$0xff] (%p43_p3) }
  0x15   : > { %176 = vst [vmem:[%s154_s29 + $0x8] sm:$0xff] %v175_v1  ;;  %v181_v4 = vld [vmem:[%s160_s28 + $0x40] sm:$0xff]  ;;  %v183_v5 = vld [vmem:[%s160_s28 + $0x48] sm:$0xff] }
  0x16   : > { %178 = vst [vmem:[%s154_s29 + $0x10] sm:$0xff] %v177_v2  ;;  %v185_v6 = vld [vmem:[%s160_s28 + $0x60] sm:$0xff]  ;;  %v187_v7 = vld [vmem:[%s160_s28 + $0x68] sm:$0xff] }
  0x17   : > { %180 = vst [vmem:[%s154_s29 + $0x18] sm:$0xff] %v179_v3 }
  0x18   : > { %182 = vst [vmem:[%s154_s29 + $0x20] sm:$0xff] %v181_v4 }
  0x19   : > { %184 = vst [vmem:[%s154_s29 + $0x28] sm:$0xff] %v183_v5 }
  0x1a   : > { %186 = vst [vmem:[%s154_s29 + $0x30] sm:$0xff] %v185_v6 }
  0x1b   : > { %188 = vst [vmem:[%s154_s29 + $0x38] sm:$0xff] %v187_v7 }
  0x1c PF: > { %p482_p8 = scmp.ge.s32.totalorder %s572_s16, 1  ;;  %p209_p9 = scmp.lt.s32.totalorder %s572_s16, 3 }
  0x1e   : > { %p210_p10 = pnand %p482_p8, %p209_p9 }
  0x1f   : > { %s216_s30 = sand.u32 (!%p210_p10), 1, %s556_s12   ;;  %s485_s4 = sshll.u32 (!%p210_p10), %s564_s14, 1 }
  0x20   : > { %213 = sbr.rel (%p210_p10) target bundleno = 65 (0x41), region = 51  ;;  %s483_s5 = sshll.u32 (!%p210_p10), %s216_s30, 6 }
  0x21   : > { %p249_p11 = scmp.lt.s32.totalorder (!%p210_p10), %s485_s4, 3  ;;  %s218_s6 = scalar_lea.vmem (!%p210_p10), [#allocation2], %s483_s5 }
  0x22   : > { %s484_s19 = sshll.u32 (!%p210_p10), %s216_s30, 5 }
  0x23   : > { %s245_s12 = scalar_lea.vmem (!%p210_p10), [#allocation3], %s484_s19 }
  0x25   : > { %s689_s4 = smov (!%p249_p11, %s485_s4), 3  ;;  %v260_v8 = vld [vmem:[%s218_s6] sm:$0xff]  ;;  %v261_v9 = vld [vmem:[%s218_s6 + $0x8] sm:$0xff]  ;;  %v262_v10 = vld [vmem:[%s218_s6 + $0x10] sm:$0xff]  ;;  %s493_s20 = sshll.u32 (%p629_p6), %s564_s14, 3 }
  0x26   : > { %s251_s9 = scalar_lea.vmem %s678_s1, %s689_s4  ;;  %s256_s18 = scalar_lea.vmem %s679_s2, %s689_s4  ;;  %v263_v11 = vld [vmem:[%s218_s6 + $0x18] sm:$0xff]  ;;  %v264_v12 = vld [vmem:[%s218_s6 + $0x20] sm:$0xff]  ;;  %v265_v15 = vld [vmem:[%s218_s6 + $0x28] sm:$0xff] }
  0x27   : > { %v268_v13 = vld [vmem:[%s251_s9] sm:$0x3]  ;;  %v266_v20 = vld [vmem:[%s218_s6 + $0x30] sm:$0xff]  ;;  %v267_v21 = vld [vmem:[%s218_s6 + $0x38] sm:$0xff]  ;;  %s340_s25 = scalar_lea.vmem (%p629_p6), %s680_s3, %s493_s20 }
  0x28   : > { %v282_v14 = vld [vmem:[%s256_s18] sm:$0x3]  ;;  %v270_v16 = vperm.slane %v268_v13, 0  ;;  %v271_v17 = vperm.slane %v268_v13, 1 }
  0x29   : > { %v284_v18 = vperm.slane %v282_v14, 0  ;;  %v285_v19 = vperm.slane %v282_v14, 1 }
  0x2a   : > { %v274_v22 = vmul.f32 %v270_v16, %v260_v8  ;;  %v275_v23 = vmul.f32 %v271_v17, %v261_v9  ;;  %v276_v24 = vmul.f32 %v270_v16, %v262_v10  ;;  %v277_v25 = vmul.f32 %v271_v17, %v263_v11 }
  0x2b   : > { %v278_v26 = vmul.f32 %v270_v16, %v264_v12  ;;  %v279_v27 = vmul.f32 %v271_v17, %v265_v15  ;;  %v280_v28 = vmul.f32 %v270_v16, %v266_v20  ;;  %v281_v29 = vmul.f32 %v271_v17, %v267_v21 }
  0x2c   : > { %v288_v30 = vadd.f32 %v284_v18, %v274_v22  ;;  %v289_v31 = vadd.f32 %v285_v19, %v275_v23  ;;  %v290_v32 = vadd.f32 %v284_v18, %v276_v24  ;;  %v291_v33 = vadd.f32 %v285_v19, %v277_v25 }
  0x2d   : > { %v292_v34 = vadd.f32 %v284_v18, %v278_v26  ;;  %v293_v35 = vadd.f32 %v285_v19, %v279_v27  ;;  %v294_v36 = vadd.f32 %v284_v18, %v280_v28  ;;  %v295_v37 = vadd.f32 %v285_v19, %v281_v29 }
  0x2e   : > { %vm296_vm0 = vcmp.gt.f32.partialorder %v288_v30, 0.0  ;;  %vm297_vm1 = vcmp.gt.f32.partialorder %v289_v31, 0.0  ;;  %v304_v38 = vmul.f32 0.2, %v288_v30  ;;  %v305_v39 = vmul.f32 0.2, %v289_v31 }
  0x2f   : > { %vm298_vm2 = vcmp.gt.f32.partialorder %v290_v32, 0.0  ;;  %vm299_vm3 = vcmp.gt.f32.partialorder %v291_v33, 0.0  ;;  %v306_v40 = vmul.f32 0.2, %v290_v32  ;;  %v307_v41 = vmul.f32 0.2, %v291_v33 }
  0x30   : > { %v312_v42 = vsel %vm296_vm0, %v288_v30, %v304_v38  ;;  %v313_v43 = vsel %vm297_vm1, %v289_v31, %v305_v39  ;;  %vm300_vm4 = vcmp.gt.f32.partialorder %v292_v34, 0.0  ;;  %vm301_vm5 = vcmp.gt.f32.partialorder %v293_v35, 0.0 }
  0x31   : > { %v320_v44 = vpack.c.bf16 %v313_v43, %v312_v42  ;;  %v314_v45 = vsel %vm298_vm2, %v290_v32, %v306_v40  ;;  %v315_v46 = vsel %vm299_vm3, %v291_v33, %v307_v41  ;;  %v308_v47 = vmul.f32 0.2, %v292_v34 }
  0x32   : > { %v321_v48 = vpack.c.bf16 %v315_v46, %v314_v45  ;;  %v309_v49 = vmul.f32 0.2, %v293_v35  ;;  %vm302_vm6 = vcmp.gt.f32.partialorder %v294_v36, 0.0  ;;  %vm303_vm7 = vcmp.gt.f32.partialorder %v295_v37, 0.0 }
  0x33   : > { %324 = vst [vmem:[%s245_s12] sm:$0xff] %v320_v44  ;;  %v316_v50 = vsel %vm300_vm4, %v292_v34, %v308_v47  ;;  %v310_v51 = vmul.f32 0.2, %v294_v36  ;;  %v311_v52 = vmul.f32 0.2, %v295_v37 }
  0x34   : > { %325 = vst [vmem:[%s245_s12 + $0x8] sm:$0xff] %v321_v48  ;;  %v317_v53 = vsel %vm301_vm5, %v293_v35, %v309_v49  ;;  %334 = sbr.rel (!%p629_p6) target bundleno = 65 (0x41), region = 59 }
  0x35   : > { %v322_v54 = vpack.c.bf16 %v317_v53, %v316_v50  ;;  %v318_v55 = vsel %vm302_vm6, %v294_v36, %v310_v51  ;;  %v319_v56 = vsel %vm303_vm7, %v295_v37, %v311_v52 }
  0x36   : > { %v323_v57 = vpack.c.bf16 %v319_v56, %v318_v55 }
  0x37   : > { %326 = vst [vmem:[%s245_s12 + $0x10] sm:$0xff] %v322_v54 }
  0x38   : > { %327 = vst [vmem:[%s245_s12 + $0x18] sm:$0xff] %v323_v57 }
  0x3a   : > { %v375_v58 = vld [vmem:[%s245_s12] sm:$0xff] }
  0x3b   : > { %v377_v59 = vld [vmem:[%s245_s12 + $0x8] sm:$0xff]  ;;  %376 = vst [vmem:[%s340_s25] sm:$0xff] %v375_v58 }
  0x3c   : > { %378 = vst [vmem:[%s340_s25 + $0x10] sm:$0xff] %v377_v59 }
  0x3e   : > { %v379_v60 = vld [vmem:[%s245_s12 + $0x10] sm:$0xff] }
  0x3f   : > { %v381_v61 = vld [vmem:[%s245_s12 + $0x18] sm:$0xff]  ;;  %380 = vst [vmem:[%s340_s25 + $0x20] sm:$0xff] %v379_v60 }
  0x40   : > { %382 = vst [vmem:[%s340_s25 + $0x30] sm:$0xff] %v381_v61 }
  0x41 PF: > { %s13_s16 = sadd.s32 1, %s572_s16   ;;  %s682_s12 = smov %s560_s13 }
  0x42   : > { %p10_p12 = scmp.ge.s32.totalorder %s13_s16, 4   ;;  %s683_s13 = smov %s634_s22 }
  0x43   : > { %s684_s14 = smov %s568_s15  ;;  %s685_s15 = smov %s687_s17 }
  0x44   :  { %12 = sbr.rel (!%p10_p12) target bundleno = 3 (0x3), region = 134 }

// kernel: _lambda_.15
= control target key start
LH: loop header
LB: loop body
LE: loop exit
PB: predicated region body
PF: predicated region fallthrough
CT: control target
= control target key end

     0   :  { %s779_s0 = inlined_call_operand.vmem [shape: bf16[16,8192], index: 0, kind: input, shape index: {}]   ;;  %s780_s1 = inlined_call_operand.vmem [shape: f32[1,8192], index: 1, kind: input, shape index: {}]   ;;  %s781_s2 = inlined_call_operand.<no memory space> [shape: f32[1,1], index: 2, kind: input, shape index: {}]   ;;  %s782_s3 = inlined_call_operand.vmem [shape: f32[16,1], index: 3, kind: output, shape index: {}]  }
   0x1   :  { %v8_v0 = vstv %s781_s2 }
   0x2   :  { %9 = vst [vmem:[#allocation3] sm:$0x1] %v8_v0 }
   0x3   :  { %s642_s14 = smov 0   ;;  %s644_s15 = smov 0  }
   0x4   :  { %s646_s16 = smov 0   ;;  %s648_s17 = smov 0  }
   0x5   :  { %s650_s18 = smov 0  }
   0x6 LB: > { %s24_s2 = sadd.s32 1, %s612_s17  ;;  %p43_p1 = scmp.ne.s32.totalorder %s604_s15, %s600_s14  ;;  %s616_s18 = sphi %s650_s18, %s15_s18   ;;  %s612_s17 = sphi %s648_s17, %s786_s17   ;;  %s608_s16 = sphi %s646_s16, %s785_s16   ;;  %s604_s15 = sphi %s644_s15, %s784_s15   ;;  %s600_s14 = sphi %s642_s14, %s783_s14  }
   0x7   : > { %p25_p0 = scmp.ge.s32.totalorder %s24_s2, 4  ;;  %p44_p2 = scmp.eq.s32.totalorder %s616_s18, 0 }
   0x8   : > { %s36_s20 = sadd.s32 1, %s604_s15  ;;  %p522_p5 = scmp.ge.s32.totalorder %s616_s18, 4 }
   0x9   : > { %s788_s2 = smov (%p25_p0, %s24_s2), 0  ;;  %p45_p3 = por %p44_p2, %p43_p1 }
   0xa   : > { %s32_s19 = ssub.s32 %s612_s17, %s788_s2  ;;  %145 = sbr.rel (%p522_p5) target bundleno = 35 (0x23), region = 20 }
   0xb   : > { %p34_p4 = scmp.eq.s32.totalorder %s32_s19, 0 }
   0xd   : > { %s677_s21 = scalar_select %p34_p4, %s604_s15, %s36_s20  }
   0xf   : > { %148 = sbr.rel (!%p45_p3) target bundleno = 35 (0x23), region = 24  ;;  %s150_s22 = sand.u32 (%p45_p3), 1, %s604_s15  }
  0x10   : > { %s535_s23 = sshll.u32 (%p45_p3), %s612_s17, 6  ;;  %s523_s24 = sshll.u32 (%p45_p3), %s150_s22, 7 }
  0x11   : > { %s685_s27 = scalar_lea.vmem (%p45_p3), %s779_s0, %s535_s23  ;;  %s152_s28 = scalar_lea.vmem (%p45_p3), [#allocation4], %s523_s24 }
  0x12   : > { %v171_v1 = vld [vmem:[%s685_s27] sm:$0xff] (%p45_p3)  ;;  %v173_v2 = vld [vmem:[%s685_s27 + $0x8] sm:$0xff] (%p45_p3)  ;;  %v175_v3 = vld [vmem:[%s685_s27 + $0x10] sm:$0xff] (%p45_p3) }
  0x13   : > { %172 = vst [vmem:[%s152_s28] sm:$0xff] (%p45_p3), %v171_v1  ;;  %v177_v4 = vld [vmem:[%s685_s27 + $0x18] sm:$0xff] (%p45_p3)  ;;  %v179_v5 = vld [vmem:[%s685_s27 + $0x20] sm:$0xff] (%p45_p3)  ;;  %v181_v6 = vld [vmem:[%s685_s27 + $0x28] sm:$0xff] (%p45_p3) }
  0x14   : > { %174 = vst [vmem:[%s152_s28 + $0x8] sm:$0xff] %v173_v2  ;;  %v183_v7 = vld [vmem:[%s685_s27 + $0x30] sm:$0xff]  ;;  %v185_v8 = vld [vmem:[%s685_s27 + $0x38] sm:$0xff]  ;;  %v187_v9 = vld [vmem:[%s685_s27 + $0x100] sm:$0xff] }
  0x15   : > { %176 = vst [vmem:[%s152_s28 + $0x10] sm:$0xff] %v175_v3  ;;  %v189_v10 = vld [vmem:[%s685_s27 + $0x108] sm:$0xff]  ;;  %v191_v11 = vld [vmem:[%s685_s27 + $0x110] sm:$0xff]  ;;  %v193_v12 = vld [vmem:[%s685_s27 + $0x118] sm:$0xff] }
  0x16   : > { %178 = vst [vmem:[%s152_s28 + $0x18] sm:$0xff] %v177_v4  ;;  %v195_v13 = vld [vmem:[%s685_s27 + $0x120] sm:$0xff]  ;;  %v197_v14 = vld [vmem:[%s685_s27 + $0x128] sm:$0xff]  ;;  %v199_v15 = vld [vmem:[%s685_s27 + $0x130] sm:$0xff] }
  0x17   : > { %180 = vst [vmem:[%s152_s28 + $0x20] sm:$0xff] %v179_v5  ;;  %v201_v16 = vld [vmem:[%s685_s27 + $0x138] sm:$0xff] }
  0x18   : > { %182 = vst [vmem:[%s152_s28 + $0x28] sm:$0xff] %v181_v6 }
  0x19   : > { %184 = vst [vmem:[%s152_s28 + $0x30] sm:$0xff] %v183_v7 }
  0x1a   : > { %186 = vst [vmem:[%s152_s28 + $0x38] sm:$0xff] %v185_v8 }
  0x1b   : > { %188 = vst [vmem:[%s152_s28 + $0x40] sm:$0xff] %v187_v9 }
  0x1c   : > { %190 = vst [vmem:[%s152_s28 + $0x48] sm:$0xff] %v189_v10 }
  0x1d   : > { %192 = vst [vmem:[%s152_s28 + $0x50] sm:$0xff] %v191_v11 }
  0x1e   : > { %194 = vst [vmem:[%s152_s28 + $0x58] sm:$0xff] %v193_v12 }
  0x1f   : > { %196 = vst [vmem:[%s152_s28 + $0x60] sm:$0xff] %v195_v13 }
  0x20   : > { %198 = vst [vmem:[%s152_s28 + $0x68] sm:$0xff] %v197_v14 }
  0x21   : > { %200 = vst [vmem:[%s152_s28 + $0x70] sm:$0xff] %v199_v15 }
  0x22   : > { %202 = vst [vmem:[%s152_s28 + $0x78] sm:$0xff] %v201_v16 }
  0x23 PF: > { %p526_p6 = scmp.ge.s32.totalorder %s616_s18, 1  ;;  %p215_p7 = scmp.lt.s32.totalorder %s616_s18, 5 }
  0x25   : > { %p216_p8 = pnand %p526_p6, %p215_p7 }
  0x26   : > { %s222_s29 = sand.u32 (!%p216_p8), 1, %s600_s14   ;;  %s528_s30 = sshll.u32 (!%p216_p8), %s608_s16, 4 }
  0x27   : > { %219 = sbr.rel (%p216_p8) target bundleno = 224 (0xe0), region = 51  ;;  %s527_s4 = sshll.u32 (!%p216_p8), %s222_s29, 7 }
  0x28   : > { %p252_p9 = scmp.lt.s32.totalorder (!%p216_p8), %s528_s30, 63  ;;  %s712_s8 = scalar_lea.vmem (!%p216_p8), [#allocation4], %s527_s4 }
  0x29   : > { %p529_p10 = scmp.ne.s32.totalorder (!%p216_p8), %s608_s16, 0 }
  0x2c   : > { %s790_s30 = smov (!%p252_p9, %s528_s30), 63  ;;  %265 = sbr.rel (%p529_p10) target bundleno = 52 (0x34), region = 59 }
  0x2d   : > { %s710_s7 = scalar_lea.vmem %s780_s1, %s790_s30 }
  0x31   : > { %vm266_vm0 = vcmask 7168   ;;  %v618_v17 = vmov 0.0  }
  0x32   : > { %267 = vst.msk [vmem:[#allocation2] sm:$0xff] %vm266_vm0, %v618_v17 }
  0x33   : > { %268 = vst.msk [vmem:[#allocation2 + $0x8] sm:$0xff] %vm266_vm0, %v618_v17 }
  0x34 PF: > { %v269_v18 = vld [vmem:[%s712_s8] sm:$0xff]  ;;  %v717_v19 = vld [vmem:[%s710_s7] sm:$0xff]  ;;  %v272_v36 = vld [vmem:[%s712_s8 + $0x18] sm:$0xff]  ;;  %vm423_vm1 = vcmask 7168   ;;  %p530_p11 = scmp.ne.s32.totalorder %s608_s16, 3 }
  0x35   : > { %v270_v20 = vld [vmem:[%s712_s8 + $0x8] sm:$0xff]  ;;  %v285_v21 = vunpack.c.l.bf16 %v269_v18  ;;  %v286_v22 = vunpack.c.h.bf16 %v269_v18  ;;  %v321_v23 = vperm.slane %v717_v19, 0  ;;  %v322_v24 = vperm.slane %v717_v19, 1  ;;  %v271_v27 = vld [vmem:[%s712_s8 + $0x10] sm:$0xff]  ;;  %v277_v35 = vld [vmem:[%s712_s8 + $0x40] sm:$0xff] }
  0x36   : > { %v287_v25 = vunpack.c.l.bf16 %v270_v20  ;;  %v323_v26 = vperm.slane %v717_v19, 2  ;;  %v288_v28 = vunpack.c.h.bf16 %v270_v20  ;;  %v324_v29 = vperm.slane %v717_v19, 3  ;;  %v278_v41 = vld [vmem:[%s712_s8 + $0x48] sm:$0xff]  ;;  %v273_v48 = vld [vmem:[%s712_s8 + $0x20] sm:$0xff]  ;;  %v733_v49 = vld [vmem:[%s710_s7 + $0x8] sm:$0xff] }
  0x37   : > { %v353_v30 = vmul.f32 %v321_v23, %v285_v21  ;;  %v354_v31 = vmul.f32 %v322_v24, %v286_v22  ;;  %v289_v32 = vunpack.c.l.bf16 %v271_v27  ;;  %v325_v33 = vperm.slane %v717_v19, 4  ;;  %v279_v55 = vld [vmem:[%s712_s8 + $0x50] sm:$0xff]  ;;  %v274_v63 = vld [vmem:[%s712_s8 + $0x28] sm:$0xff]  ;;  %v280_v6 = vld [vmem:[%s712_s8 + $0x58] sm:$0xff] }
  0x38   : > { %v355_v34 = vmul.f32 %v323_v26, %v287_v25  ;;  %v290_v37 = vunpack.c.h.bf16 %v271_v27  ;;  %v326_v38 = vperm.slane %v717_v19, 5  ;;  %v356_v39 = vmul.f32 %v324_v29, %v288_v28  ;;  %v275_v14 = vld [vmem:[%s712_s8 + $0x30] sm:$0xff]  ;;  %v281_v22 = vld [vmem:[%s712_s8 + $0x60] sm:$0xff] }
  0x39   : > { %v387_v40 = vadd.f32 %v354_v31, %v353_v30  ;;  %v301_v42 = vunpack.c.l.bf16 %v277_v35  ;;  %v302_v43 = vunpack.c.h.bf16 %v277_v35  ;;  %v291_v44 = vunpack.c.l.bf16 %v272_v36  ;;  %v276_v30 = vld [vmem:[%s712_s8 + $0x38] sm:$0xff] }
  0x3a   : > { %v327_v45 = vperm.slane %v717_v19, 6  ;;  %v357_v46 = vmul.f32 %v325_v33, %v289_v32  ;;  %v303_v50 = vunpack.c.l.bf16 %v278_v41  ;;  %v292_v51 = vunpack.c.h.bf16 %v272_v36 }
  0x3b   : > { %v388_v47 = vadd.f32 %v387_v40, %v355_v34  ;;  %v328_v52 = vperm.slane %v717_v19, 7  ;;  %v358_v53 = vmul.f32 %v326_v38, %v290_v37  ;;  %v304_v56 = vunpack.c.h.bf16 %v278_v41 }
  0x3c   : > { %v369_v57 = vmul.f32 %v321_v23, %v301_v42  ;;  %v370_v58 = vmul.f32 %v322_v24, %v302_v43  ;;  %v293_v59 = vunpack.c.l.bf16 %v273_v48  ;;  %v329_v60 = vperm.slane %v733_v49, 0 }
  0x3d   : > { %v389_v54 = vadd.f32 %v388_v47, %v356_v39  ;;  %v359_v61 = vmul.f32 %v327_v45, %v291_v44  ;;  %v305_v0 = vunpack.c.l.bf16 %v279_v55  ;;  %v371_v1 = vmul.f32 %v323_v26, %v303_v50  ;;  %v282_v39 = vld [vmem:[%s712_s8 + $0x68] sm:$0xff] }
  0x3e   : > { %v294_v2 = vunpack.c.h.bf16 %v273_v48  ;;  %v330_v3 = vperm.slane %v733_v49, 1  ;;  %v360_v4 = vmul.f32 %v328_v52, %v292_v51  ;;  %v306_v7 = vunpack.c.h.bf16 %v279_v55  ;;  %v283_v55 = vld [vmem:[%s712_s8 + $0x70] sm:$0xff] }
  0x3f   : > { %v390_v62 = vadd.f32 %v389_v54, %v357_v46  ;;  %v372_v8 = vmul.f32 %v324_v29, %v304_v56  ;;  %v404_v9 = vadd.f32 %v370_v58, %v369_v57  ;;  %v295_v10 = vunpack.c.l.bf16 %v274_v63 }
  0x40   : > { %v331_v11 = vperm.slane %v733_v49, 2  ;;  %v361_v12 = vmul.f32 %v329_v60, %v293_v59  ;;  %v307_v15 = vunpack.c.l.bf16 %v280_v6  ;;  %v373_v16 = vmul.f32 %v325_v33, %v305_v0 }
  0x41   : > { %v391_v5 = vadd.f32 %v390_v62, %v358_v53  ;;  %v405_v17 = vadd.f32 %v404_v9, %v371_v1  ;;  %v296_v18 = vunpack.c.h.bf16 %v274_v63  ;;  %v332_v19 = vperm.slane %v733_v49, 3 }
  0x42   : > { %v362_v20 = vmul.f32 %v330_v3, %v294_v2  ;;  %v308_v23 = vunpack.c.h.bf16 %v280_v6  ;;  %v374_v24 = vmul.f32 %v326_v38, %v306_v7  ;;  %v297_v26 = vunpack.c.l.bf16 %v275_v14  ;;  %v284_v2 = vld [vmem:[%s712_s8 + $0x78] sm:$0xff] }
  0x43   : > { %v392_v13 = vadd.f32 %v391_v5, %v359_v61  ;;  %v406_v25 = vadd.f32 %v405_v17, %v372_v8  ;;  %v333_v27 = vperm.slane %v733_v49, 4  ;;  %v363_v28 = vmul.f32 %v331_v11, %v295_v10 }
  0x44   : > { %v309_v31 = vunpack.c.l.bf16 %v281_v22  ;;  %v375_v32 = vmul.f32 %v327_v45, %v307_v15  ;;  %v298_v34 = vunpack.c.h.bf16 %v275_v14  ;;  %v334_v35 = vperm.slane %v733_v49, 5 }
  0x45   : > { %v393_v21 = vadd.f32 %v392_v13, %v360_v4  ;;  %v407_v33 = vadd.f32 %v406_v25, %v373_v16  ;;  %v364_v36 = vmul.f32 %v332_v19, %v296_v18  ;;  %v310_v40 = vunpack.c.h.bf16 %v281_v22  ;;  %v385_v18 = vld [vmem:[#allocation2] sm:$0xff] }
  0x46   : > { %v376_v41 = vmul.f32 %v328_v52, %v308_v23  ;;  %v299_v42 = vunpack.c.l.bf16 %v276_v30  ;;  %v335_v43 = vperm.slane %v733_v49, 6  ;;  %v365_v44 = vmul.f32 %v333_v27, %v297_v26 }
  0x47   : > { %v394_v29 = vadd.f32 %v393_v21, %v361_v12  ;;  %v408_v38 = vadd.f32 %v407_v33, %v374_v24  ;;  %v311_v47 = vunpack.c.l.bf16 %v282_v39  ;;  %v377_v48 = vmul.f32 %v329_v60, %v309_v31  ;;  %v386_v21 = vld [vmem:[#allocation2 + $0x8] sm:$0xff] }
  0x48   : > { %v300_v45 = vunpack.c.h.bf16 %v276_v30  ;;  %v336_v51 = vperm.slane %v733_v49, 7  ;;  %v366_v53 = vmul.f32 %v334_v35, %v298_v34  ;;  %v312_v56 = vunpack.c.h.bf16 %v282_v39 }
  0x49   : > { %v395_v37 = vadd.f32 %v394_v29, %v362_v20  ;;  %v409_v50 = vadd.f32 %v408_v38, %v375_v32  ;;  %v378_v57 = vmul.f32 %v330_v3, %v310_v40  ;;  %v367_v52 = vmul.f32 %v335_v43, %v299_v42 }
  0x4a   : > { %v313_v61 = vunpack.c.l.bf16 %v283_v55  ;;  %v379_v62 = vmul.f32 %v331_v11, %v311_v47  ;;  %v368_v0 = vmul.f32 %v336_v51, %v300_v45  ;;  %v314_v60 = vunpack.c.h.bf16 %v283_v55 }
  0x4b   : > { %v396_v46 = vadd.f32 %v395_v37, %v363_v28  ;;  %v410_v58 = vadd.f32 %v409_v50, %v376_v41  ;;  %v380_v4 = vmul.f32 %v332_v19, %v312_v56  ;;  %v315_v7 = vunpack.c.l.bf16 %v284_v2 }
  0x4c   : > { %v381_v49 = vmul.f32 %v333_v27, %v313_v61  ;;  %v316_v10 = vunpack.c.h.bf16 %v284_v2  ;;  %v382_v12 = vmul.f32 %v334_v35, %v314_v60 }
  0x4d   : > { %v397_v54 = vadd.f32 %v396_v46, %v364_v36  ;;  %v411_v63 = vadd.f32 %v410_v58, %v377_v48  ;;  %v383_v13 = vmul.f32 %v335_v43, %v315_v7 }
  0x4e   : > { %v384_v15 = vmul.f32 %v336_v51, %v316_v10 }
  0x4f   : > { %v398_v59 = vadd.f32 %v397_v54, %v365_v44  ;;  %v412_v5 = vadd.f32 %v411_v63, %v378_v57 }
  0x51   : > { %v399_v1 = vadd.f32 %v398_v59, %v366_v53  ;;  %v413_v8 = vadd.f32 %v412_v5, %v379_v62 }
  0x53   : > { %v400_v6 = vadd.f32 %v399_v1, %v367_v52  ;;  %v414_v3 = vadd.f32 %v413_v8, %v380_v4 }
  0x55   : > { %v401_v9 = vadd.f32 %v400_v6, %v368_v0  ;;  %v415_v14 = vadd.f32 %v414_v3, %v381_v49 }
  0x57   : > { %402 = vadd.xlane.f32.xlu0 %v401_v9  ;;  %v416_v11 = vadd.f32 %v415_v14, %v382_v12 }
  0x59   : > { %v417_v16 = vadd.f32 %v416_v11, %v383_v13 }
  0x5b   : > { %v418_v17 = vadd.f32 %v417_v16, %v384_v15 }
  0x5f   : > { %419 = vadd.xlane.f32.xlu0 %v418_v17 }
  0xca   : > { %v403_v19 = vpop.xlane.xlu0 %402 }
  0xcb   : > { %v421_v20 = vadd.f32 %v403_v19, %v385_v18 }
  0xcd   : > { %424 = vst.msk [vmem:[#allocation2] sm:$0xff] %vm423_vm1, %v421_v20 }
  0xd1   : > { %429 = sbr.rel (%p530_p11) target bundleno = 224 (0xe0), region = 63 }
  0xd2   : > { %v420_v22 = vpop.xlane.xlu0 %419 }
  0xd3   : > { %v422_v23 = vadd.f32 %v420_v22, %v386_v21 }
  0xd5   : > { %425 = vst.msk [vmem:[#allocation2 + $0x8] sm:$0xff] %vm423_vm1, %v422_v23 }
  0xd6   : > { %v430_v24 = vld [vmem:[#allocation2] sm:$0xff]  ;;  %v577_v25 = vld [vmem:[#allocation3] ss:$0 sm:$0xff] }
  0xd7   : > { %v436_v27 = vadd.f32 %v577_v25, %v430_v24 }
  0xd9   : > { %438 = vst.msk [vmem:[%s782_s3] sm:$0xff] %vm423_vm1, %v436_v27 }
  0xdc   : > { %v431_v26 = vld [vmem:[#allocation2 + $0x8] sm:$0xff] }
  0xdd   : > { %v437_v28 = vadd.f32 %v577_v25, %v431_v26 }
  0xdf   : > { %439 = vst.msk [vmem:[%s782_s3 + $0x8] sm:$0xff] %vm423_vm1, %v437_v28 }
  0xe0 PF: > { %s15_s18 = sadd.s32 1, %s616_s18   ;;  %s783_s14 = smov %s604_s15 }
  0xe1   : > { %p12_p12 = scmp.ge.s32.totalorder %s15_s18, 6   ;;  %s784_s15 = smov %s677_s21 }
  0xe2   : > { %s785_s16 = smov %s612_s17  ;;  %s786_s17 = smov %s788_s2 }
  0xe3   :  { %14 = sbr.rel (!%p12_p12) target bundleno = 6 (0x6), region = 101 }

</bundles_post_ra>
